<compile_context>
chip_gen: v7x
topology: tpu7x:2x2x1
jax: 0.10.0
libtpu: 0.0.40
codegen_flags: <defaults>
</compile_context>

<pallas_src>
import math

import jax
import jax.numpy as jnp
from jax.experimental import pallas as pl
from jax.experimental.pallas import tpu as pltpu


# ----------------------------- Pallas kernels ------------------------------

def _mlp_kernel(x_ref, w1, b1, w2, b2, w3, b3, w4, b4, w5, b5, w6, b6,
                enc_ref, dec_ref):
    """Fused encoder (784->128->64->12) + decoder (12->64->128->784, sigmoid)."""
    x = x_ref[...]
    h = jnp.maximum(jnp.dot(x, w1[...], preferred_element_type=jnp.float32) + b1[...], 0.0)
    h = jnp.maximum(jnp.dot(h, w2[...], preferred_element_type=jnp.float32) + b2[...], 0.0)
    enc = jnp.dot(h, w3[...], preferred_element_type=jnp.float32) + b3[...]
    enc_ref[...] = enc
    h = jnp.maximum(jnp.dot(enc, w4[...], preferred_element_type=jnp.float32) + b4[...], 0.0)
    h = jnp.maximum(jnp.dot(h, w5[...], preferred_element_type=jnp.float32) + b5[...], 0.0)
    z = jnp.dot(h, w6[...], preferred_element_type=jnp.float32) + b6[...]
    # sigmoid: exp and the reciprocal both run on the EUP slot, keeping the VPU free.
    dec_ref[...] = pl.reciprocal(1.0 + jnp.exp(-z), approx=True)


def _cnn_head_kernel(xs_ref, t1_ref, b1t_ref, t2_ref, b2t_ref,
                     w1p_ref, bfc1_ref, w2p_ref, bfc2_ref, out_ref):
    """Fused conv1 -> 2x2 maxpool+relu -> conv2 -> 2x2 maxpool+relu -> fc1 -> fc2.

      xs_ref : (bb, 4, 7, 28)  image rows split by row % 4: xs[b, m, t] = img[b, 4t+m]
      t1_ref : (5, 28, 240)    conv1 as banded matmuls; lanes = [even-w | odd-w] x (w, cout)
      t2_ref : (5, 120, 160)   conv2 as banded matmuls; rows = (w, cin), lanes split even/odd-w
      w1p_ref: (320, 50)       fc1 weights with rows permuted to the kernel's (h, w, c) order
      out_ref: (bb, 10)        logits (only array written back to HBM)
    """
    bb = xs_ref.shape[0]

    def pool_w(z):
        # 2x max-pool along output width: lanes are laid out as
        # [all even-w columns | all odd-w columns], so this is one elementwise max.
        half = z.shape[1] // 2
        return jnp.maximum(z[:, :half], z[:, half:])

    for b in range(bb):
        # ---- conv1 (1->10, k=5): 20 small MXU matmuls, output rows split by row % 4
        # ---- so that both levels of 2x2 row pooling are plain elementwise maxes.
        y1 = []
        for r in range(4):
            acc = jnp.zeros((6, 240), jnp.float32)
            for kh in range(5):
                s = (r + kh) % 4
                j = (r + kh) // 4
                acc = acc + jnp.dot(xs_ref[b, s, j:j + 6, :], t1_ref[kh],
                                    preferred_element_type=jnp.float32)
            y1.append(acc + b1t_ref[...])
        # 2x2 max-pool + relu; h1[p] holds the even (p=0) / odd (p=1) rows of the pooled map.
        h1 = [jnp.maximum(pool_w(jnp.maximum(y1[0], y1[1])), 0.0),
              jnp.maximum(pool_w(jnp.maximum(y1[2], y1[3])), 0.0)]        # each (6, 120)

        # ---- conv2 (10->20, k=5): 10 matmuls, output rows split by parity.
        # TODO(synk): nn.Dropout2d uses eval-mode (identity) semantics here.
        y2e = jnp.zeros((4, 160), jnp.float32)
        y2o = jnp.zeros((4, 160), jnp.float32)
        for kh in range(5):
            t2k = t2_ref[kh]
            y2e = y2e + jnp.dot(h1[kh % 2][kh // 2:kh // 2 + 4, :], t2k,
                                preferred_element_type=jnp.float32)
            ko = kh + 1
            y2o = y2o + jnp.dot(h1[ko % 2][ko // 2:ko // 2 + 4, :], t2k,
                                preferred_element_type=jnp.float32)
        h2 = jnp.maximum(
            pool_w(jnp.maximum(y2e + b2t_ref[...], y2o + b2t_ref[...])), 0.0)   # (4, 80)

        # ---- fc1 + relu, accumulated per pooled row (no in-kernel flatten needed;
        # ---- w1p rows were permuted outside to match torch's x.view(-1, 320) order).
        f1 = bfc1_ref[...]
        for h in range(4):
            f1 = f1 + jnp.dot(h2[h:h + 1, :], w1p_ref[80 * h:80 * (h + 1), :],
                              preferred_element_type=jnp.float32)
        f1 = jnp.maximum(f1, 0.0)
        # TODO(synk): F.dropout after fc1 uses eval-mode (identity) semantics here.
        out_ref[b:b + 1, :] = (jnp.dot(f1, w2p_ref[...],
                                       preferred_element_type=jnp.float32) + bfc2_ref[...])


# ----------------------------- wrappers -------------------------------------

def mlp_encode_decode(x, p):
    """(encoded, decoded) for x: (B, 784)."""
    B = x.shape[0]
    # <=128-row blocks: ~0.4 MiB per x/decoded block (+ ~1 MiB of weights), so the
    # pipeline fits comfortably inside the scoped-VMEM default on v5e/v6e/v7x.
    bm = B if B <= 128 else 128
    names = ("enc_w1", "enc_b1", "enc_w2", "enc_b2", "enc_w3", "enc_b3",
             "dec_w1", "dec_b1", "dec_w2", "dec_b2", "dec_w3", "dec_b3")
    weights = [p[n] for n in names]

    def full_spec(a):
        nd = a.ndim
        return pl.BlockSpec(a.shape, lambda i: (0,) * nd)

    def rows_spec(n):
        return pl.BlockSpec((bm, n), lambda i: (i, 0))

    return pl.pallas_call(
        _mlp_kernel,
        grid=(pl.cdiv(B, bm),),
        in_specs=[rows_spec(784)] + [full_spec(a) for a in weights],
        out_specs=(rows_spec(12), rows_spec(784)),
        out_shape=(jax.ShapeDtypeStruct((B, 12), jnp.float32),
                   jax.ShapeDtypeStruct((B, 784), jnp.float32)),
        compiler_params=pltpu.CompilerParams(dimension_semantics=("parallel",)),
    )(x, *weights)


def _cnn_head_operands(p):
    """Rearrange torch-layout conv/fc params into the matmul-form operands used by
    _cnn_head_kernel.  Pure XLA-level param prep (tiny, runs once per call)."""
    w1 = p["conv1_w"]                                   # (10, 1, 5, 5)  (cout, cin, kh, kw)
    w2 = p["conv2_w"]                                   # (20, 10, 5, 5)

    # conv1 banded matrices: t1[kh, i, lane] with lane ordered [even ow | odd ow] x (pw, cout).
    ow = jnp.arange(24)
    ii = jnp.arange(28)
    kwm = ii[:, None] - ow[None, :]                     # (28, 24): kw = i - ow
    g1 = w1[:, 0, :, :][:, :, jnp.clip(kwm, 0, 4)]      # (10, 5, 28, 24)
    g1 = jnp.where(((kwm >= 0) & (kwm < 5))[None, None], g1, 0.0)
    g1 = jnp.transpose(g1, (1, 2, 3, 0))                # (kh, i, ow, cout)
    g1 = jnp.concatenate([g1[:, :, 0::2, :], g1[:, :, 1::2, :]], axis=2)
    t1 = g1.reshape(5, 28, 240)

    # conv2 banded matrices: t2[kh, pw*10+cin, lane] with lane ordered [even ow2 | odd ow2].
    pw = jnp.arange(12)
    ow2 = jnp.arange(8)
    kwm2 = pw[:, None] - ow2[None, :]                   # (12, 8)
    g2 = w2[:, :, :, jnp.clip(kwm2, 0, 4)]              # (20, 10, 5, 12, 8)
    g2 = jnp.where(((kwm2 >= 0) & (kwm2 < 5))[None, None, None], g2, 0.0)
    g2 = jnp.transpose(g2, (2, 3, 1, 4, 0))             # (kh, pw, cin, ow2, cout)
    g2 = jnp.concatenate([g2[:, :, :, 0::2, :], g2[:, :, :, 1::2, :]], axis=3)
    t2 = g2.reshape(5, 120, 160)

    b1t = jnp.tile(p["conv1_b"], 24).reshape(1, 240)    # per-cout bias over the (w, c) lanes
    b2t = jnp.tile(p["conv2_b"], 8).reshape(1, 160)

    # fc1 weights permuted so the kernel's (h, w, c) ordering matches torch's (c, h, w) flatten.
    w1p = p["fc1_w"].T.reshape(20, 4, 4, 50).transpose(1, 2, 0, 3).reshape(320, 50)
    bfc1 = p["fc1_b"].reshape(1, 50)
    w2p = p["fc2_w"].T                                  # (50, 10)
    bfc2 = p["fc2_b"].reshape(1, 10)
    return t1, b1t, t2, b2t, w1p, bfc1, w2p, bfc2


def cnn_head(xs, p):
    """output_x for xs: (B, 4, 7, 28) (decoded image rows split by row % 4)."""
    B = xs.shape[0]
    bb = B if B <= 8 else 8                             # batch block (keeps unroll small)
    consts = _cnn_head_operands(p)

    def full_spec(a):
        nd = a.ndim
        return pl.BlockSpec(a.shape, lambda i: (0,) * nd)

    return pl.pallas_call(
        _cnn_head_kernel,
        grid=(pl.cdiv(B, bb),),
        in_specs=[pl.BlockSpec((bb, 4, 7, 28), lambda i: (i, 0, 0, 0))]
                 + [full_spec(a) for a in consts],
        out_specs=pl.BlockSpec((bb, 10), lambda i: (i, 0)),
        out_shape=jax.ShapeDtypeStruct((B, 10), jnp.float32),
        compiler_params=pltpu.CompilerParams(dimension_semantics=("parallel",)),
    )(xs, *consts)


# ----------------------------- model ----------------------------------------

def autoencoder_forward(x, p):
    """Matches Autoencoder.forward: returns (encoded, decoded, output_x)."""
    x2 = x.reshape(-1, 28 * 28)                         # x.view(-1, 784)
    B = x2.shape[0]

    encoded, decoded = mlp_encode_decode(x2, p)         # (B, 12), (B, 784)

    # Tiny XLA-level relayout: split image rows by row % 4 so both 2x2 max-pools
    # inside the fused CNN-head kernel become plain elementwise maxes.
    img = decoded.reshape(B, 28, 28)
    xs = jnp.transpose(img.reshape(B, 7, 4, 28), (0, 2, 1, 3))   # (B, 4, 7, 28)

    output_x = cnn_head(xs, p)                          # (B, 10)
    return encoded, decoded, output_x


def init_params(key):
    """Deterministic params.  MLP weights are stored (in, out); conv/fc-head
    weights are stored in their torch layouts and permuted at trace time."""
    def uni(k, shape, fan_in):
        bound = 1.0 / math.sqrt(fan_in)
        return jax.random.uniform(k, shape, jnp.float32, -bound, bound)

    spec = [
        ("enc_w1", (784, 128), 784), ("enc_b1", (1, 128), 784),
        ("enc_w2", (128, 64), 128),  ("enc_b2", (1, 64), 128),
        ("enc_w3", (64, 12), 64),    ("enc_b3", (1, 12), 64),
        ("dec_w1", (12, 64), 12),    ("dec_b1", (1, 64), 12),
        ("dec_w2", (64, 128), 64),   ("dec_b2", (1, 128), 64),
        ("dec_w3", (128, 784), 128), ("dec_b3", (1, 784), 128),
        ("conv1_w", (10, 1, 5, 5), 25),   ("conv1_b", (10,), 25),
        ("conv2_w", (20, 10, 5, 5), 250), ("conv2_b", (20,), 250),
        ("fc1_w", (50, 320), 320),   ("fc1_b", (50,), 320),
        ("fc2_w", (10, 50), 50),     ("fc2_b", (10,), 50),
    ]
    keys = jax.random.split(key, len(spec))
    return {name: uni(k, shape, fan) for k, (name, shape, fan) in zip(keys, spec)}


if __name__ == "__main__":
    key = jax.random.PRNGKey(0)
    pkey, xkey = jax.random.split(key)
    params = init_params(pkey)
    x = jax.random.uniform(xkey, (2, 1, 28, 28), jnp.float32)   # NCHW like the PyTorch input

    fwd = jax.jit(autoencoder_forward)
    encoded, decoded, output_x = fwd(x, params)
    jax.block_until_ready((encoded, decoded, output_x))

    assert encoded.shape == (2, 12)
    assert decoded.shape == (2, 784)
    assert output_x.shape == (2, 10)
    print("KERNEL_OK")
</pallas_src>

<mosaic_0001>
module attributes {stable_mosaic.version = 11 : i64} {
  func.func @_mlp_kernel(%arg0: i32, %arg1: memref<2x784xf32, #tpu.memory_space<vmem>>, %arg2: memref<784x128xf32, #tpu.memory_space<vmem>>, %arg3: memref<1x128xf32, #tpu.memory_space<vmem>>, %arg4: memref<128x64xf32, #tpu.memory_space<vmem>>, %arg5: memref<1x64xf32, #tpu.memory_space<vmem>>, %arg6: memref<64x12xf32, #tpu.memory_space<vmem>>, %arg7: memref<1x12xf32, #tpu.memory_space<vmem>>, %arg8: memref<12x64xf32, #tpu.memory_space<vmem>>, %arg9: memref<1x64xf32, #tpu.memory_space<vmem>>, %arg10: memref<64x128xf32, #tpu.memory_space<vmem>>, %arg11: memref<1x128xf32, #tpu.memory_space<vmem>>, %arg12: memref<128x784xf32, #tpu.memory_space<vmem>>, %arg13: memref<1x784xf32, #tpu.memory_space<vmem>>, %arg14: memref<2x12xf32, #tpu.memory_space<vmem>>, %arg15: memref<2x784xf32, #tpu.memory_space<vmem>>) attributes {dimension_semantics = [#tpu.dimension_semantics<parallel>], iteration_bounds = array<i64: 1>, scalar_prefetch = 0 : i64, scratch_operands = 0 : i64, tpu.core_type = #tpu.core_type<tc>, window_params = [{transform_indices = @transform_0, window_bounds = array<i64: 2, 784>}, {pipeline_mode = #tpu.pipeline_mode<synchronous>, transform_indices = @transform_1, window_bounds = array<i64: 784, 128>}, {pipeline_mode = #tpu.pipeline_mode<synchronous>, transform_indices = @transform_2, window_bounds = array<i64: 1, 128>}, {pipeline_mode = #tpu.pipeline_mode<synchronous>, transform_indices = @transform_3, window_bounds = array<i64: 128, 64>}, {pipeline_mode = #tpu.pipeline_mode<synchronous>, transform_indices = @transform_4, window_bounds = array<i64: 1, 64>}, {pipeline_mode = #tpu.pipeline_mode<synchronous>, transform_indices = @transform_5, window_bounds = array<i64: 64, 12>}, {pipeline_mode = #tpu.pipeline_mode<synchronous>, transform_indices = @transform_6, window_bounds = array<i64: 1, 12>}, {pipeline_mode = #tpu.pipeline_mode<synchronous>, transform_indices = @transform_7, window_bounds = array<i64: 12, 64>}, {pipeline_mode = #tpu.pipeline_mode<synchronous>, transform_indices = @transform_8, window_bounds = array<i64: 1, 64>}, {pipeline_mode = #tpu.pipeline_mode<synchronous>, transform_indices = @transform_9, window_bounds = array<i64: 64, 128>}, {pipeline_mode = #tpu.pipeline_mode<synchronous>, transform_indices = @transform_10, window_bounds = array<i64: 1, 128>}, {pipeline_mode = #tpu.pipeline_mode<synchronous>, transform_indices = @transform_11, window_bounds = array<i64: 128, 784>}, {pipeline_mode = #tpu.pipeline_mode<synchronous>, transform_indices = @transform_12, window_bounds = array<i64: 1, 784>}, {transform_indices = @transform_13, window_bounds = array<i64: 2, 12>}, {transform_indices = @transform_14, window_bounds = array<i64: 2, 784>}]} {
    %c0 = arith.constant 0 : index
    %c0_0 = arith.constant 0 : index
    %0 = vector.load %arg1[%c0, %c0_0] : memref<2x784xf32, #tpu.memory_space<vmem>>, vector<2x784xf32>
    %c0_1 = arith.constant 0 : index
    %c0_2 = arith.constant 0 : index
    %1 = vector.load %arg2[%c0_1, %c0_2] : memref<784x128xf32, #tpu.memory_space<vmem>>, vector<784x128xf32>
    %cst = arith.constant dense<0.000000e+00> : vector<2x128xf32>
    %2 = tpu.matmul %0, %1, %cst {dimension_numbers = #tpu.dot_dimension_numbers<[1], [0], [0], [1], [0, 0, 1, 1], [], []>} : vector<2x784xf32>, vector<784x128xf32>, vector<2x128xf32> -> vector<2x128xf32>
    %c0_3 = arith.constant 0 : index
    %c0_4 = arith.constant 0 : index
    %3 = vector.load %arg3[%c0_3, %c0_4] : memref<1x128xf32, #tpu.memory_space<vmem>>, vector<1x128xf32>
    %4 = vector.broadcast %3 : vector<1x128xf32> to vector<2x128xf32>
    %5 = arith.addf %2, %4 : vector<2x128xf32>
    %cst_5 = arith.constant 0.000000e+00 : f32
    %6 = vector.broadcast %cst_5 : f32 to vector<2x128xf32>
    %7 = arith.maximumf %5, %6 : vector<2x128xf32>
    %c0_6 = arith.constant 0 : index
    %c0_7 = arith.constant 0 : index
    %8 = vector.load %arg4[%c0_6, %c0_7] : memref<128x64xf32, #tpu.memory_space<vmem>>, vector<128x64xf32>
    %cst_8 = arith.constant dense<0.000000e+00> : vector<2x64xf32>
    %9 = tpu.matmul %7, %8, %cst_8 {dimension_numbers = #tpu.dot_dimension_numbers<[1], [0], [0], [1], [0, 0, 1, 1], [], []>} : vector<2x128xf32>, vector<128x64xf32>, vector<2x64xf32> -> vector<2x64xf32>
    %c0_9 = arith.constant 0 : index
    %c0_10 = arith.constant 0 : index
    %10 = vector.load %arg5[%c0_9, %c0_10] : memref<1x64xf32, #tpu.memory_space<vmem>>, vector<1x64xf32>
    %11 = vector.broadcast %10 : vector<1x64xf32> to vector<2x64xf32>
    %12 = arith.addf %9, %11 : vector<2x64xf32>
    %cst_11 = arith.constant 0.000000e+00 : f32
    %13 = vector.broadcast %cst_11 : f32 to vector<2x64xf32>
    %14 = arith.maximumf %12, %13 : vector<2x64xf32>
    %c0_12 = arith.constant 0 : index
    %c0_13 = arith.constant 0 : index
    %15 = vector.load %arg6[%c0_12, %c0_13] : memref<64x12xf32, #tpu.memory_space<vmem>>, vector<64x12xf32>
    %cst_14 = arith.constant dense<0.000000e+00> : vector<2x12xf32>
    %16 = tpu.matmul %14, %15, %cst_14 {dimension_numbers = #tpu.dot_dimension_numbers<[1], [0], [0], [1], [0, 0, 1, 1], [], []>} : vector<2x64xf32>, vector<64x12xf32>, vector<2x12xf32> -> vector<2x12xf32>
    %c0_15 = arith.constant 0 : index
    %c0_16 = arith.constant 0 : index
    %17 = vector.load %arg7[%c0_15, %c0_16] : memref<1x12xf32, #tpu.memory_space<vmem>>, vector<1x12xf32>
    %18 = vector.broadcast %17 : vector<1x12xf32> to vector<2x12xf32>
    %19 = arith.addf %16, %18 : vector<2x12xf32>
    %c0_17 = arith.constant 0 : index
    %c0_18 = arith.constant 0 : index
    %20 = vector.load %arg14[%c0_17, %c0_18] : memref<2x12xf32, #tpu.memory_space<vmem>>, vector<2x12xf32>
    tpu.vector_store %arg14[%c0_17, %c0_18], %19 {strides = array<i32>} : memref<2x12xf32, #tpu.memory_space<vmem>>, vector<2x12xf32>,
    %c0_19 = arith.constant 0 : index
    %c0_20 = arith.constant 0 : index
    %21 = vector.load %arg8[%c0_19, %c0_20] : memref<12x64xf32, #tpu.memory_space<vmem>>, vector<12x64xf32>
    %cst_21 = arith.constant dense<0.000000e+00> : vector<2x64xf32>
    %22 = tpu.matmul %19, %21, %cst_21 {dimension_numbers = #tpu.dot_dimension_numbers<[1], [0], [0], [1], [0, 0, 1, 1], [], []>} : vector<2x12xf32>, vector<12x64xf32>, vector<2x64xf32> -> vector<2x64xf32>
    %c0_22 = arith.constant 0 : index
    %c0_23 = arith.constant 0 : index
    %23 = vector.load %arg9[%c0_22, %c0_23] : memref<1x64xf32, #tpu.memory_space<vmem>>, vector<1x64xf32>
    %24 = vector.broadcast %23 : vector<1x64xf32> to vector<2x64xf32>
    %25 = arith.addf %22, %24 : vector<2x64xf32>
    %cst_24 = arith.constant 0.000000e+00 : f32
    %26 = vector.broadcast %cst_24 : f32 to vector<2x64xf32>
    %27 = arith.maximumf %25, %26 : vector<2x64xf32>
    %c0_25 = arith.constant 0 : index
    %c0_26 = arith.constant 0 : index
    %28 = vector.load %arg10[%c0_25, %c0_26] : memref<64x128xf32, #tpu.memory_space<vmem>>, vector<64x128xf32>
    %cst_27 = arith.constant dense<0.000000e+00> : vector<2x128xf32>
    %29 = tpu.matmul %27, %28, %cst_27 {dimension_numbers = #tpu.dot_dimension_numbers<[1], [0], [0], [1], [0, 0, 1, 1], [], []>} : vector<2x64xf32>, vector<64x128xf32>, vector<2x128xf32> -> vector<2x128xf32>
    %c0_28 = arith.constant 0 : index
    %c0_29 = arith.constant 0 : index
    %30 = vector.load %arg11[%c0_28, %c0_29] : memref<1x128xf32, #tpu.memory_space<vmem>>, vector<1x128xf32>
    %31 = vector.broadcast %30 : vector<1x128xf32> to vector<2x128xf32>
    %32 = arith.addf %29, %31 : vector<2x128xf32>
    %cst_30 = arith.constant 0.000000e+00 : f32
    %33 = vector.broadcast %cst_30 : f32 to vector<2x128xf32>
    %34 = arith.maximumf %32, %33 : vector<2x128xf32>
    %c0_31 = arith.constant 0 : index
    %c0_32 = arith.constant 0 : index
    %35 = vector.load %arg12[%c0_31, %c0_32] : memref<128x784xf32, #tpu.memory_space<vmem>>, vector<128x784xf32>
    %cst_33 = arith.constant dense<0.000000e+00> : vector<2x784xf32>
    %36 = tpu.matmul %34, %35, %cst_33 {dimension_numbers = #tpu.dot_dimension_numbers<[1], [0], [0], [1], [0, 0, 1, 1], [], []>} : vector<2x128xf32>, vector<128x784xf32>, vector<2x784xf32> -> vector<2x784xf32>
    %c0_34 = arith.constant 0 : index
    %c0_35 = arith.constant 0 : index
    %37 = vector.load %arg13[%c0_34, %c0_35] : memref<1x784xf32, #tpu.memory_space<vmem>>, vector<1x784xf32>
    %38 = vector.broadcast %37 : vector<1x784xf32> to vector<2x784xf32>
    %39 = arith.addf %36, %38 : vector<2x784xf32>
    %cst_36 = arith.constant 0.000000e+00 : f32
    %40 = vector.broadcast %cst_36 : f32 to vector<2x784xf32>
    %41 = arith.subf %40, %39 : vector<2x784xf32>
    %42 = math.exp %41 : vector<2x784xf32>
    %cst_37 = arith.constant 1.000000e+00 : f32
    %43 = vector.broadcast %cst_37 : f32 to vector<2x784xf32>
    %44 = arith.addf %43, %42 : vector<2x784xf32>
    %45 = tpu.reciprocal %44 {approx = true} : vector<2x784xf32> -> vector<2x784xf32>
    %c0_38 = arith.constant 0 : index
    %c0_39 = arith.constant 0 : index
    %46 = vector.load %arg15[%c0_38, %c0_39] : memref<2x784xf32, #tpu.memory_space<vmem>>, vector<2x784xf32>
    tpu.vector_store %arg15[%c0_38, %c0_39], %45 {strides = array<i32>} : memref<2x784xf32, #tpu.memory_space<vmem>>, vector<2x784xf32>,
    return
  }
  func.func @transform_0(%arg0: i32) -> (i32, i32) {
    %c0_i32 = arith.constant 0 : i32
    %c0_i32_0 = arith.constant 0 : i32
    return %arg0, %c0_i32 : i32, i32
  }
  func.func @transform_1(%arg0: i32) -> (i32, i32) {
    %c0_i32 = arith.constant 0 : i32
    %c0_i32_0 = arith.constant 0 : i32
    %c0_i32_1 = arith.constant 0 : i32
    return %c0_i32, %c0_i32_0 : i32, i32
  }
  func.func @transform_2(%arg0: i32) -> (i32, i32) {
    %c0_i32 = arith.constant 0 : i32
    %c0_i32_0 = arith.constant 0 : i32
    %c0_i32_1 = arith.constant 0 : i32
    return %c0_i32, %c0_i32_0 : i32, i32
  }
  func.func @transform_3(%arg0: i32) -> (i32, i32) {
    %c0_i32 = arith.constant 0 : i32
    %c0_i32_0 = arith.constant 0 : i32
    %c0_i32_1 = arith.constant 0 : i32
    return %c0_i32, %c0_i32_0 : i32, i32
  }
  func.func @transform_4(%arg0: i32) -> (i32, i32) {
    %c0_i32 = arith.constant 0 : i32
    %c0_i32_0 = arith.constant 0 : i32
    %c0_i32_1 = arith.constant 0 : i32
    return %c0_i32, %c0_i32_0 : i32, i32
  }
  func.func @transform_5(%arg0: i32) -> (i32, i32) {
    %c0_i32 = arith.constant 0 : i32
    %c0_i32_0 = arith.constant 0 : i32
    %c0_i32_1 = arith.constant 0 : i32
    return %c0_i32, %c0_i32_0 : i32, i32
  }
  func.func @transform_6(%arg0: i32) -> (i32, i32) {
    %c0_i32 = arith.constant 0 : i32
    %c0_i32_0 = arith.constant 0 : i32
    %c0_i32_1 = arith.constant 0 : i32
    return %c0_i32, %c0_i32_0 : i32, i32
  }
  func.func @transform_7(%arg0: i32) -> (i32, i32) {
    %c0_i32 = arith.constant 0 : i32
    %c0_i32_0 = arith.constant 0 : i32
    %c0_i32_1 = arith.constant 0 : i32
    return %c0_i32, %c0_i32_0 : i32, i32
  }
  func.func @transform_8(%arg0: i32) -> (i32, i32) {
    %c0_i32 = arith.constant 0 : i32
    %c0_i32_0 = arith.constant 0 : i32
    %c0_i32_1 = arith.constant 0 : i32
    return %c0_i32, %c0_i32_0 : i32, i32
  }
  func.func @transform_9(%arg0: i32) -> (i32, i32) {
    %c0_i32 = arith.constant 0 : i32
    %c0_i32_0 = arith.constant 0 : i32
    %c0_i32_1 = arith.constant 0 : i32
    return %c0_i32, %c0_i32_0 : i32, i32
  }
  func.func @transform_10(%arg0: i32) -> (i32, i32) {
    %c0_i32 = arith.constant 0 : i32
    %c0_i32_0 = arith.constant 0 : i32
    %c0_i32_1 = arith.constant 0 : i32
    return %c0_i32, %c0_i32_0 : i32, i32
  }
  func.func @transform_11(%arg0: i32) -> (i32, i32) {
    %c0_i32 = arith.constant 0 : i32
    %c0_i32_0 = arith.constant 0 : i32
    %c0_i32_1 = arith.constant 0 : i32
    return %c0_i32, %c0_i32_0 : i32, i32
  }
  func.func @transform_12(%arg0: i32) -> (i32, i32) {
    %c0_i32 = arith.constant 0 : i32
    %c0_i32_0 = arith.constant 0 : i32
    %c0_i32_1 = arith.constant 0 : i32
    return %c0_i32, %c0_i32_0 : i32, i32
  }
  func.func @transform_13(%arg0: i32) -> (i32, i32) {
    %c0_i32 = arith.constant 0 : i32
    %c0_i32_0 = arith.constant 0 : i32
    return %arg0, %c0_i32 : i32, i32
  }
  func.func @transform_14(%arg0: i32) -> (i32, i32) {
    %c0_i32 = arith.constant 0 : i32
    %c0_i32_0 = arith.constant 0 : i32
    return %arg0, %c0_i32 : i32, i32
  }
}

module attributes {stable_mosaic.version = 11 : i64} {
  func.func @_cnn_head_kernel(%arg0: i32, %arg1: memref<2x4x7x28xf32, #tpu.memory_space<vmem>>, %arg2: memref<5x28x240xf32, #tpu.memory_space<vmem>>, %arg3: memref<1x240xf32, #tpu.memory_space<vmem>>, %arg4: memref<5x120x160xf32, #tpu.memory_space<vmem>>, %arg5: memref<1x160xf32, #tpu.memory_space<vmem>>, %arg6: memref<320x50xf32, #tpu.memory_space<vmem>>, %arg7: memref<1x50xf32, #tpu.memory_space<vmem>>, %arg8: memref<50x10xf32, #tpu.memory_space<vmem>>, %arg9: memref<1x10xf32, #tpu.memory_space<vmem>>, %arg10: memref<2x10xf32, #tpu.memory_space<vmem>>) attributes {dimension_semantics = [#tpu.dimension_semantics<parallel>], iteration_bounds = array<i64: 1>, scalar_prefetch = 0 : i64, scratch_operands = 0 : i64, tpu.core_type = #tpu.core_type<tc>, window_params = [{transform_indices = @transform_0, window_bounds = array<i64: 2, 4, 7, 28>}, {pipeline_mode = #tpu.pipeline_mode<synchronous>, transform_indices = @transform_1, window_bounds = array<i64: 5, 28, 240>}, {pipeline_mode = #tpu.pipeline_mode<synchronous>, transform_indices = @transform_2, window_bounds = array<i64: 1, 240>}, {pipeline_mode = #tpu.pipeline_mode<synchronous>, transform_indices = @transform_3, window_bounds = array<i64: 5, 120, 160>}, {pipeline_mode = #tpu.pipeline_mode<synchronous>, transform_indices = @transform_4, window_bounds = array<i64: 1, 160>}, {pipeline_mode = #tpu.pipeline_mode<synchronous>, transform_indices = @transform_5, window_bounds = array<i64: 320, 50>}, {pipeline_mode = #tpu.pipeline_mode<synchronous>, transform_indices = @transform_6, window_bounds = array<i64: 1, 50>}, {pipeline_mode = #tpu.pipeline_mode<synchronous>, transform_indices = @transform_7, window_bounds = array<i64: 50, 10>}, {pipeline_mode = #tpu.pipeline_mode<synchronous>, transform_indices = @transform_8, window_bounds = array<i64: 1, 10>}, {transform_indices = @transform_9, window_bounds = array<i64: 2, 10>}]} {
    %cst = arith.constant 0.000000e+00 : f32
    %0 = vector.broadcast %cst : f32 to vector<6x240xf32>
    %c0 = arith.constant 0 : index
    %c0_0 = arith.constant 0 : index
    %c0_1 = arith.constant 0 : index
    %c0_2 = arith.constant 0 : index
    %1 = vector.load %arg1[%c0, %c0_0, %c0_1, %c0_2] : memref<2x4x7x28xf32, #tpu.memory_space<vmem>>, vector<1x1x6x28xf32>
    %2 = vector.shape_cast %1 : vector<1x1x6x28xf32> to vector<6x28xf32>
    %c0_3 = arith.constant 0 : index
    %c0_4 = arith.constant 0 : index
    %c0_5 = arith.constant 0 : index
    %3 = vector.load %arg2[%c0_3, %c0_4, %c0_5] : memref<5x28x240xf32, #tpu.memory_space<vmem>>, vector<1x28x240xf32>
    %4 = vector.shape_cast %3 : vector<1x28x240xf32> to vector<28x240xf32>
    %cst_6 = arith.constant dense<0.000000e+00> : vector<6x240xf32>
    %5 = tpu.matmul %2, %4, %cst_6 {dimension_numbers = #tpu.dot_dimension_numbers<[1], [0], [0], [1], [0, 0, 1, 1], [], []>} : vector<6x28xf32>, vector<28x240xf32>, vector<6x240xf32> -> vector<6x240xf32>
    %6 = arith.addf %0, %5 : vector<6x240xf32>
    %c0_7 = arith.constant 0 : index
    %c1 = arith.constant 1 : index
    %c0_8 = arith.constant 0 : index
    %c0_9 = arith.constant 0 : index
    %7 = vector.load %arg1[%c0_7, %c1, %c0_8, %c0_9] : memref<2x4x7x28xf32, #tpu.memory_space<vmem>>, vector<1x1x6x28xf32>
    %8 = vector.shape_cast %7 : vector<1x1x6x28xf32> to vector<6x28xf32>
    %c1_10 = arith.constant 1 : index
    %c0_11 = arith.constant 0 : index
    %c0_12 = arith.constant 0 : index
    %9 = vector.load %arg2[%c1_10, %c0_11, %c0_12] : memref<5x28x240xf32, #tpu.memory_space<vmem>>, vector<1x28x240xf32>
    %10 = vector.shape_cast %9 : vector<1x28x240xf32> to vector<28x240xf32>
    %cst_13 = arith.constant dense<0.000000e+00> : vector<6x240xf32>
    %11 = tpu.matmul %8, %10, %cst_13 {dimension_numbers = #tpu.dot_dimension_numbers<[1], [0], [0], [1], [0, 0, 1, 1], [], []>} : vector<6x28xf32>, vector<28x240xf32>, vector<6x240xf32> -> vector<6x240xf32>
    %12 = arith.addf %6, %11 : vector<6x240xf32>
    %c0_14 = arith.constant 0 : index
    %c2 = arith.constant 2 : index
    %c0_15 = arith.constant 0 : index
    %c0_16 = arith.constant 0 : index
    %13 = vector.load %arg1[%c0_14, %c2, %c0_15, %c0_16] : memref<2x4x7x28xf32, #tpu.memory_space<vmem>>, vector<1x1x6x28xf32>
    %14 = vector.shape_cast %13 : vector<1x1x6x28xf32> to vector<6x28xf32>
    %c2_17 = arith.constant 2 : index
    %c0_18 = arith.constant 0 : index
    %c0_19 = arith.constant 0 : index
    %15 = vector.load %arg2[%c2_17, %c0_18, %c0_19] : memref<5x28x240xf32, #tpu.memory_space<vmem>>, vector<1x28x240xf32>
    %16 = vector.shape_cast %15 : vector<1x28x240xf32> to vector<28x240xf32>
    %cst_20 = arith.constant dense<0.000000e+00> : vector<6x240xf32>
    %17 = tpu.matmul %14, %16, %cst_20 {dimension_numbers = #tpu.dot_dimension_numbers<[1], [0], [0], [1], [0, 0, 1, 1], [], []>} : vector<6x28xf32>, vector<28x240xf32>, vector<6x240xf32> -> vector<6x240xf32>
    %18 = arith.addf %12, %17 : vector<6x240xf32>
    %c0_21 = arith.constant 0 : index
    %c3 = arith.constant 3 : index
    %c0_22 = arith.constant 0 : index
    %c0_23 = arith.constant 0 : index
    %19 = vector.load %arg1[%c0_21, %c3, %c0_22, %c0_23] : memref<2x4x7x28xf32, #tpu.memory_space<vmem>>, vector<1x1x6x28xf32>
    %20 = vector.shape_cast %19 : vector<1x1x6x28xf32> to vector<6x28xf32>
    %c3_24 = arith.constant 3 : index
    %c0_25 = arith.constant 0 : index
    %c0_26 = arith.constant 0 : index
    %21 = vector.load %arg2[%c3_24, %c0_25, %c0_26] : memref<5x28x240xf32, #tpu.memory_space<vmem>>, vector<1x28x240xf32>
    %22 = vector.shape_cast %21 : vector<1x28x240xf32> to vector<28x240xf32>
    %cst_27 = arith.constant dense<0.000000e+00> : vector<6x240xf32>
    %23 = tpu.matmul %20, %22, %cst_27 {dimension_numbers = #tpu.dot_dimension_numbers<[1], [0], [0], [1], [0, 0, 1, 1], [], []>} : vector<6x28xf32>, vector<28x240xf32>, vector<6x240xf32> -> vector<6x240xf32>
    %24 = arith.addf %18, %23 : vector<6x240xf32>
    %c0_28 = arith.constant 0 : index
    %c0_29 = arith.constant 0 : index
    %c1_30 = arith.constant 1 : index
    %c0_31 = arith.constant 0 : index
    %25 = vector.load %arg1[%c0_28, %c0_29, %c1_30, %c0_31] : memref<2x4x7x28xf32, #tpu.memory_space<vmem>>, vector<1x1x6x28xf32>
    %26 = vector.shape_cast %25 : vector<1x1x6x28xf32> to vector<6x28xf32>
    %c4 = arith.constant 4 : index
    %c0_32 = arith.constant 0 : index
    %c0_33 = arith.constant 0 : index
    %27 = vector.load %arg2[%c4, %c0_32, %c0_33] : memref<5x28x240xf32, #tpu.memory_space<vmem>>, vector<1x28x240xf32>
    %28 = vector.shape_cast %27 : vector<1x28x240xf32> to vector<28x240xf32>
    %cst_34 = arith.constant dense<0.000000e+00> : vector<6x240xf32>
    %29 = tpu.matmul %26, %28, %cst_34 {dimension_numbers = #tpu.dot_dimension_numbers<[1], [0], [0], [1], [0, 0, 1, 1], [], []>} : vector<6x28xf32>, vector<28x240xf32>, vector<6x240xf32> -> vector<6x240xf32>
    %30 = arith.addf %24, %29 : vector<6x240xf32>
    %c0_35 = arith.constant 0 : index
    %c0_36 = arith.constant 0 : index
    %31 = vector.load %arg3[%c0_35, %c0_36] : memref<1x240xf32, #tpu.memory_space<vmem>>, vector<1x240xf32>
    %32 = vector.broadcast %31 : vector<1x240xf32> to vector<6x240xf32>
    %33 = arith.addf %30, %32 : vector<6x240xf32>
    %cst_37 = arith.constant 0.000000e+00 : f32
    %34 = vector.broadcast %cst_37 : f32 to vector<6x240xf32>
    %c0_38 = arith.constant 0 : index
    %c1_39 = arith.constant 1 : index
    %c0_40 = arith.constant 0 : index
    %c0_41 = arith.constant 0 : index
    %35 = vector.load %arg1[%c0_38, %c1_39, %c0_40, %c0_41] : memref<2x4x7x28xf32, #tpu.memory_space<vmem>>, vector<1x1x6x28xf32>
    %36 = vector.shape_cast %35 : vector<1x1x6x28xf32> to vector<6x28xf32>
    %c0_42 = arith.constant 0 : index
    %c0_43 = arith.constant 0 : index
    %c0_44 = arith.constant 0 : index
    %37 = vector.load %arg2[%c0_42, %c0_43, %c0_44] : memref<5x28x240xf32, #tpu.memory_space<vmem>>, vector<1x28x240xf32>
    %38 = vector.shape_cast %37 : vector<1x28x240xf32> to vector<28x240xf32>
    %cst_45 = arith.constant dense<0.000000e+00> : vector<6x240xf32>
    %39 = tpu.matmul %36, %38, %cst_45 {dimension_numbers = #tpu.dot_dimension_numbers<[1], [0], [0], [1], [0, 0, 1, 1], [], []>} : vector<6x28xf32>, vector<28x240xf32>, vector<6x240xf32> -> vector<6x240xf32>
    %40 = arith.addf %34, %39 : vector<6x240xf32>
    %c0_46 = arith.constant 0 : index
    %c2_47 = arith.constant 2 : index
    %c0_48 = arith.constant 0 : index
    %c0_49 = arith.constant 0 : index
    %41 = vector.load %arg1[%c0_46, %c2_47, %c0_48, %c0_49] : memref<2x4x7x28xf32, #tpu.memory_space<vmem>>, vector<1x1x6x28xf32>
    %42 = vector.shape_cast %41 : vector<1x1x6x28xf32> to vector<6x28xf32>
    %c1_50 = arith.constant 1 : index
    %c0_51 = arith.constant 0 : index
    %c0_52 = arith.constant 0 : index
    %43 = vector.load %arg2[%c1_50, %c0_51, %c0_52] : memref<5x28x240xf32, #tpu.memory_space<vmem>>, vector<1x28x240xf32>
    %44 = vector.shape_cast %43 : vector<1x28x240xf32> to vector<28x240xf32>
    %cst_53 = arith.constant dense<0.000000e+00> : vector<6x240xf32>
    %45 = tpu.matmul %42, %44, %cst_53 {dimension_numbers = #tpu.dot_dimension_numbers<[1], [0], [0], [1], [0, 0, 1, 1], [], []>} : vector<6x28xf32>, vector<28x240xf32>, vector<6x240xf32> -> vector<6x240xf32>
    %46 = arith.addf %40, %45 : vector<6x240xf32>
    %c0_54 = arith.constant 0 : index
    %c3_55 = arith.constant 3 : index
    %c0_56 = arith.constant 0 : index
    %c0_57 = arith.constant 0 : index
    %47 = vector.load %arg1[%c0_54, %c3_55, %c0_56, %c0_57] : memref<2x4x7x28xf32, #tpu.memory_space<vmem>>, vector<1x1x6x28xf32>
    %48 = vector.shape_cast %47 : vector<1x1x6x28xf32> to vector<6x28xf32>
    %c2_58 = arith.constant 2 : index
    %c0_59 = arith.constant 0 : index
    %c0_60 = arith.constant 0 : index
    %49 = vector.load %arg2[%c2_58, %c0_59, %c0_60] : memref<5x28x240xf32, #tpu.memory_space<vmem>>, vector<1x28x240xf32>
    %50 = vector.shape_cast %49 : vector<1x28x240xf32> to vector<28x240xf32>
    %cst_61 = arith.constant dense<0.000000e+00> : vector<6x240xf32>
    %51 = tpu.matmul %48, %50, %cst_61 {dimension_numbers = #tpu.dot_dimension_numbers<[1], [0], [0], [1], [0, 0, 1, 1], [], []>} : vector<6x28xf32>, vector<28x240xf32>, vector<6x240xf32> -> vector<6x240xf32>
    %52 = arith.addf %46, %51 : vector<6x240xf32>
    %c0_62 = arith.constant 0 : index
    %c0_63 = arith.constant 0 : index
    %c1_64 = arith.constant 1 : index
    %c0_65 = arith.constant 0 : index
    %53 = vector.load %arg1[%c0_62, %c0_63, %c1_64, %c0_65] : memref<2x4x7x28xf32, #tpu.memory_space<vmem>>, vector<1x1x6x28xf32>
    %54 = vector.shape_cast %53 : vector<1x1x6x28xf32> to vector<6x28xf32>
    %c3_66 = arith.constant 3 : index
    %c0_67 = arith.constant 0 : index
    %c0_68 = arith.constant 0 : index
    %55 = vector.load %arg2[%c3_66, %c0_67, %c0_68] : memref<5x28x240xf32, #tpu.memory_space<vmem>>, vector<1x28x240xf32>
    %56 = vector.shape_cast %55 : vector<1x28x240xf32> to vector<28x240xf32>
    %cst_69 = arith.constant dense<0.000000e+00> : vector<6x240xf32>
    %57 = tpu.matmul %54, %56, %cst_69 {dimension_numbers = #tpu.dot_dimension_numbers<[1], [0], [0], [1], [0, 0, 1, 1], [], []>} : vector<6x28xf32>, vector<28x240xf32>, vector<6x240xf32> -> vector<6x240xf32>
    %58 = arith.addf %52, %57 : vector<6x240xf32>
    %c0_70 = arith.constant 0 : index
    %c1_71 = arith.constant 1 : index
    %c1_72 = arith.constant 1 : index
    %c0_73 = arith.constant 0 : index
    %59 = vector.load %arg1[%c0_70, %c1_71, %c1_72, %c0_73] : memref<2x4x7x28xf32, #tpu.memory_space<vmem>>, vector<1x1x6x28xf32>
    %60 = vector.shape_cast %59 : vector<1x1x6x28xf32> to vector<6x28xf32>
    %c4_74 = arith.constant 4 : index
    %c0_75 = arith.constant 0 : index
    %c0_76 = arith.constant 0 : index
    %61 = vector.load %arg2[%c4_74, %c0_75, %c0_76] : memref<5x28x240xf32, #tpu.memory_space<vmem>>, vector<1x28x240xf32>
    %62 = vector.shape_cast %61 : vector<1x28x240xf32> to vector<28x240xf32>
    %cst_77 = arith.constant dense<0.000000e+00> : vector<6x240xf32>
    %63 = tpu.matmul %60, %62, %cst_77 {dimension_numbers = #tpu.dot_dimension_numbers<[1], [0], [0], [1], [0, 0, 1, 1], [], []>} : vector<6x28xf32>, vector<28x240xf32>, vector<6x240xf32> -> vector<6x240xf32>
    %64 = arith.addf %58, %63 : vector<6x240xf32>
    %c0_78 = arith.constant 0 : index
    %c0_79 = arith.constant 0 : index
    %65 = vector.load %arg3[%c0_78, %c0_79] : memref<1x240xf32, #tpu.memory_space<vmem>>, vector<1x240xf32>
    %66 = vector.broadcast %65 : vector<1x240xf32> to vector<6x240xf32>
    %67 = arith.addf %64, %66 : vector<6x240xf32>
    %cst_80 = arith.constant 0.000000e+00 : f32
    %68 = vector.broadcast %cst_80 : f32 to vector<6x240xf32>
    %c0_81 = arith.constant 0 : index
    %c2_82 = arith.constant 2 : index
    %c0_83 = arith.constant 0 : index
    %c0_84 = arith.constant 0 : index
    %69 = vector.load %arg1[%c0_81, %c2_82, %c0_83, %c0_84] : memref<2x4x7x28xf32, #tpu.memory_space<vmem>>, vector<1x1x6x28xf32>
    %70 = vector.shape_cast %69 : vector<1x1x6x28xf32> to vector<6x28xf32>
    %c0_85 = arith.constant 0 : index
    %c0_86 = arith.constant 0 : index
    %c0_87 = arith.constant 0 : index
    %71 = vector.load %arg2[%c0_85, %c0_86, %c0_87] : memref<5x28x240xf32, #tpu.memory_space<vmem>>, vector<1x28x240xf32>
    %72 = vector.shape_cast %71 : vector<1x28x240xf32> to vector<28x240xf32>
    %cst_88 = arith.constant dense<0.000000e+00> : vector<6x240xf32>
    %73 = tpu.matmul %70, %72, %cst_88 {dimension_numbers = #tpu.dot_dimension_numbers<[1], [0], [0], [1], [0, 0, 1, 1], [], []>} : vector<6x28xf32>, vector<28x240xf32>, vector<6x240xf32> -> vector<6x240xf32>
    %74 = arith.addf %68, %73 : vector<6x240xf32>
    %c0_89 = arith.constant 0 : index
    %c3_90 = arith.constant 3 : index
    %c0_91 = arith.constant 0 : index
    %c0_92 = arith.constant 0 : index
    %75 = vector.load %arg1[%c0_89, %c3_90, %c0_91, %c0_92] : memref<2x4x7x28xf32, #tpu.memory_space<vmem>>, vector<1x1x6x28xf32>
    %76 = vector.shape_cast %75 : vector<1x1x6x28xf32> to vector<6x28xf32>
    %c1_93 = arith.constant 1 : index
    %c0_94 = arith.constant 0 : index
    %c0_95 = arith.constant 0 : index
    %77 = vector.load %arg2[%c1_93, %c0_94, %c0_95] : memref<5x28x240xf32, #tpu.memory_space<vmem>>, vector<1x28x240xf32>
    %78 = vector.shape_cast %77 : vector<1x28x240xf32> to vector<28x240xf32>
    %cst_96 = arith.constant dense<0.000000e+00> : vector<6x240xf32>
    %79 = tpu.matmul %76, %78, %cst_96 {dimension_numbers = #tpu.dot_dimension_numbers<[1], [0], [0], [1], [0, 0, 1, 1], [], []>} : vector<6x28xf32>, vector<28x240xf32>, vector<6x240xf32> -> vector<6x240xf32>
    %80 = arith.addf %74, %79 : vector<6x240xf32>
    %c0_97 = arith.constant 0 : index
    %c0_98 = arith.constant 0 : index
    %c1_99 = arith.constant 1 : index
    %c0_100 = arith.constant 0 : index
    %81 = vector.load %arg1[%c0_97, %c0_98, %c1_99, %c0_100] : memref<2x4x7x28xf32, #tpu.memory_space<vmem>>, vector<1x1x6x28xf32>
    %82 = vector.shape_cast %81 : vector<1x1x6x28xf32> to vector<6x28xf32>
    %c2_101 = arith.constant 2 : index
    %c0_102 = arith.constant 0 : index
    %c0_103 = arith.constant 0 : index
    %83 = vector.load %arg2[%c2_101, %c0_102, %c0_103] : memref<5x28x240xf32, #tpu.memory_space<vmem>>, vector<1x28x240xf32>
    %84 = vector.shape_cast %83 : vector<1x28x240xf32> to vector<28x240xf32>
    %cst_104 = arith.constant dense<0.000000e+00> : vector<6x240xf32>
    %85 = tpu.matmul %82, %84, %cst_104 {dimension_numbers = #tpu.dot_dimension_numbers<[1], [0], [0], [1], [0, 0, 1, 1], [], []>} : vector<6x28xf32>, vector<28x240xf32>, vector<6x240xf32> -> vector<6x240xf32>
    %86 = arith.addf %80, %85 : vector<6x240xf32>
    %c0_105 = arith.constant 0 : index
    %c1_106 = arith.constant 1 : index
    %c1_107 = arith.constant 1 : index
    %c0_108 = arith.constant 0 : index
    %87 = vector.load %arg1[%c0_105, %c1_106, %c1_107, %c0_108] : memref<2x4x7x28xf32, #tpu.memory_space<vmem>>, vector<1x1x6x28xf32>
    %88 = vector.shape_cast %87 : vector<1x1x6x28xf32> to vector<6x28xf32>
    %c3_109 = arith.constant 3 : index
    %c0_110 = arith.constant 0 : index
    %c0_111 = arith.constant 0 : index
    %89 = vector.load %arg2[%c3_109, %c0_110, %c0_111] : memref<5x28x240xf32, #tpu.memory_space<vmem>>, vector<1x28x240xf32>
    %90 = vector.shape_cast %89 : vector<1x28x240xf32> to vector<28x240xf32>
    %cst_112 = arith.constant dense<0.000000e+00> : vector<6x240xf32>
    %91 = tpu.matmul %88, %90, %cst_112 {dimension_numbers = #tpu.dot_dimension_numbers<[1], [0], [0], [1], [0, 0, 1, 1], [], []>} : vector<6x28xf32>, vector<28x240xf32>, vector<6x240xf32> -> vector<6x240xf32>
    %92 = arith.addf %86, %91 : vector<6x240xf32>
    %c0_113 = arith.constant 0 : index
    %c2_114 = arith.constant 2 : index
    %c1_115 = arith.constant 1 : index
    %c0_116 = arith.constant 0 : index
    %93 = vector.load %arg1[%c0_113, %c2_114, %c1_115, %c0_116] : memref<2x4x7x28xf32, #tpu.memory_space<vmem>>, vector<1x1x6x28xf32>
    %94 = vector.shape_cast %93 : vector<1x1x6x28xf32> to vector<6x28xf32>
    %c4_117 = arith.constant 4 : index
    %c0_118 = arith.constant 0 : index
    %c0_119 = arith.constant 0 : index
    %95 = vector.load %arg2[%c4_117, %c0_118, %c0_119] : memref<5x28x240xf32, #tpu.memory_space<vmem>>, vector<1x28x240xf32>
    %96 = vector.shape_cast %95 : vector<1x28x240xf32> to vector<28x240xf32>
    %cst_120 = arith.constant dense<0.000000e+00> : vector<6x240xf32>
    %97 = tpu.matmul %94, %96, %cst_120 {dimension_numbers = #tpu.dot_dimension_numbers<[1], [0], [0], [1], [0, 0, 1, 1], [], []>} : vector<6x28xf32>, vector<28x240xf32>, vector<6x240xf32> -> vector<6x240xf32>
    %98 = arith.addf %92, %97 : vector<6x240xf32>
    %c0_121 = arith.constant 0 : index
    %c0_122 = arith.constant 0 : index
    %99 = vector.load %arg3[%c0_121, %c0_122] : memref<1x240xf32, #tpu.memory_space<vmem>>, vector<1x240xf32>
    %100 = vector.broadcast %99 : vector<1x240xf32> to vector<6x240xf32>
    %101 = arith.addf %98, %100 : vector<6x240xf32>
    %cst_123 = arith.constant 0.000000e+00 : f32
    %102 = vector.broadcast %cst_123 : f32 to vector<6x240xf32>
    %c0_124 = arith.constant 0 : index
    %c3_125 = arith.constant 3 : index
    %c0_126 = arith.constant 0 : index
    %c0_127 = arith.constant 0 : index
    %103 = vector.load %arg1[%c0_124, %c3_125, %c0_126, %c0_127] : memref<2x4x7x28xf32, #tpu.memory_space<vmem>>, vector<1x1x6x28xf32>
    %104 = vector.shape_cast %103 : vector<1x1x6x28xf32> to vector<6x28xf32>
    %c0_128 = arith.constant 0 : index
    %c0_129 = arith.constant 0 : index
    %c0_130 = arith.constant 0 : index
    %105 = vector.load %arg2[%c0_128, %c0_129, %c0_130] : memref<5x28x240xf32, #tpu.memory_space<vmem>>, vector<1x28x240xf32>
    %106 = vector.shape_cast %105 : vector<1x28x240xf32> to vector<28x240xf32>
    %cst_131 = arith.constant dense<0.000000e+00> : vector<6x240xf32>
    %107 = tpu.matmul %104, %106, %cst_131 {dimension_numbers = #tpu.dot_dimension_numbers<[1], [0], [0], [1], [0, 0, 1, 1], [], []>} : vector<6x28xf32>, vector<28x240xf32>, vector<6x240xf32> -> vector<6x240xf32>
    %108 = arith.addf %102, %107 : vector<6x240xf32>
    %c0_132 = arith.constant 0 : index
    %c0_133 = arith.constant 0 : index
    %c1_134 = arith.constant 1 : index
    %c0_135 = arith.constant 0 : index
    %109 = vector.load %arg1[%c0_132, %c0_133, %c1_134, %c0_135] : memref<2x4x7x28xf32, #tpu.memory_space<vmem>>, vector<1x1x6x28xf32>
    %110 = vector.shape_cast %109 : vector<1x1x6x28xf32> to vector<6x28xf32>
    %c1_136 = arith.constant 1 : index
    %c0_137 = arith.constant 0 : index
    %c0_138 = arith.constant 0 : index
    %111 = vector.load %arg2[%c1_136, %c0_137, %c0_138] : memref<5x28x240xf32, #tpu.memory_space<vmem>>, vector<1x28x240xf32>
    %112 = vector.shape_cast %111 : vector<1x28x240xf32> to vector<28x240xf32>
    %cst_139 = arith.constant dense<0.000000e+00> : vector<6x240xf32>
    %113 = tpu.matmul %110, %112, %cst_139 {dimension_numbers = #tpu.dot_dimension_numbers<[1], [0], [0], [1], [0, 0, 1, 1], [], []>} : vector<6x28xf32>, vector<28x240xf32>, vector<6x240xf32> -> vector<6x240xf32>
    %114 = arith.addf %108, %113 : vector<6x240xf32>
    %c0_140 = arith.constant 0 : index
    %c1_141 = arith.constant 1 : index
    %c1_142 = arith.constant 1 : index
    %c0_143 = arith.constant 0 : index
    %115 = vector.load %arg1[%c0_140, %c1_141, %c1_142, %c0_143] : memref<2x4x7x28xf32, #tpu.memory_space<vmem>>, vector<1x1x6x28xf32>
    %116 = vector.shape_cast %115 : vector<1x1x6x28xf32> to vector<6x28xf32>
    %c2_144 = arith.constant 2 : index
    %c0_145 = arith.constant 0 : index
    %c0_146 = arith.constant 0 : index
    %117 = vector.load %arg2[%c2_144, %c0_145, %c0_146] : memref<5x28x240xf32, #tpu.memory_space<vmem>>, vector<1x28x240xf32>
    %118 = vector.shape_cast %117 : vector<1x28x240xf32> to vector<28x240xf32>
    %cst_147 = arith.constant dense<0.000000e+00> : vector<6x240xf32>
    %119 = tpu.matmul %116, %118, %cst_147 {dimension_numbers = #tpu.dot_dimension_numbers<[1], [0], [0], [1], [0, 0, 1, 1], [], []>} : vector<6x28xf32>, vector<28x240xf32>, vector<6x240xf32> -> vector<6x240xf32>
    %120 = arith.addf %114, %119 : vector<6x240xf32>
    %c0_148 = arith.constant 0 : index
    %c2_149 = arith.constant 2 : index
    %c1_150 = arith.constant 1 : index
    %c0_151 = arith.constant 0 : index
    %121 = vector.load %arg1[%c0_148, %c2_149, %c1_150, %c0_151] : memref<2x4x7x28xf32, #tpu.memory_space<vmem>>, vector<1x1x6x28xf32>
    %122 = vector.shape_cast %121 : vector<1x1x6x28xf32> to vector<6x28xf32>
    %c3_152 = arith.constant 3 : index
    %c0_153 = arith.constant 0 : index
    %c0_154 = arith.constant 0 : index
    %123 = vector.load %arg2[%c3_152, %c0_153, %c0_154] : memref<5x28x240xf32, #tpu.memory_space<vmem>>, vector<1x28x240xf32>
    %124 = vector.shape_cast %123 : vector<1x28x240xf32> to vector<28x240xf32>
    %cst_155 = arith.constant dense<0.000000e+00> : vector<6x240xf32>
    %125 = tpu.matmul %122, %124, %cst_155 {dimension_numbers = #tpu.dot_dimension_numbers<[1], [0], [0], [1], [0, 0, 1, 1], [], []>} : vector<6x28xf32>, vector<28x240xf32>, vector<6x240xf32> -> vector<6x240xf32>
    %126 = arith.addf %120, %125 : vector<6x240xf32>
    %c0_156 = arith.constant 0 : index
    %c3_157 = arith.constant 3 : index
    %c1_158 = arith.constant 1 : index
    %c0_159 = arith.constant 0 : index
    %127 = vector.load %arg1[%c0_156, %c3_157, %c1_158, %c0_159] : memref<2x4x7x28xf32, #tpu.memory_space<vmem>>, vector<1x1x6x28xf32>
    %128 = vector.shape_cast %127 : vector<1x1x6x28xf32> to vector<6x28xf32>
    %c4_160 = arith.constant 4 : index
    %c0_161 = arith.constant 0 : index
    %c0_162 = arith.constant 0 : index
    %129 = vector.load %arg2[%c4_160, %c0_161, %c0_162] : memref<5x28x240xf32, #tpu.memory_space<vmem>>, vector<1x28x240xf32>
    %130 = vector.shape_cast %129 : vector<1x28x240xf32> to vector<28x240xf32>
    %cst_163 = arith.constant dense<0.000000e+00> : vector<6x240xf32>
    %131 = tpu.matmul %128, %130, %cst_163 {dimension_numbers = #tpu.dot_dimension_numbers<[1], [0], [0], [1], [0, 0, 1, 1], [], []>} : vector<6x28xf32>, vector<28x240xf32>, vector<6x240xf32> -> vector<6x240xf32>
    %132 = arith.addf %126, %131 : vector<6x240xf32>
    %c0_164 = arith.constant 0 : index
    %c0_165 = arith.constant 0 : index
    %133 = vector.load %arg3[%c0_164, %c0_165] : memref<1x240xf32, #tpu.memory_space<vmem>>, vector<1x240xf32>
    %134 = vector.broadcast %133 : vector<1x240xf32> to vector<6x240xf32>
    %135 = arith.addf %132, %134 : vector<6x240xf32>
    %136 = arith.maximumf %33, %67 : vector<6x240xf32>
    %137 = vector.extract_strided_slice %136 {offsets = [0, 0], sizes = [6, 120], strides = [1, 1]} : vector<6x240xf32> to vector<6x120xf32>
    %138 = vector.extract_strided_slice %136 {offsets = [0, 120], sizes = [6, 120], strides = [1, 1]} : vector<6x240xf32> to vector<6x120xf32>
    %139 = arith.maximumf %137, %138 : vector<6x120xf32>
    %cst_166 = arith.constant 0.000000e+00 : f32
    %140 = vector.broadcast %cst_166 : f32 to vector<6x120xf32>
    %141 = arith.maximumf %139, %140 : vector<6x120xf32>
    %142 = arith.maximumf %101, %135 : vector<6x240xf32>
    %143 = vector.extract_strided_slice %142 {offsets = [0, 0], sizes = [6, 120], strides = [1, 1]} : vector<6x240xf32> to vector<6x120xf32>
    %144 = vector.extract_strided_slice %142 {offsets = [0, 120], sizes = [6, 120], strides = [1, 1]} : vector<6x240xf32> to vector<6x120xf32>
    %145 = arith.maximumf %143, %144 : vector<6x120xf32>
    %cst_167 = arith.constant 0.000000e+00 : f32
    %146 = vector.broadcast %cst_167 : f32 to vector<6x120xf32>
    %147 = arith.maximumf %145, %146 : vector<6x120xf32>
    %cst_168 = arith.constant 0.000000e+00 : f32
    %148 = vector.broadcast %cst_168 : f32 to vector<4x160xf32>
    %cst_169 = arith.constant 0.000000e+00 : f32
    %149 = vector.broadcast %cst_169 : f32 to vector<4x160xf32>
    %c0_170 = arith.constant 0 : index
    %c0_171 = arith.constant 0 : index
    %c0_172 = arith.constant 0 : index
    %150 = vector.load %arg4[%c0_170, %c0_171, %c0_172] : memref<5x120x160xf32, #tpu.memory_space<vmem>>, vector<1x120x160xf32>
    %151 = vector.shape_cast %150 : vector<1x120x160xf32> to vector<120x160xf32>
    %152 = vector.extract_strided_slice %141 {offsets = [0, 0], sizes = [4, 120], strides = [1, 1]} : vector<6x120xf32> to vector<4x120xf32>
    %cst_173 = arith.constant dense<0.000000e+00> : vector<4x160xf32>
    %153 = tpu.matmul %152, %151, %cst_173 {dimension_numbers = #tpu.dot_dimension_numbers<[1], [0], [0], [1], [0, 0, 1, 1], [], []>} : vector<4x120xf32>, vector<120x160xf32>, vector<4x160xf32> -> vector<4x160xf32>
    %154 = arith.addf %148, %153 : vector<4x160xf32>
    %155 = vector.extract_strided_slice %147 {offsets = [0, 0], sizes = [4, 120], strides = [1, 1]} : vector<6x120xf32> to vector<4x120xf32>
    %cst_174 = arith.constant dense<0.000000e+00> : vector<4x160xf32>
    %156 = tpu.matmul %155, %151, %cst_174 {dimension_numbers = #tpu.dot_dimension_numbers<[1], [0], [0], [1], [0, 0, 1, 1], [], []>} : vector<4x120xf32>, vector<120x160xf32>, vector<4x160xf32> -> vector<4x160xf32>
    %157 = arith.addf %149, %156 : vector<4x160xf32>
    %c1_175 = arith.constant 1 : index
    %c0_176 = arith.constant 0 : index
    %c0_177 = arith.constant 0 : index
    %158 = vector.load %arg4[%c1_175, %c0_176, %c0_177] : memref<5x120x160xf32, #tpu.memory_space<vmem>>, vector<1x120x160xf32>
    %159 = vector.shape_cast %158 : vector<1x120x160xf32> to vector<120x160xf32>
    %160 = vector.extract_strided_slice %147 {offsets = [0, 0], sizes = [4, 120], strides = [1, 1]} : vector<6x120xf32> to vector<4x120xf32>
    %cst_178 = arith.constant dense<0.000000e+00> : vector<4x160xf32>
    %161 = tpu.matmul %160, %159, %cst_178 {dimension_numbers = #tpu.dot_dimension_numbers<[1], [0], [0], [1], [0, 0, 1, 1], [], []>} : vector<4x120xf32>, vector<120x160xf32>, vector<4x160xf32> -> vector<4x160xf32>
    %162 = arith.addf %154, %161 : vector<4x160xf32>
    %163 = vector.extract_strided_slice %141 {offsets = [1, 0], sizes = [4, 120], strides = [1, 1]} : vector<6x120xf32> to vector<4x120xf32>
    %cst_179 = arith.constant dense<0.000000e+00> : vector<4x160xf32>
    %164 = tpu.matmul %163, %159, %cst_179 {dimension_numbers = #tpu.dot_dimension_numbers<[1], [0], [0], [1], [0, 0, 1, 1], [], []>} : vector<4x120xf32>, vector<120x160xf32>, vector<4x160xf32> -> vector<4x160xf32>
    %165 = arith.addf %157, %164 : vector<4x160xf32>
    %c2_180 = arith.constant 2 : index
    %c0_181 = arith.constant 0 : index
    %c0_182 = arith.constant 0 : index
    %166 = vector.load %arg4[%c2_180, %c0_181, %c0_182] : memref<5x120x160xf32, #tpu.memory_space<vmem>>, vector<1x120x160xf32>
    %167 = vector.shape_cast %166 : vector<1x120x160xf32> to vector<120x160xf32>
    %168 = vector.extract_strided_slice %141 {offsets = [1, 0], sizes = [4, 120], strides = [1, 1]} : vector<6x120xf32> to vector<4x120xf32>
    %cst_183 = arith.constant dense<0.000000e+00> : vector<4x160xf32>
    %169 = tpu.matmul %168, %167, %cst_183 {dimension_numbers = #tpu.dot_dimension_numbers<[1], [0], [0], [1], [0, 0, 1, 1], [], []>} : vector<4x120xf32>, vector<120x160xf32>, vector<4x160xf32> -> vector<4x160xf32>
    %170 = arith.addf %162, %169 : vector<4x160xf32>
    %171 = vector.extract_strided_slice %147 {offsets = [1, 0], sizes = [4, 120], strides = [1, 1]} : vector<6x120xf32> to vector<4x120xf32>
    %cst_184 = arith.constant dense<0.000000e+00> : vector<4x160xf32>
    %172 = tpu.matmul %171, %167, %cst_184 {dimension_numbers = #tpu.dot_dimension_numbers<[1], [0], [0], [1], [0, 0, 1, 1], [], []>} : vector<4x120xf32>, vector<120x160xf32>, vector<4x160xf32> -> vector<4x160xf32>
    %173 = arith.addf %165, %172 : vector<4x160xf32>
    %c3_185 = arith.constant 3 : index
    %c0_186 = arith.constant 0 : index
    %c0_187 = arith.constant 0 : index
    %174 = vector.load %arg4[%c3_185, %c0_186, %c0_187] : memref<5x120x160xf32, #tpu.memory_space<vmem>>, vector<1x120x160xf32>
    %175 = vector.shape_cast %174 : vector<1x120x160xf32> to vector<120x160xf32>
    %176 = vector.extract_strided_slice %147 {offsets = [1, 0], sizes = [4, 120], strides = [1, 1]} : vector<6x120xf32> to vector<4x120xf32>
    %cst_188 = arith.constant dense<0.000000e+00> : vector<4x160xf32>
    %177 = tpu.matmul %176, %175, %cst_188 {dimension_numbers = #tpu.dot_dimension_numbers<[1], [0], [0], [1], [0, 0, 1, 1], [], []>} : vector<4x120xf32>, vector<120x160xf32>, vector<4x160xf32> -> vector<4x160xf32>
    %178 = arith.addf %170, %177 : vector<4x160xf32>
    %179 = vector.extract_strided_slice %141 {offsets = [2, 0], sizes = [4, 120], strides = [1, 1]} : vector<6x120xf32> to vector<4x120xf32>
    %cst_189 = arith.constant dense<0.000000e+00> : vector<4x160xf32>
    %180 = tpu.matmul %179, %175, %cst_189 {dimension_numbers = #tpu.dot_dimension_numbers<[1], [0], [0], [1], [0, 0, 1, 1], [], []>} : vector<4x120xf32>, vector<120x160xf32>, vector<4x160xf32> -> vector<4x160xf32>
    %181 = arith.addf %173, %180 : vector<4x160xf32>
    %c4_190 = arith.constant 4 : index
    %c0_191 = arith.constant 0 : index
    %c0_192 = arith.constant 0 : index
    %182 = vector.load %arg4[%c4_190, %c0_191, %c0_192] : memref<5x120x160xf32, #tpu.memory_space<vmem>>, vector<1x120x160xf32>
    %183 = vector.shape_cast %182 : vector<1x120x160xf32> to vector<120x160xf32>
    %184 = vector.extract_strided_slice %141 {offsets = [2, 0], sizes = [4, 120], strides = [1, 1]} : vector<6x120xf32> to vector<4x120xf32>
    %cst_193 = arith.constant dense<0.000000e+00> : vector<4x160xf32>
    %185 = tpu.matmul %184, %183, %cst_193 {dimension_numbers = #tpu.dot_dimension_numbers<[1], [0], [0], [1], [0, 0, 1, 1], [], []>} : vector<4x120xf32>, vector<120x160xf32>, vector<4x160xf32> -> vector<4x160xf32>
    %186 = arith.addf %178, %185 : vector<4x160xf32>
    %187 = vector.extract_strided_slice %147 {offsets = [2, 0], sizes = [4, 120], strides = [1, 1]} : vector<6x120xf32> to vector<4x120xf32>
    %cst_194 = arith.constant dense<0.000000e+00> : vector<4x160xf32>
    %188 = tpu.matmul %187, %183, %cst_194 {dimension_numbers = #tpu.dot_dimension_numbers<[1], [0], [0], [1], [0, 0, 1, 1], [], []>} : vector<4x120xf32>, vector<120x160xf32>, vector<4x160xf32> -> vector<4x160xf32>
    %189 = arith.addf %181, %188 : vector<4x160xf32>
    %c0_195 = arith.constant 0 : index
    %c0_196 = arith.constant 0 : index
    %190 = vector.load %arg5[%c0_195, %c0_196] : memref<1x160xf32, #tpu.memory_space<vmem>>, vector<1x160xf32>
    %191 = vector.broadcast %190 : vector<1x160xf32> to vector<4x160xf32>
    %192 = arith.addf %186, %191 : vector<4x160xf32>
    %c0_197 = arith.constant 0 : index
    %c0_198 = arith.constant 0 : index
    %193 = vector.load %arg5[%c0_197, %c0_198] : memref<1x160xf32, #tpu.memory_space<vmem>>, vector<1x160xf32>
    %194 = vector.broadcast %193 : vector<1x160xf32> to vector<4x160xf32>
    %195 = arith.addf %189, %194 : vector<4x160xf32>
    %196 = arith.maximumf %192, %195 : vector<4x160xf32>
    %197 = vector.extract_strided_slice %196 {offsets = [0, 0], sizes = [4, 80], strides = [1, 1]} : vector<4x160xf32> to vector<4x80xf32>
    %198 = vector.extract_strided_slice %196 {offsets = [0, 80], sizes = [4, 80], strides = [1, 1]} : vector<4x160xf32> to vector<4x80xf32>
    %199 = arith.maximumf %197, %198 : vector<4x80xf32>
    %cst_199 = arith.constant 0.000000e+00 : f32
    %200 = vector.broadcast %cst_199 : f32 to vector<4x80xf32>
    %201 = arith.maximumf %199, %200 : vector<4x80xf32>
    %c0_200 = arith.constant 0 : index
    %c0_201 = arith.constant 0 : index
    %202 = vector.load %arg7[%c0_200, %c0_201] : memref<1x50xf32, #tpu.memory_space<vmem>>, vector<1x50xf32>
    %203 = vector.extract_strided_slice %201 {offsets = [0, 0], sizes = [1, 80], strides = [1, 1]} : vector<4x80xf32> to vector<1x80xf32>
    %c0_202 = arith.constant 0 : index
    %c0_203 = arith.constant 0 : index
    %204 = vector.load %arg6[%c0_202, %c0_203] : memref<320x50xf32, #tpu.memory_space<vmem>>, vector<80x50xf32>
    %cst_204 = arith.constant dense<0.000000e+00> : vector<1x50xf32>
    %205 = tpu.matmul %203, %204, %cst_204 {dimension_numbers = #tpu.dot_dimension_numbers<[1], [0], [0], [1], [0, 0, 1, 1], [], []>} : vector<1x80xf32>, vector<80x50xf32>, vector<1x50xf32> -> vector<1x50xf32>
    %206 = arith.addf %202, %205 : vector<1x50xf32>
    %207 = vector.extract_strided_slice %201 {offsets = [1, 0], sizes = [1, 80], strides = [1, 1]} : vector<4x80xf32> to vector<1x80xf32>
    %c80 = arith.constant 80 : index
    %c0_205 = arith.constant 0 : index
    %208 = vector.load %arg6[%c80, %c0_205] : memref<320x50xf32, #tpu.memory_space<vmem>>, vector<80x50xf32>
    %cst_206 = arith.constant dense<0.000000e+00> : vector<1x50xf32>
    %209 = tpu.matmul %207, %208, %cst_206 {dimension_numbers = #tpu.dot_dimension_numbers<[1], [0], [0], [1], [0, 0, 1, 1], [], []>} : vector<1x80xf32>, vector<80x50xf32>, vector<1x50xf32> -> vector<1x50xf32>
    %210 = arith.addf %206, %209 : vector<1x50xf32>
    %211 = vector.extract_strided_slice %201 {offsets = [2, 0], sizes = [1, 80], strides = [1, 1]} : vector<4x80xf32> to vector<1x80xf32>
    %c160 = arith.constant 160 : index
    %c0_207 = arith.constant 0 : index
    %212 = vector.load %arg6[%c160, %c0_207] : memref<320x50xf32, #tpu.memory_space<vmem>>, vector<80x50xf32>
    %cst_208 = arith.constant dense<0.000000e+00> : vector<1x50xf32>
    %213 = tpu.matmul %211, %212, %cst_208 {dimension_numbers = #tpu.dot_dimension_numbers<[1], [0], [0], [1], [0, 0, 1, 1], [], []>} : vector<1x80xf32>, vector<80x50xf32>, vector<1x50xf32> -> vector<1x50xf32>
    %214 = arith.addf %210, %213 : vector<1x50xf32>
    %215 = vector.extract_strided_slice %201 {offsets = [3, 0], sizes = [1, 80], strides = [1, 1]} : vector<4x80xf32> to vector<1x80xf32>
    %c240 = arith.constant 240 : index
    %c0_209 = arith.constant 0 : index
    %216 = vector.load %arg6[%c240, %c0_209] : memref<320x50xf32, #tpu.memory_space<vmem>>, vector<80x50xf32>
    %cst_210 = arith.constant dense<0.000000e+00> : vector<1x50xf32>
    %217 = tpu.matmul %215, %216, %cst_210 {dimension_numbers = #tpu.dot_dimension_numbers<[1], [0], [0], [1], [0, 0, 1, 1], [], []>} : vector<1x80xf32>, vector<80x50xf32>, vector<1x50xf32> -> vector<1x50xf32>
    %218 = arith.addf %214, %217 : vector<1x50xf32>
    %cst_211 = arith.constant 0.000000e+00 : f32
    %219 = vector.broadcast %cst_211 : f32 to vector<1x50xf32>
    %220 = arith.maximumf %218, %219 : vector<1x50xf32>
    %c0_212 = arith.constant 0 : index
    %c0_213 = arith.constant 0 : index
    %221 = vector.load %arg8[%c0_212, %c0_213] : memref<50x10xf32, #tpu.memory_space<vmem>>, vector<50x10xf32>
    %cst_214 = arith.constant dense<0.000000e+00> : vector<1x10xf32>
    %222 = tpu.matmul %220, %221, %cst_214 {dimension_numbers = #tpu.dot_dimension_numbers<[1], [0], [0], [1], [0, 0, 1, 1], [], []>} : vector<1x50xf32>, vector<50x10xf32>, vector<1x10xf32> -> vector<1x10xf32>
    %c0_215 = arith.constant 0 : index
    %c0_216 = arith.constant 0 : index
    %223 = vector.load %arg9[%c0_215, %c0_216] : memref<1x10xf32, #tpu.memory_space<vmem>>, vector<1x10xf32>
    %224 = arith.addf %222, %223 : vector<1x10xf32>
    %c0_217 = arith.constant 0 : index
    %c0_218 = arith.constant 0 : index
    %225 = vector.load %arg10[%c0_217, %c0_218] : memref<2x10xf32, #tpu.memory_space<vmem>>, vector<1x10xf32>
    tpu.vector_store %arg10[%c0_217, %c0_218], %224 {strides = array<i32>} : memref<2x10xf32, #tpu.memory_space<vmem>>, vector<1x10xf32>,
    %cst_219 = arith.constant 0.000000e+00 : f32
    %226 = vector.broadcast %cst_219 : f32 to vector<6x240xf32>
    %c1_220 = arith.constant 1 : index
    %c0_221 = arith.constant 0 : index
    %c0_222 = arith.constant 0 : index
    %c0_223 = arith.constant 0 : index
    %227 = vector.load %arg1[%c1_220, %c0_221, %c0_222, %c0_223] : memref<2x4x7x28xf32, #tpu.memory_space<vmem>>, vector<1x1x6x28xf32>
    %228 = vector.shape_cast %227 : vector<1x1x6x28xf32> to vector<6x28xf32>
    %c0_224 = arith.constant 0 : index
    %c0_225 = arith.constant 0 : index
    %c0_226 = arith.constant 0 : index
    %229 = vector.load %arg2[%c0_224, %c0_225, %c0_226] : memref<5x28x240xf32, #tpu.memory_space<vmem>>, vector<1x28x240xf32>
    %230 = vector.shape_cast %229 : vector<1x28x240xf32> to vector<28x240xf32>
    %cst_227 = arith.constant dense<0.000000e+00> : vector<6x240xf32>
    %231 = tpu.matmul %228, %230, %cst_227 {dimension_numbers = #tpu.dot_dimension_numbers<[1], [0], [0], [1], [0, 0, 1, 1], [], []>} : vector<6x28xf32>, vector<28x240xf32>, vector<6x240xf32> -> vector<6x240xf32>
    %232 = arith.addf %226, %231 : vector<6x240xf32>
    %c1_228 = arith.constant 1 : index
    %c1_229 = arith.constant 1 : index
    %c0_230 = arith.constant 0 : index
    %c0_231 = arith.constant 0 : index
    %233 = vector.load %arg1[%c1_228, %c1_229, %c0_230, %c0_231] : memref<2x4x7x28xf32, #tpu.memory_space<vmem>>, vector<1x1x6x28xf32>
    %234 = vector.shape_cast %233 : vector<1x1x6x28xf32> to vector<6x28xf32>
    %c1_232 = arith.constant 1 : index
    %c0_233 = arith.constant 0 : index
    %c0_234 = arith.constant 0 : index
    %235 = vector.load %arg2[%c1_232, %c0_233, %c0_234] : memref<5x28x240xf32, #tpu.memory_space<vmem>>, vector<1x28x240xf32>
    %236 = vector.shape_cast %235 : vector<1x28x240xf32> to vector<28x240xf32>
    %cst_235 = arith.constant dense<0.000000e+00> : vector<6x240xf32>
    %237 = tpu.matmul %234, %236, %cst_235 {dimension_numbers = #tpu.dot_dimension_numbers<[1], [0], [0], [1], [0, 0, 1, 1], [], []>} : vector<6x28xf32>, vector<28x240xf32>, vector<6x240xf32> -> vector<6x240xf32>
    %238 = arith.addf %232, %237 : vector<6x240xf32>
    %c1_236 = arith.constant 1 : index
    %c2_237 = arith.constant 2 : index
    %c0_238 = arith.constant 0 : index
    %c0_239 = arith.constant 0 : index
    %239 = vector.load %arg1[%c1_236, %c2_237, %c0_238, %c0_239] : memref<2x4x7x28xf32, #tpu.memory_space<vmem>>, vector<1x1x6x28xf32>
    %240 = vector.shape_cast %239 : vector<1x1x6x28xf32> to vector<6x28xf32>
    %c2_240 = arith.constant 2 : index
    %c0_241 = arith.constant 0 : index
    %c0_242 = arith.constant 0 : index
    %241 = vector.load %arg2[%c2_240, %c0_241, %c0_242] : memref<5x28x240xf32, #tpu.memory_space<vmem>>, vector<1x28x240xf32>
    %242 = vector.shape_cast %241 : vector<1x28x240xf32> to vector<28x240xf32>
    %cst_243 = arith.constant dense<0.000000e+00> : vector<6x240xf32>
    %243 = tpu.matmul %240, %242, %cst_243 {dimension_numbers = #tpu.dot_dimension_numbers<[1], [0], [0], [1], [0, 0, 1, 1], [], []>} : vector<6x28xf32>, vector<28x240xf32>, vector<6x240xf32> -> vector<6x240xf32>
    %244 = arith.addf %238, %243 : vector<6x240xf32>
    %c1_244 = arith.constant 1 : index
    %c3_245 = arith.constant 3 : index
    %c0_246 = arith.constant 0 : index
    %c0_247 = arith.constant 0 : index
    %245 = vector.load %arg1[%c1_244, %c3_245, %c0_246, %c0_247] : memref<2x4x7x28xf32, #tpu.memory_space<vmem>>, vector<1x1x6x28xf32>
    %246 = vector.shape_cast %245 : vector<1x1x6x28xf32> to vector<6x28xf32>
    %c3_248 = arith.constant 3 : index
    %c0_249 = arith.constant 0 : index
    %c0_250 = arith.constant 0 : index
    %247 = vector.load %arg2[%c3_248, %c0_249, %c0_250] : memref<5x28x240xf32, #tpu.memory_space<vmem>>, vector<1x28x240xf32>
    %248 = vector.shape_cast %247 : vector<1x28x240xf32> to vector<28x240xf32>
    %cst_251 = arith.constant dense<0.000000e+00> : vector<6x240xf32>
    %249 = tpu.matmul %246, %248, %cst_251 {dimension_numbers = #tpu.dot_dimension_numbers<[1], [0], [0], [1], [0, 0, 1, 1], [], []>} : vector<6x28xf32>, vector<28x240xf32>, vector<6x240xf32> -> vector<6x240xf32>
    %250 = arith.addf %244, %249 : vector<6x240xf32>
    %c1_252 = arith.constant 1 : index
    %c0_253 = arith.constant 0 : index
    %c1_254 = arith.constant 1 : index
    %c0_255 = arith.constant 0 : index
    %251 = vector.load %arg1[%c1_252, %c0_253, %c1_254, %c0_255] : memref<2x4x7x28xf32, #tpu.memory_space<vmem>>, vector<1x1x6x28xf32>
    %252 = vector.shape_cast %251 : vector<1x1x6x28xf32> to vector<6x28xf32>
    %c4_256 = arith.constant 4 : index
    %c0_257 = arith.constant 0 : index
    %c0_258 = arith.constant 0 : index
    %253 = vector.load %arg2[%c4_256, %c0_257, %c0_258] : memref<5x28x240xf32, #tpu.memory_space<vmem>>, vector<1x28x240xf32>
    %254 = vector.shape_cast %253 : vector<1x28x240xf32> to vector<28x240xf32>
    %cst_259 = arith.constant dense<0.000000e+00> : vector<6x240xf32>
    %255 = tpu.matmul %252, %254, %cst_259 {dimension_numbers = #tpu.dot_dimension_numbers<[1], [0], [0], [1], [0, 0, 1, 1], [], []>} : vector<6x28xf32>, vector<28x240xf32>, vector<6x240xf32> -> vector<6x240xf32>
    %256 = arith.addf %250, %255 : vector<6x240xf32>
    %c0_260 = arith.constant 0 : index
    %c0_261 = arith.constant 0 : index
    %257 = vector.load %arg3[%c0_260, %c0_261] : memref<1x240xf32, #tpu.memory_space<vmem>>, vector<1x240xf32>
    %258 = vector.broadcast %257 : vector<1x240xf32> to vector<6x240xf32>
    %259 = arith.addf %256, %258 : vector<6x240xf32>
    %cst_262 = arith.constant 0.000000e+00 : f32
    %260 = vector.broadcast %cst_262 : f32 to vector<6x240xf32>
    %c1_263 = arith.constant 1 : index
    %c1_264 = arith.constant 1 : index
    %c0_265 = arith.constant 0 : index
    %c0_266 = arith.constant 0 : index
    %261 = vector.load %arg1[%c1_263, %c1_264, %c0_265, %c0_266] : memref<2x4x7x28xf32, #tpu.memory_space<vmem>>, vector<1x1x6x28xf32>
    %262 = vector.shape_cast %261 : vector<1x1x6x28xf32> to vector<6x28xf32>
    %c0_267 = arith.constant 0 : index
    %c0_268 = arith.constant 0 : index
    %c0_269 = arith.constant 0 : index
    %263 = vector.load %arg2[%c0_267, %c0_268, %c0_269] : memref<5x28x240xf32, #tpu.memory_space<vmem>>, vector<1x28x240xf32>
    %264 = vector.shape_cast %263 : vector<1x28x240xf32> to vector<28x240xf32>
    %cst_270 = arith.constant dense<0.000000e+00> : vector<6x240xf32>
    %265 = tpu.matmul %262, %264, %cst_270 {dimension_numbers = #tpu.dot_dimension_numbers<[1], [0], [0], [1], [0, 0, 1, 1], [], []>} : vector<6x28xf32>, vector<28x240xf32>, vector<6x240xf32> -> vector<6x240xf32>
    %266 = arith.addf %260, %265 : vector<6x240xf32>
    %c1_271 = arith.constant 1 : index
    %c2_272 = arith.constant 2 : index
    %c0_273 = arith.constant 0 : index
    %c0_274 = arith.constant 0 : index
    %267 = vector.load %arg1[%c1_271, %c2_272, %c0_273, %c0_274] : memref<2x4x7x28xf32, #tpu.memory_space<vmem>>, vector<1x1x6x28xf32>
    %268 = vector.shape_cast %267 : vector<1x1x6x28xf32> to vector<6x28xf32>
    %c1_275 = arith.constant 1 : index
    %c0_276 = arith.constant 0 : index
    %c0_277 = arith.constant 0 : index
    %269 = vector.load %arg2[%c1_275, %c0_276, %c0_277] : memref<5x28x240xf32, #tpu.memory_space<vmem>>, vector<1x28x240xf32>
    %270 = vector.shape_cast %269 : vector<1x28x240xf32> to vector<28x240xf32>
    %cst_278 = arith.constant dense<0.000000e+00> : vector<6x240xf32>
    %271 = tpu.matmul %268, %270, %cst_278 {dimension_numbers = #tpu.dot_dimension_numbers<[1], [0], [0], [1], [0, 0, 1, 1], [], []>} : vector<6x28xf32>, vector<28x240xf32>, vector<6x240xf32> -> vector<6x240xf32>
    %272 = arith.addf %266, %271 : vector<6x240xf32>
    %c1_279 = arith.constant 1 : index
    %c3_280 = arith.constant 3 : index
    %c0_281 = arith.constant 0 : index
    %c0_282 = arith.constant 0 : index
    %273 = vector.load %arg1[%c1_279, %c3_280, %c0_281, %c0_282] : memref<2x4x7x28xf32, #tpu.memory_space<vmem>>, vector<1x1x6x28xf32>
    %274 = vector.shape_cast %273 : vector<1x1x6x28xf32> to vector<6x28xf32>
    %c2_283 = arith.constant 2 : index
    %c0_284 = arith.constant 0 : index
    %c0_285 = arith.constant 0 : index
    %275 = vector.load %arg2[%c2_283, %c0_284, %c0_285] : memref<5x28x240xf32, #tpu.memory_space<vmem>>, vector<1x28x240xf32>
    %276 = vector.shape_cast %275 : vector<1x28x240xf32> to vector<28x240xf32>
    %cst_286 = arith.constant dense<0.000000e+00> : vector<6x240xf32>
    %277 = tpu.matmul %274, %276, %cst_286 {dimension_numbers = #tpu.dot_dimension_numbers<[1], [0], [0], [1], [0, 0, 1, 1], [], []>} : vector<6x28xf32>, vector<28x240xf32>, vector<6x240xf32> -> vector<6x240xf32>
    %278 = arith.addf %272, %277 : vector<6x240xf32>
    %c1_287 = arith.constant 1 : index
    %c0_288 = arith.constant 0 : index
    %c1_289 = arith.constant 1 : index
    %c0_290 = arith.constant 0 : index
    %279 = vector.load %arg1[%c1_287, %c0_288, %c1_289, %c0_290] : memref<2x4x7x28xf32, #tpu.memory_space<vmem>>, vector<1x1x6x28xf32>
    %280 = vector.shape_cast %279 : vector<1x1x6x28xf32> to vector<6x28xf32>
    %c3_291 = arith.constant 3 : index
    %c0_292 = arith.constant 0 : index
    %c0_293 = arith.constant 0 : index
    %281 = vector.load %arg2[%c3_291, %c0_292, %c0_293] : memref<5x28x240xf32, #tpu.memory_space<vmem>>, vector<1x28x240xf32>
    %282 = vector.shape_cast %281 : vector<1x28x240xf32> to vector<28x240xf32>
    %cst_294 = arith.constant dense<0.000000e+00> : vector<6x240xf32>
    %283 = tpu.matmul %280, %282, %cst_294 {dimension_numbers = #tpu.dot_dimension_numbers<[1], [0], [0], [1], [0, 0, 1, 1], [], []>} : vector<6x28xf32>, vector<28x240xf32>, vector<6x240xf32> -> vector<6x240xf32>
    %284 = arith.addf %278, %283 : vector<6x240xf32>
    %c1_295 = arith.constant 1 : index
    %c1_296 = arith.constant 1 : index
    %c1_297 = arith.constant 1 : index
    %c0_298 = arith.constant 0 : index
    %285 = vector.load %arg1[%c1_295, %c1_296, %c1_297, %c0_298] : memref<2x4x7x28xf32, #tpu.memory_space<vmem>>, vector<1x1x6x28xf32>
    %286 = vector.shape_cast %285 : vector<1x1x6x28xf32> to vector<6x28xf32>
    %c4_299 = arith.constant 4 : index
    %c0_300 = arith.constant 0 : index
    %c0_301 = arith.constant 0 : index
    %287 = vector.load %arg2[%c4_299, %c0_300, %c0_301] : memref<5x28x240xf32, #tpu.memory_space<vmem>>, vector<1x28x240xf32>
    %288 = vector.shape_cast %287 : vector<1x28x240xf32> to vector<28x240xf32>
    %cst_302 = arith.constant dense<0.000000e+00> : vector<6x240xf32>
    %289 = tpu.matmul %286, %288, %cst_302 {dimension_numbers = #tpu.dot_dimension_numbers<[1], [0], [0], [1], [0, 0, 1, 1], [], []>} : vector<6x28xf32>, vector<28x240xf32>, vector<6x240xf32> -> vector<6x240xf32>
    %290 = arith.addf %284, %289 : vector<6x240xf32>
    %c0_303 = arith.constant 0 : index
    %c0_304 = arith.constant 0 : index
    %291 = vector.load %arg3[%c0_303, %c0_304] : memref<1x240xf32, #tpu.memory_space<vmem>>, vector<1x240xf32>
    %292 = vector.broadcast %291 : vector<1x240xf32> to vector<6x240xf32>
    %293 = arith.addf %290, %292 : vector<6x240xf32>
    %cst_305 = arith.constant 0.000000e+00 : f32
    %294 = vector.broadcast %cst_305 : f32 to vector<6x240xf32>
    %c1_306 = arith.constant 1 : index
    %c2_307 = arith.constant 2 : index
    %c0_308 = arith.constant 0 : index
    %c0_309 = arith.constant 0 : index
    %295 = vector.load %arg1[%c1_306, %c2_307, %c0_308, %c0_309] : memref<2x4x7x28xf32, #tpu.memory_space<vmem>>, vector<1x1x6x28xf32>
    %296 = vector.shape_cast %295 : vector<1x1x6x28xf32> to vector<6x28xf32>
    %c0_310 = arith.constant 0 : index
    %c0_311 = arith.constant 0 : index
    %c0_312 = arith.constant 0 : index
    %297 = vector.load %arg2[%c0_310, %c0_311, %c0_312] : memref<5x28x240xf32, #tpu.memory_space<vmem>>, vector<1x28x240xf32>
    %298 = vector.shape_cast %297 : vector<1x28x240xf32> to vector<28x240xf32>
    %cst_313 = arith.constant dense<0.000000e+00> : vector<6x240xf32>
    %299 = tpu.matmul %296, %298, %cst_313 {dimension_numbers = #tpu.dot_dimension_numbers<[1], [0], [0], [1], [0, 0, 1, 1], [], []>} : vector<6x28xf32>, vector<28x240xf32>, vector<6x240xf32> -> vector<6x240xf32>
    %300 = arith.addf %294, %299 : vector<6x240xf32>
    %c1_314 = arith.constant 1 : index
    %c3_315 = arith.constant 3 : index
    %c0_316 = arith.constant 0 : index
    %c0_317 = arith.constant 0 : index
    %301 = vector.load %arg1[%c1_314, %c3_315, %c0_316, %c0_317] : memref<2x4x7x28xf32, #tpu.memory_space<vmem>>, vector<1x1x6x28xf32>
    %302 = vector.shape_cast %301 : vector<1x1x6x28xf32> to vector<6x28xf32>
    %c1_318 = arith.constant 1 : index
    %c0_319 = arith.constant 0 : index
    %c0_320 = arith.constant 0 : index
    %303 = vector.load %arg2[%c1_318, %c0_319, %c0_320] : memref<5x28x240xf32, #tpu.memory_space<vmem>>, vector<1x28x240xf32>
    %304 = vector.shape_cast %303 : vector<1x28x240xf32> to vector<28x240xf32>
    %cst_321 = arith.constant dense<0.000000e+00> : vector<6x240xf32>
    %305 = tpu.matmul %302, %304, %cst_321 {dimension_numbers = #tpu.dot_dimension_numbers<[1], [0], [0], [1], [0, 0, 1, 1], [], []>} : vector<6x28xf32>, vector<28x240xf32>, vector<6x240xf32> -> vector<6x240xf32>
    %306 = arith.addf %300, %305 : vector<6x240xf32>
    %c1_322 = arith.constant 1 : index
    %c0_323 = arith.constant 0 : index
    %c1_324 = arith.constant 1 : index
    %c0_325 = arith.constant 0 : index
    %307 = vector.load %arg1[%c1_322, %c0_323, %c1_324, %c0_325] : memref<2x4x7x28xf32, #tpu.memory_space<vmem>>, vector<1x1x6x28xf32>
    %308 = vector.shape_cast %307 : vector<1x1x6x28xf32> to vector<6x28xf32>
    %c2_326 = arith.constant 2 : index
    %c0_327 = arith.constant 0 : index
    %c0_328 = arith.constant 0 : index
    %309 = vector.load %arg2[%c2_326, %c0_327, %c0_328] : memref<5x28x240xf32, #tpu.memory_space<vmem>>, vector<1x28x240xf32>
    %310 = vector.shape_cast %309 : vector<1x28x240xf32> to vector<28x240xf32>
    %cst_329 = arith.constant dense<0.000000e+00> : vector<6x240xf32>
    %311 = tpu.matmul %308, %310, %cst_329 {dimension_numbers = #tpu.dot_dimension_numbers<[1], [0], [0], [1], [0, 0, 1, 1], [], []>} : vector<6x28xf32>, vector<28x240xf32>, vector<6x240xf32> -> vector<6x240xf32>
    %312 = arith.addf %306, %311 : vector<6x240xf32>
    %c1_330 = arith.constant 1 : index
    %c1_331 = arith.constant 1 : index
    %c1_332 = arith.constant 1 : index
    %c0_333 = arith.constant 0 : index
    %313 = vector.load %arg1[%c1_330, %c1_331, %c1_332, %c0_333] : memref<2x4x7x28xf32, #tpu.memory_space<vmem>>, vector<1x1x6x28xf32>
    %314 = vector.shape_cast %313 : vector<1x1x6x28xf32> to vector<6x28xf32>
    %c3_334 = arith.constant 3 : index
    %c0_335 = arith.constant 0 : index
    %c0_336 = arith.constant 0 : index
    %315 = vector.load %arg2[%c3_334, %c0_335, %c0_336] : memref<5x28x240xf32, #tpu.memory_space<vmem>>, vector<1x28x240xf32>
    %316 = vector.shape_cast %315 : vector<1x28x240xf32> to vector<28x240xf32>
    %cst_337 = arith.constant dense<0.000000e+00> : vector<6x240xf32>
    %317 = tpu.matmul %314, %316, %cst_337 {dimension_numbers = #tpu.dot_dimension_numbers<[1], [0], [0], [1], [0, 0, 1, 1], [], []>} : vector<6x28xf32>, vector<28x240xf32>, vector<6x240xf32> -> vector<6x240xf32>
    %318 = arith.addf %312, %317 : vector<6x240xf32>
    %c1_338 = arith.constant 1 : index
    %c2_339 = arith.constant 2 : index
    %c1_340 = arith.constant 1 : index
    %c0_341 = arith.constant 0 : index
    %319 = vector.load %arg1[%c1_338, %c2_339, %c1_340, %c0_341] : memref<2x4x7x28xf32, #tpu.memory_space<vmem>>, vector<1x1x6x28xf32>
    %320 = vector.shape_cast %319 : vector<1x1x6x28xf32> to vector<6x28xf32>
    %c4_342 = arith.constant 4 : index
    %c0_343 = arith.constant 0 : index
    %c0_344 = arith.constant 0 : index
    %321 = vector.load %arg2[%c4_342, %c0_343, %c0_344] : memref<5x28x240xf32, #tpu.memory_space<vmem>>, vector<1x28x240xf32>
    %322 = vector.shape_cast %321 : vector<1x28x240xf32> to vector<28x240xf32>
    %cst_345 = arith.constant dense<0.000000e+00> : vector<6x240xf32>
    %323 = tpu.matmul %320, %322, %cst_345 {dimension_numbers = #tpu.dot_dimension_numbers<[1], [0], [0], [1], [0, 0, 1, 1], [], []>} : vector<6x28xf32>, vector<28x240xf32>, vector<6x240xf32> -> vector<6x240xf32>
    %324 = arith.addf %318, %323 : vector<6x240xf32>
    %c0_346 = arith.constant 0 : index
    %c0_347 = arith.constant 0 : index
    %325 = vector.load %arg3[%c0_346, %c0_347] : memref<1x240xf32, #tpu.memory_space<vmem>>, vector<1x240xf32>
    %326 = vector.broadcast %325 : vector<1x240xf32> to vector<6x240xf32>
    %327 = arith.addf %324, %326 : vector<6x240xf32>
    %cst_348 = arith.constant 0.000000e+00 : f32
    %328 = vector.broadcast %cst_348 : f32 to vector<6x240xf32>
    %c1_349 = arith.constant 1 : index
    %c3_350 = arith.constant 3 : index
    %c0_351 = arith.constant 0 : index
    %c0_352 = arith.constant 0 : index
    %329 = vector.load %arg1[%c1_349, %c3_350, %c0_351, %c0_352] : memref<2x4x7x28xf32, #tpu.memory_space<vmem>>, vector<1x1x6x28xf32>
    %330 = vector.shape_cast %329 : vector<1x1x6x28xf32> to vector<6x28xf32>
    %c0_353 = arith.constant 0 : index
    %c0_354 = arith.constant 0 : index
    %c0_355 = arith.constant 0 : index
    %331 = vector.load %arg2[%c0_353, %c0_354, %c0_355] : memref<5x28x240xf32, #tpu.memory_space<vmem>>, vector<1x28x240xf32>
    %332 = vector.shape_cast %331 : vector<1x28x240xf32> to vector<28x240xf32>
    %cst_356 = arith.constant dense<0.000000e+00> : vector<6x240xf32>
    %333 = tpu.matmul %330, %332, %cst_356 {dimension_numbers = #tpu.dot_dimension_numbers<[1], [0], [0], [1], [0, 0, 1, 1], [], []>} : vector<6x28xf32>, vector<28x240xf32>, vector<6x240xf32> -> vector<6x240xf32>
    %334 = arith.addf %328, %333 : vector<6x240xf32>
    %c1_357 = arith.constant 1 : index
    %c0_358 = arith.constant 0 : index
    %c1_359 = arith.constant 1 : index
    %c0_360 = arith.constant 0 : index
    %335 = vector.load %arg1[%c1_357, %c0_358, %c1_359, %c0_360] : memref<2x4x7x28xf32, #tpu.memory_space<vmem>>, vector<1x1x6x28xf32>
    %336 = vector.shape_cast %335 : vector<1x1x6x28xf32> to vector<6x28xf32>
    %c1_361 = arith.constant 1 : index
    %c0_362 = arith.constant 0 : index
    %c0_363 = arith.constant 0 : index
    %337 = vector.load %arg2[%c1_361, %c0_362, %c0_363] : memref<5x28x240xf32, #tpu.memory_space<vmem>>, vector<1x28x240xf32>
    %338 = vector.shape_cast %337 : vector<1x28x240xf32> to vector<28x240xf32>
    %cst_364 = arith.constant dense<0.000000e+00> : vector<6x240xf32>
    %339 = tpu.matmul %336, %338, %cst_364 {dimension_numbers = #tpu.dot_dimension_numbers<[1], [0], [0], [1], [0, 0, 1, 1], [], []>} : vector<6x28xf32>, vector<28x240xf32>, vector<6x240xf32> -> vector<6x240xf32>
    %340 = arith.addf %334, %339 : vector<6x240xf32>
    %c1_365 = arith.constant 1 : index
    %c1_366 = arith.constant 1 : index
    %c1_367 = arith.constant 1 : index
    %c0_368 = arith.constant 0 : index
    %341 = vector.load %arg1[%c1_365, %c1_366, %c1_367, %c0_368] : memref<2x4x7x28xf32, #tpu.memory_space<vmem>>, vector<1x1x6x28xf32>
    %342 = vector.shape_cast %341 : vector<1x1x6x28xf32> to vector<6x28xf32>
    %c2_369 = arith.constant 2 : index
    %c0_370 = arith.constant 0 : index
    %c0_371 = arith.constant 0 : index
    %343 = vector.load %arg2[%c2_369, %c0_370, %c0_371] : memref<5x28x240xf32, #tpu.memory_space<vmem>>, vector<1x28x240xf32>
    %344 = vector.shape_cast %343 : vector<1x28x240xf32> to vector<28x240xf32>
    %cst_372 = arith.constant dense<0.000000e+00> : vector<6x240xf32>
    %345 = tpu.matmul %342, %344, %cst_372 {dimension_numbers = #tpu.dot_dimension_numbers<[1], [0], [0], [1], [0, 0, 1, 1], [], []>} : vector<6x28xf32>, vector<28x240xf32>, vector<6x240xf32> -> vector<6x240xf32>
    %346 = arith.addf %340, %345 : vector<6x240xf32>
    %c1_373 = arith.constant 1 : index
    %c2_374 = arith.constant 2 : index
    %c1_375 = arith.constant 1 : index
    %c0_376 = arith.constant 0 : index
    %347 = vector.load %arg1[%c1_373, %c2_374, %c1_375, %c0_376] : memref<2x4x7x28xf32, #tpu.memory_space<vmem>>, vector<1x1x6x28xf32>
    %348 = vector.shape_cast %347 : vector<1x1x6x28xf32> to vector<6x28xf32>
    %c3_377 = arith.constant 3 : index
    %c0_378 = arith.constant 0 : index
    %c0_379 = arith.constant 0 : index
    %349 = vector.load %arg2[%c3_377, %c0_378, %c0_379] : memref<5x28x240xf32, #tpu.memory_space<vmem>>, vector<1x28x240xf32>
    %350 = vector.shape_cast %349 : vector<1x28x240xf32> to vector<28x240xf32>
    %cst_380 = arith.constant dense<0.000000e+00> : vector<6x240xf32>
    %351 = tpu.matmul %348, %350, %cst_380 {dimension_numbers = #tpu.dot_dimension_numbers<[1], [0], [0], [1], [0, 0, 1, 1], [], []>} : vector<6x28xf32>, vector<28x240xf32>, vector<6x240xf32> -> vector<6x240xf32>
    %352 = arith.addf %346, %351 : vector<6x240xf32>
    %c1_381 = arith.constant 1 : index
    %c3_382 = arith.constant 3 : index
    %c1_383 = arith.constant 1 : index
    %c0_384 = arith.constant 0 : index
    %353 = vector.load %arg1[%c1_381, %c3_382, %c1_383, %c0_384] : memref<2x4x7x28xf32, #tpu.memory_space<vmem>>, vector<1x1x6x28xf32>
    %354 = vector.shape_cast %353 : vector<1x1x6x28xf32> to vector<6x28xf32>
    %c4_385 = arith.constant 4 : index
    %c0_386 = arith.constant 0 : index
    %c0_387 = arith.constant 0 : index
    %355 = vector.load %arg2[%c4_385, %c0_386, %c0_387] : memref<5x28x240xf32, #tpu.memory_space<vmem>>, vector<1x28x240xf32>
    %356 = vector.shape_cast %355 : vector<1x28x240xf32> to vector<28x240xf32>
    %cst_388 = arith.constant dense<0.000000e+00> : vector<6x240xf32>
    %357 = tpu.matmul %354, %356, %cst_388 {dimension_numbers = #tpu.dot_dimension_numbers<[1], [0], [0], [1], [0, 0, 1, 1], [], []>} : vector<6x28xf32>, vector<28x240xf32>, vector<6x240xf32> -> vector<6x240xf32>
    %358 = arith.addf %352, %357 : vector<6x240xf32>
    %c0_389 = arith.constant 0 : index
    %c0_390 = arith.constant 0 : index
    %359 = vector.load %arg3[%c0_389, %c0_390] : memref<1x240xf32, #tpu.memory_space<vmem>>, vector<1x240xf32>
    %360 = vector.broadcast %359 : vector<1x240xf32> to vector<6x240xf32>
    %361 = arith.addf %358, %360 : vector<6x240xf32>
    %362 = arith.maximumf %259, %293 : vector<6x240xf32>
    %363 = vector.extract_strided_slice %362 {offsets = [0, 0], sizes = [6, 120], strides = [1, 1]} : vector<6x240xf32> to vector<6x120xf32>
    %364 = vector.extract_strided_slice %362 {offsets = [0, 120], sizes = [6, 120], strides = [1, 1]} : vector<6x240xf32> to vector<6x120xf32>
    %365 = arith.maximumf %363, %364 : vector<6x120xf32>
    %cst_391 = arith.constant 0.000000e+00 : f32
    %366 = vector.broadcast %cst_391 : f32 to vector<6x120xf32>
    %367 = arith.maximumf %365, %366 : vector<6x120xf32>
    %368 = arith.maximumf %327, %361 : vector<6x240xf32>
    %369 = vector.extract_strided_slice %368 {offsets = [0, 0], sizes = [6, 120], strides = [1, 1]} : vector<6x240xf32> to vector<6x120xf32>
    %370 = vector.extract_strided_slice %368 {offsets = [0, 120], sizes = [6, 120], strides = [1, 1]} : vector<6x240xf32> to vector<6x120xf32>
    %371 = arith.maximumf %369, %370 : vector<6x120xf32>
    %cst_392 = arith.constant 0.000000e+00 : f32
    %372 = vector.broadcast %cst_392 : f32 to vector<6x120xf32>
    %373 = arith.maximumf %371, %372 : vector<6x120xf32>
    %cst_393 = arith.constant 0.000000e+00 : f32
    %374 = vector.broadcast %cst_393 : f32 to vector<4x160xf32>
    %cst_394 = arith.constant 0.000000e+00 : f32
    %375 = vector.broadcast %cst_394 : f32 to vector<4x160xf32>
    %c0_395 = arith.constant 0 : index
    %c0_396 = arith.constant 0 : index
    %c0_397 = arith.constant 0 : index
    %376 = vector.load %arg4[%c0_395, %c0_396, %c0_397] : memref<5x120x160xf32, #tpu.memory_space<vmem>>, vector<1x120x160xf32>
    %377 = vector.shape_cast %376 : vector<1x120x160xf32> to vector<120x160xf32>
    %378 = vector.extract_strided_slice %367 {offsets = [0, 0], sizes = [4, 120], strides = [1, 1]} : vector<6x120xf32> to vector<4x120xf32>
    %cst_398 = arith.constant dense<0.000000e+00> : vector<4x160xf32>
    %379 = tpu.matmul %378, %377, %cst_398 {dimension_numbers = #tpu.dot_dimension_numbers<[1], [0], [0], [1], [0, 0, 1, 1], [], []>} : vector<4x120xf32>, vector<120x160xf32>, vector<4x160xf32> -> vector<4x160xf32>
    %380 = arith.addf %374, %379 : vector<4x160xf32>
    %381 = vector.extract_strided_slice %373 {offsets = [0, 0], sizes = [4, 120], strides = [1, 1]} : vector<6x120xf32> to vector<4x120xf32>
    %cst_399 = arith.constant dense<0.000000e+00> : vector<4x160xf32>
    %382 = tpu.matmul %381, %377, %cst_399 {dimension_numbers = #tpu.dot_dimension_numbers<[1], [0], [0], [1], [0, 0, 1, 1], [], []>} : vector<4x120xf32>, vector<120x160xf32>, vector<4x160xf32> -> vector<4x160xf32>
    %383 = arith.addf %375, %382 : vector<4x160xf32>
    %c1_400 = arith.constant 1 : index
    %c0_401 = arith.constant 0 : index
    %c0_402 = arith.constant 0 : index
    %384 = vector.load %arg4[%c1_400, %c0_401, %c0_402] : memref<5x120x160xf32, #tpu.memory_space<vmem>>, vector<1x120x160xf32>
    %385 = vector.shape_cast %384 : vector<1x120x160xf32> to vector<120x160xf32>
    %386 = vector.extract_strided_slice %373 {offsets = [0, 0], sizes = [4, 120], strides = [1, 1]} : vector<6x120xf32> to vector<4x120xf32>
    %cst_403 = arith.constant dense<0.000000e+00> : vector<4x160xf32>
    %387 = tpu.matmul %386, %385, %cst_403 {dimension_numbers = #tpu.dot_dimension_numbers<[1], [0], [0], [1], [0, 0, 1, 1], [], []>} : vector<4x120xf32>, vector<120x160xf32>, vector<4x160xf32> -> vector<4x160xf32>
    %388 = arith.addf %380, %387 : vector<4x160xf32>
    %389 = vector.extract_strided_slice %367 {offsets = [1, 0], sizes = [4, 120], strides = [1, 1]} : vector<6x120xf32> to vector<4x120xf32>
    %cst_404 = arith.constant dense<0.000000e+00> : vector<4x160xf32>
    %390 = tpu.matmul %389, %385, %cst_404 {dimension_numbers = #tpu.dot_dimension_numbers<[1], [0], [0], [1], [0, 0, 1, 1], [], []>} : vector<4x120xf32>, vector<120x160xf32>, vector<4x160xf32> -> vector<4x160xf32>
    %391 = arith.addf %383, %390 : vector<4x160xf32>
    %c2_405 = arith.constant 2 : index
    %c0_406 = arith.constant 0 : index
    %c0_407 = arith.constant 0 : index
    %392 = vector.load %arg4[%c2_405, %c0_406, %c0_407] : memref<5x120x160xf32, #tpu.memory_space<vmem>>, vector<1x120x160xf32>
    %393 = vector.shape_cast %392 : vector<1x120x160xf32> to vector<120x160xf32>
    %394 = vector.extract_strided_slice %367 {offsets = [1, 0], sizes = [4, 120], strides = [1, 1]} : vector<6x120xf32> to vector<4x120xf32>
    %cst_408 = arith.constant dense<0.000000e+00> : vector<4x160xf32>
    %395 = tpu.matmul %394, %393, %cst_408 {dimension_numbers = #tpu.dot_dimension_numbers<[1], [0], [0], [1], [0, 0, 1, 1], [], []>} : vector<4x120xf32>, vector<120x160xf32>, vector<4x160xf32> -> vector<4x160xf32>
    %396 = arith.addf %388, %395 : vector<4x160xf32>
    %397 = vector.extract_strided_slice %373 {offsets = [1, 0], sizes = [4, 120], strides = [1, 1]} : vector<6x120xf32> to vector<4x120xf32>
    %cst_409 = arith.constant dense<0.000000e+00> : vector<4x160xf32>
    %398 = tpu.matmul %397, %393, %cst_409 {dimension_numbers = #tpu.dot_dimension_numbers<[1], [0], [0], [1], [0, 0, 1, 1], [], []>} : vector<4x120xf32>, vector<120x160xf32>, vector<4x160xf32> -> vector<4x160xf32>
    %399 = arith.addf %391, %398 : vector<4x160xf32>
    %c3_410 = arith.constant 3 : index
    %c0_411 = arith.constant 0 : index
    %c0_412 = arith.constant 0 : index
    %400 = vector.load %arg4[%c3_410, %c0_411, %c0_412] : memref<5x120x160xf32, #tpu.memory_space<vmem>>, vector<1x120x160xf32>
    %401 = vector.shape_cast %400 : vector<1x120x160xf32> to vector<120x160xf32>
    %402 = vector.extract_strided_slice %373 {offsets = [1, 0], sizes = [4, 120], strides = [1, 1]} : vector<6x120xf32> to vector<4x120xf32>
    %cst_413 = arith.constant dense<0.000000e+00> : vector<4x160xf32>
    %403 = tpu.matmul %402, %401, %cst_413 {dimension_numbers = #tpu.dot_dimension_numbers<[1], [0], [0], [1], [0, 0, 1, 1], [], []>} : vector<4x120xf32>, vector<120x160xf32>, vector<4x160xf32> -> vector<4x160xf32>
    %404 = arith.addf %396, %403 : vector<4x160xf32>
    %405 = vector.extract_strided_slice %367 {offsets = [2, 0], sizes = [4, 120], strides = [1, 1]} : vector<6x120xf32> to vector<4x120xf32>
    %cst_414 = arith.constant dense<0.000000e+00> : vector<4x160xf32>
    %406 = tpu.matmul %405, %401, %cst_414 {dimension_numbers = #tpu.dot_dimension_numbers<[1], [0], [0], [1], [0, 0, 1, 1], [], []>} : vector<4x120xf32>, vector<120x160xf32>, vector<4x160xf32> -> vector<4x160xf32>
    %407 = arith.addf %399, %406 : vector<4x160xf32>
    %c4_415 = arith.constant 4 : index
    %c0_416 = arith.constant 0 : index
    %c0_417 = arith.constant 0 : index
    %408 = vector.load %arg4[%c4_415, %c0_416, %c0_417] : memref<5x120x160xf32, #tpu.memory_space<vmem>>, vector<1x120x160xf32>
    %409 = vector.shape_cast %408 : vector<1x120x160xf32> to vector<120x160xf32>
    %410 = vector.extract_strided_slice %367 {offsets = [2, 0], sizes = [4, 120], strides = [1, 1]} : vector<6x120xf32> to vector<4x120xf32>
    %cst_418 = arith.constant dense<0.000000e+00> : vector<4x160xf32>
    %411 = tpu.matmul %410, %409, %cst_418 {dimension_numbers = #tpu.dot_dimension_numbers<[1], [0], [0], [1], [0, 0, 1, 1], [], []>} : vector<4x120xf32>, vector<120x160xf32>, vector<4x160xf32> -> vector<4x160xf32>
    %412 = arith.addf %404, %411 : vector<4x160xf32>
    %413 = vector.extract_strided_slice %373 {offsets = [2, 0], sizes = [4, 120], strides = [1, 1]} : vector<6x120xf32> to vector<4x120xf32>
    %cst_419 = arith.constant dense<0.000000e+00> : vector<4x160xf32>
    %414 = tpu.matmul %413, %409, %cst_419 {dimension_numbers = #tpu.dot_dimension_numbers<[1], [0], [0], [1], [0, 0, 1, 1], [], []>} : vector<4x120xf32>, vector<120x160xf32>, vector<4x160xf32> -> vector<4x160xf32>
    %415 = arith.addf %407, %414 : vector<4x160xf32>
    %c0_420 = arith.constant 0 : index
    %c0_421 = arith.constant 0 : index
    %416 = vector.load %arg5[%c0_420, %c0_421] : memref<1x160xf32, #tpu.memory_space<vmem>>, vector<1x160xf32>
    %417 = vector.broadcast %416 : vector<1x160xf32> to vector<4x160xf32>
    %418 = arith.addf %412, %417 : vector<4x160xf32>
    %c0_422 = arith.constant 0 : index
    %c0_423 = arith.constant 0 : index
    %419 = vector.load %arg5[%c0_422, %c0_423] : memref<1x160xf32, #tpu.memory_space<vmem>>, vector<1x160xf32>
    %420 = vector.broadcast %419 : vector<1x160xf32> to vector<4x160xf32>
    %421 = arith.addf %415, %420 : vector<4x160xf32>
    %422 = arith.maximumf %418, %421 : vector<4x160xf32>
    %423 = vector.extract_strided_slice %422 {offsets = [0, 0], sizes = [4, 80], strides = [1, 1]} : vector<4x160xf32> to vector<4x80xf32>
    %424 = vector.extract_strided_slice %422 {offsets = [0, 80], sizes = [4, 80], strides = [1, 1]} : vector<4x160xf32> to vector<4x80xf32>
    %425 = arith.maximumf %423, %424 : vector<4x80xf32>
    %cst_424 = arith.constant 0.000000e+00 : f32
    %426 = vector.broadcast %cst_424 : f32 to vector<4x80xf32>
    %427 = arith.maximumf %425, %426 : vector<4x80xf32>
    %c0_425 = arith.constant 0 : index
    %c0_426 = arith.constant 0 : index
    %428 = vector.load %arg7[%c0_425, %c0_426] : memref<1x50xf32, #tpu.memory_space<vmem>>, vector<1x50xf32>
    %429 = vector.extract_strided_slice %427 {offsets = [0, 0], sizes = [1, 80], strides = [1, 1]} : vector<4x80xf32> to vector<1x80xf32>
    %c0_427 = arith.constant 0 : index
    %c0_428 = arith.constant 0 : index
    %430 = vector.load %arg6[%c0_427, %c0_428] : memref<320x50xf32, #tpu.memory_space<vmem>>, vector<80x50xf32>
    %cst_429 = arith.constant dense<0.000000e+00> : vector<1x50xf32>
    %431 = tpu.matmul %429, %430, %cst_429 {dimension_numbers = #tpu.dot_dimension_numbers<[1], [0], [0], [1], [0, 0, 1, 1], [], []>} : vector<1x80xf32>, vector<80x50xf32>, vector<1x50xf32> -> vector<1x50xf32>
    %432 = arith.addf %428, %431 : vector<1x50xf32>
    %433 = vector.extract_strided_slice %427 {offsets = [1, 0], sizes = [1, 80], strides = [1, 1]} : vector<4x80xf32> to vector<1x80xf32>
    %c80_430 = arith.constant 80 : index
    %c0_431 = arith.constant 0 : index
    %434 = vector.load %arg6[%c80_430, %c0_431] : memref<320x50xf32, #tpu.memory_space<vmem>>, vector<80x50xf32>
    %cst_432 = arith.constant dense<0.000000e+00> : vector<1x50xf32>
    %435 = tpu.matmul %433, %434, %cst_432 {dimension_numbers = #tpu.dot_dimension_numbers<[1], [0], [0], [1], [0, 0, 1, 1], [], []>} : vector<1x80xf32>, vector<80x50xf32>, vector<1x50xf32> -> vector<1x50xf32>
    %436 = arith.addf %432, %435 : vector<1x50xf32>
    %437 = vector.extract_strided_slice %427 {offsets = [2, 0], sizes = [1, 80], strides = [1, 1]} : vector<4x80xf32> to vector<1x80xf32>
    %c160_433 = arith.constant 160 : index
    %c0_434 = arith.constant 0 : index
    %438 = vector.load %arg6[%c160_433, %c0_434] : memref<320x50xf32, #tpu.memory_space<vmem>>, vector<80x50xf32>
    %cst_435 = arith.constant dense<0.000000e+00> : vector<1x50xf32>
    %439 = tpu.matmul %437, %438, %cst_435 {dimension_numbers = #tpu.dot_dimension_numbers<[1], [0], [0], [1], [0, 0, 1, 1], [], []>} : vector<1x80xf32>, vector<80x50xf32>, vector<1x50xf32> -> vector<1x50xf32>
    %440 = arith.addf %436, %439 : vector<1x50xf32>
    %441 = vector.extract_strided_slice %427 {offsets = [3, 0], sizes = [1, 80], strides = [1, 1]} : vector<4x80xf32> to vector<1x80xf32>
    %c240_436 = arith.constant 240 : index
    %c0_437 = arith.constant 0 : index
    %442 = vector.load %arg6[%c240_436, %c0_437] : memref<320x50xf32, #tpu.memory_space<vmem>>, vector<80x50xf32>
    %cst_438 = arith.constant dense<0.000000e+00> : vector<1x50xf32>
    %443 = tpu.matmul %441, %442, %cst_438 {dimension_numbers = #tpu.dot_dimension_numbers<[1], [0], [0], [1], [0, 0, 1, 1], [], []>} : vector<1x80xf32>, vector<80x50xf32>, vector<1x50xf32> -> vector<1x50xf32>
    %444 = arith.addf %440, %443 : vector<1x50xf32>
    %cst_439 = arith.constant 0.000000e+00 : f32
    %445 = vector.broadcast %cst_439 : f32 to vector<1x50xf32>
    %446 = arith.maximumf %444, %445 : vector<1x50xf32>
    %c0_440 = arith.constant 0 : index
    %c0_441 = arith.constant 0 : index
    %447 = vector.load %arg8[%c0_440, %c0_441] : memref<50x10xf32, #tpu.memory_space<vmem>>, vector<50x10xf32>
    %cst_442 = arith.constant dense<0.000000e+00> : vector<1x10xf32>
    %448 = tpu.matmul %446, %447, %cst_442 {dimension_numbers = #tpu.dot_dimension_numbers<[1], [0], [0], [1], [0, 0, 1, 1], [], []>} : vector<1x50xf32>, vector<50x10xf32>, vector<1x10xf32> -> vector<1x10xf32>
    %c0_443 = arith.constant 0 : index
    %c0_444 = arith.constant 0 : index
    %449 = vector.load %arg9[%c0_443, %c0_444] : memref<1x10xf32, #tpu.memory_space<vmem>>, vector<1x10xf32>
    %450 = arith.addf %448, %449 : vector<1x10xf32>
    %c1_445 = arith.constant 1 : index
    %c0_446 = arith.constant 0 : index
    %451 = vector.load %arg10[%c1_445, %c0_446] : memref<2x10xf32, #tpu.memory_space<vmem>>, vector<1x10xf32>
    tpu.vector_store %arg10[%c1_445, %c0_446], %450 {strides = array<i32>} : memref<2x10xf32, #tpu.memory_space<vmem>>, vector<1x10xf32>,
    return
  }
  func.func @transform_0(%arg0: i32) -> (i32, i32, i32, i32) {
    %c0_i32 = arith.constant 0 : i32
    %c0_i32_0 = arith.constant 0 : i32
    %c0_i32_1 = arith.constant 0 : i32
    %c0_i32_2 = arith.constant 0 : i32
    return %arg0, %c0_i32, %c0_i32_0, %c0_i32_1 : i32, i32, i32, i32
  }
  func.func @transform_1(%arg0: i32) -> (i32, i32, i32) {
    %c0_i32 = arith.constant 0 : i32
    %c0_i32_0 = arith.constant 0 : i32
    %c0_i32_1 = arith.constant 0 : i32
    %c0_i32_2 = arith.constant 0 : i32
    return %c0_i32, %c0_i32_0, %c0_i32_1 : i32, i32, i32
  }
  func.func @transform_2(%arg0: i32) -> (i32, i32) {
    %c0_i32 = arith.constant 0 : i32
    %c0_i32_0 = arith.constant 0 : i32
    %c0_i32_1 = arith.constant 0 : i32
    return %c0_i32, %c0_i32_0 : i32, i32
  }
  func.func @transform_3(%arg0: i32) -> (i32, i32, i32) {
    %c0_i32 = arith.constant 0 : i32
    %c0_i32_0 = arith.constant 0 : i32
    %c0_i32_1 = arith.constant 0 : i32
    %c0_i32_2 = arith.constant 0 : i32
    return %c0_i32, %c0_i32_0, %c0_i32_1 : i32, i32, i32
  }
  func.func @transform_4(%arg0: i32) -> (i32, i32) {
    %c0_i32 = arith.constant 0 : i32
    %c0_i32_0 = arith.constant 0 : i32
    %c0_i32_1 = arith.constant 0 : i32
    return %c0_i32, %c0_i32_0 : i32, i32
  }
  func.func @transform_5(%arg0: i32) -> (i32, i32) {
    %c0_i32 = arith.constant 0 : i32
    %c0_i32_0 = arith.constant 0 : i32
    %c0_i32_1 = arith.constant 0 : i32
    return %c0_i32, %c0_i32_0 : i32, i32
  }
  func.func @transform_6(%arg0: i32) -> (i32, i32) {
    %c0_i32 = arith.constant 0 : i32
    %c0_i32_0 = arith.constant 0 : i32
    %c0_i32_1 = arith.constant 0 : i32
    return %c0_i32, %c0_i32_0 : i32, i32
  }
  func.func @transform_7(%arg0: i32) -> (i32, i32) {
    %c0_i32 = arith.constant 0 : i32
    %c0_i32_0 = arith.constant 0 : i32
    %c0_i32_1 = arith.constant 0 : i32
    return %c0_i32, %c0_i32_0 : i32, i32
  }
  func.func @transform_8(%arg0: i32) -> (i32, i32) {
    %c0_i32 = arith.constant 0 : i32
    %c0_i32_0 = arith.constant 0 : i32
    %c0_i32_1 = arith.constant 0 : i32
    return %c0_i32, %c0_i32_0 : i32, i32
  }
  func.func @transform_9(%arg0: i32) -> (i32, i32) {
    %c0_i32 = arith.constant 0 : i32
    %c0_i32_0 = arith.constant 0 : i32
    return %arg0, %c0_i32 : i32, i32
  }
}

</mosaic_0001>

<bundles_post_ra>
// kernel: tile.13
= control target key start
LH: loop header
LB: loop body
LE: loop exit
PB: predicated region body
PF: predicated region fallthrough
CT: control target
= control target key end

     0   :  { %s34_s0 = inlined_call_operand.vmem [shape: f32[10], index: 0, kind: input, shape index: {}]   ;;  %s35_s1 = inlined_call_operand.vmem [shape: f32[24,10], index: 1, kind: output, shape index: {}]  }
   0x1   :  { %v4_v0 = vld [vmem:[%s34_s0] ss:$0 sm:$0xff] }
   0x2   :  { %5 = vst [vmem:[%s35_s1] sm:$0xff] %v4_v0  ;;  %10 = vst [vmem:[%s35_s1 + $0x8] sm:$0xff] %v4_v0 }
   0x3   :  { %11 = vst [vmem:[%s35_s1 + $0x10] sm:$0xff] %v4_v0 }

// kernel: tile.14
= control target key start
LH: loop header
LB: loop body
LE: loop exit
PB: predicated region body
PF: predicated region fallthrough
CT: control target
= control target key end

     0   :  { %vm9_vm0 = vcmask 64512   ;;  %s220_s12 = smov 120   ;;  %s221_s13 = smov 102   ;;  %vm3_vm1 = vcmask 80896   ;;  %vm13_vm2 = vcmask 15360   ;;  %vm16_vm3 = vcmask 1048512   ;;  %s334_s0 = inlined_call_operand.vmem [shape: f32[24,10], index: 0, kind: input, shape index: {}]   ;;  %s335_s1 = inlined_call_operand.vmem [shape: f32[1,240], index: 1, kind: output, shape index: {}]  }
   0x1   :  { %v172_v0 = vld [vmem:[%s334_s0 + $0xc] sm:$0x1]   ;;  %v175_v3 = vld [vmem:[%s334_s0 + $0x17] sm:$0x1]   ;;  %v174_v4 = vld [vmem:[%s334_s0 + $0xb] sm:$0x1]  }
   0x2   :  { %v173_v1 = vld [vmem:[%s334_s0 + $0xc] sm:$0x1]   ;;  %26 = vrot.lane.b32.xlu1 %v175_v3, %s221_s13  ;;  %v176_v5 = vld [vmem:[%s334_s0 + $0xa] sm:$0x1]   ;;  %s222_s18 = smov 110   ;;  %s223_s19 = smov 100  }
   0x3   :  { %v10_v2 = vsel %vm9_vm0, %v173_v1, %v172_v0  ;;  %v177_v6 = vld [vmem:[%s334_s0 + $0x16] sm:$0x1]   ;;  %v178_v7 = vld [vmem:[%s334_s0 + $0x9] sm:$0x1]   ;;  %s224_s24 = smov 92   ;;  %s225_s25 = smov 90  }
   0x4   :  { %11 = vrot.lane.b32.xlu0 %v10_v2, %s220_s12  ;;  %v179_v8 = vld [vmem:[%s334_s0 + $0x15] sm:$0x1]   ;;  %v180_v9 = vld [vmem:[%s334_s0 + $0x8] sm:$0x1]   ;;  %v2_v10 = vld [vmem:[%s334_s0] sm:$0x1]  }
   0x5   :  { %4 = vst.msk [vmem:[#allocation0] sm:$0x1] %vm3_vm1, %v2_v10   ;;  %s226_s3 = smov 82   ;;  %s227_s4 = smov 80   ;;  %v181_v11 = vld [vmem:[%s334_s0 + $0x14] sm:$0x1]  }
   0x6   :  { %33 = vrot.lane.b32.xlu1 %v176_v5, %s223_s19  ;;  %v182_v12 = vld [vmem:[%s334_s0 + $0x7] sm:$0x1]   ;;  %s228_s9 = smov 72   ;;  %s229_s10 = smov 70   ;;  %v183_v13 = vld [vmem:[%s334_s0 + $0x13] sm:$0x1]  }
   0x7   :  { %v184_v14 = vld [vmem:[%s334_s0 + $0x6] sm:$0x1]   ;;  %s230_s15 = smov 62   ;;  %s231_s16 = smov 60   ;;  %v185_v15 = vld [vmem:[%s334_s0 + $0x12] sm:$0x1]  }
   0x8   :  { %20 = vrot.lane.b32.xlu0 %v174_v4, %s222_s18  ;;  %v186_v16 = vld [vmem:[%s334_s0 + $0x5] sm:$0x1]   ;;  %s232_s21 = smov 52   ;;  %s233_s22 = smov 50   ;;  %v187_v17 = vld [vmem:[%s334_s0 + $0x11] sm:$0x1]  }
   0x9   :  { %v188_v18 = vld [vmem:[%s334_s0 + $0x4] sm:$0x1]   ;;  %s234_s27 = smov 42   ;;  %s235_s28 = smov 40   ;;  %v189_v19 = vld [vmem:[%s334_s0 + $0x10] sm:$0x1]  }
   0xa   :  { %46 = vrot.lane.b32.xlu1 %v178_v7, %s225_s25  ;;  %v190_v20 = vld [vmem:[%s334_s0 + $0x3] sm:$0x1]   ;;  %s237_s5 = smov 30   ;;  %v191_v21 = vld [vmem:[%s334_s0 + $0xf] sm:$0x1]   ;;  %s239_s11 = smov 20  }
   0xb   :  { %v192_v22 = vld [vmem:[%s334_s0 + $0x2] sm:$0x1]   ;;  %v193_v23 = vld [vmem:[%s334_s0 + $0xe] sm:$0x1]   ;;  %v194_v24 = vld [vmem:[%s334_s0 + $0x1] sm:$0x1]  }
   0xc   :  { %39 = vrot.lane.b32.xlu0 %v177_v6, %s224_s24  ;;  %s241_s17 = smov 10   ;;  %v195_v25 = vld [vmem:[%s334_s0 + $0xd] sm:$0x1]   ;;  %s242_s0 = smov 2   ;;  %vm28_vm4 = vcmask 917296   ;;  %vm22_vm5 = vcmask 982896  }
   0xd   :  { %vm35_vm6 = vcmask 900896   ;;  %vm41_vm7 = vcmask 835296   ;;  %vm48_vm8 = vcmask 818896   ;;  %vm54_vm9 = vcmask 753296  }
   0xe   :  { %59 = vrot.lane.b32.xlu1 %v180_v9, %s227_s4  ;;  %s236_s4 = smov 32   ;;  %vm61_vm10 = vcmask 736896   ;;  %vm67_vm11 = vcmask 671296   ;;  %vm74_vm12 = vcmask 654896   ;;  %vm80_vm13 = vcmask 589296  }
   0xf   :  { %vm87_vm14 = vcmask 572896   ;;  %vm93_vm15 = vcmask 507296   ;;  %vm100_vm0 = vcmask 490896   ;;  %vm106_vm1 = vcmask 425296  }
  0x10   :  { %52 = vrot.lane.b32.xlu0 %v179_v8, %s226_s3 }
  0x12   :  { %72 = vrot.lane.b32.xlu1 %v182_v12, %s229_s10  ;;  %s238_s10 = smov 22  }
  0x14   :  { %65 = vrot.lane.b32.xlu0 %v181_v11, %s228_s9 }
  0x16   :  { %85 = vrot.lane.b32.xlu1 %v184_v14, %s231_s16  ;;  %s240_s16 = smov 12  }
  0x18   :  { %78 = vrot.lane.b32.xlu0 %v183_v13, %s230_s15 }
  0x1a   :  { %98 = vrot.lane.b32.xlu1 %v186_v16, %s233_s22 }
  0x1c   :  { %91 = vrot.lane.b32.xlu0 %v185_v15, %s232_s21 }
  0x1e   :  { %111 = vrot.lane.b32.xlu1 %v188_v18, %s235_s28 }
  0x20   :  { %104 = vrot.lane.b32.xlu0 %v187_v17, %s234_s27 }
  0x22   :  { %124 = vrot.lane.b32.xlu1 %v190_v20, %s237_s5 }
  0x24   :  { %117 = vrot.lane.b32.xlu0 %v189_v19, %s236_s4 }
  0x26   :  { %137 = vrot.lane.b32.xlu1 %v192_v22, %s239_s11 }
  0x28   :  { %130 = vrot.lane.b32.xlu0 %v191_v21, %s238_s10 }
  0x2a   :  { %150 = vrot.lane.b32.xlu1 %v194_v24, %s241_s17 }
  0x2c   :  { %143 = vrot.lane.b32.xlu0 %v193_v23, %s240_s16 }
  0x30   :  { %156 = vrot.lane.b32.xlu0 %v195_v25, %s242_s0 }
  0x74   :  { %v27_v27 = vpop.permute.xlu1 %26  }
  0x76   :  { %v12_v26 = vpop.permute.xlu0 %11  }
  0x77   :  { %15 = vst.msk [vmem:[#allocation0 + $0x8] sm:$0x1] %vm13_vm2, %v12_v26   ;;  %vm113_vm2 = vcmask 408896  }
  0x78   :  { %17 = vst.msk [vmem:[#allocation0] sm:$0x1] %vm16_vm3, %v12_v26   ;;  %v34_v29 = vpop.permute.xlu1 %33   ;;  %vm119_vm3 = vcmask 343296  }
  0x79   :  { %30 = vst.msk [vmem:[#allocation0 + $0x8] sm:$0x1] %vm28_vm4, %v27_v27   ;;  %vm126_vm4 = vcmask 326896  }
  0x7a   :  { %v21_v28 = vpop.permute.xlu0 %20  }
  0x7b   :  { %23 = vst.msk [vmem:[#allocation0] sm:$0x1] %vm22_vm5, %v21_v28   ;;  %vm132_vm5 = vcmask 261296  }
  0x7c   :  { %36 = vst.msk [vmem:[#allocation0] sm:$0x1] %vm35_vm6, %v34_v29   ;;  %v47_v31 = vpop.permute.xlu1 %46   ;;  %vm139_vm6 = vcmask 244896  }
  0x7d   :  { %49 = vst.msk [vmem:[#allocation0] sm:$0x1] %vm48_vm8, %v47_v31   ;;  %vm152_vm8 = vcmask 162896  }
  0x7e   :  { %v40_v30 = vpop.permute.xlu0 %39  }
  0x7f   :  { %43 = vst.msk [vmem:[#allocation0 + $0x8] sm:$0x1] %vm41_vm7, %v40_v30   ;;  %vm145_vm7 = vcmask 179296  }
  0x80   :  { %v60_v33 = vpop.permute.xlu1 %59  }
  0x81   :  { %62 = vst.msk [vmem:[#allocation0] sm:$0x1] %vm61_vm10, %v60_v33  }
  0x82   :  { %v53_v32 = vpop.permute.xlu0 %52  }
  0x83   :  { %56 = vst.msk [vmem:[#allocation0 + $0x8] sm:$0x1] %vm54_vm9, %v53_v32   ;;  %vm158_vm9 = vcmask 97296  }
  0x84   :  { %v73_v35 = vpop.permute.xlu1 %72  }
  0x85   :  { %75 = vst.msk [vmem:[#allocation0] sm:$0x1] %vm74_vm12, %v73_v35  }
  0x86   :  { %v66_v34 = vpop.permute.xlu0 %65  }
  0x87   :  { %69 = vst.msk [vmem:[#allocation0 + $0x8] sm:$0x1] %vm67_vm11, %v66_v34  }
  0x88   :  { %v86_v37 = vpop.permute.xlu1 %85  }
  0x89   :  { %88 = vst.msk [vmem:[#allocation0] sm:$0x1] %vm87_vm14, %v86_v37  }
  0x8a   :  { %v79_v36 = vpop.permute.xlu0 %78  }
  0x8b   :  { %82 = vst.msk [vmem:[#allocation0 + $0x8] sm:$0x1] %vm80_vm13, %v79_v36  }
  0x8c   :  { %v99_v39 = vpop.permute.xlu1 %98  }
  0x8d   :  { %101 = vst.msk [vmem:[#allocation0] sm:$0x1] %vm100_vm0, %v99_v39  }
  0x8e   :  { %v92_v38 = vpop.permute.xlu0 %91  }
  0x8f   :  { %95 = vst.msk [vmem:[#allocation0 + $0x8] sm:$0x1] %vm93_vm15, %v92_v38  }
  0x90   :  { %v112_v41 = vpop.permute.xlu1 %111  }
  0x91   :  { %114 = vst.msk [vmem:[#allocation0] sm:$0x1] %vm113_vm2, %v112_v41  }
  0x92   :  { %v105_v40 = vpop.permute.xlu0 %104  }
  0x93   :  { %108 = vst.msk [vmem:[#allocation0 + $0x8] sm:$0x1] %vm106_vm1, %v105_v40  }
  0x94   :  { %v125_v43 = vpop.permute.xlu1 %124  }
  0x95   :  { %127 = vst.msk [vmem:[#allocation0] sm:$0x1] %vm126_vm4, %v125_v43  }
  0x96   :  { %v118_v42 = vpop.permute.xlu0 %117  }
  0x97   :  { %121 = vst.msk [vmem:[#allocation0 + $0x8] sm:$0x1] %vm119_vm3, %v118_v42  }
  0x98   :  { %v138_v45 = vpop.permute.xlu1 %137  }
  0x99   :  { %140 = vst.msk [vmem:[#allocation0] sm:$0x1] %vm139_vm6, %v138_v45  }
  0x9a   :  { %v131_v44 = vpop.permute.xlu0 %130  }
  0x9b   :  { %134 = vst.msk [vmem:[#allocation0 + $0x8] sm:$0x1] %vm132_vm5, %v131_v44  }
  0x9c   :  { %v151_v47 = vpop.permute.xlu1 %150  }
  0x9d   :  { %153 = vst.msk [vmem:[#allocation0] sm:$0x1] %vm152_vm8, %v151_v47  }
  0x9e   :  { %v144_v46 = vpop.permute.xlu0 %143  }
  0x9f   :  { %147 = vst.msk [vmem:[#allocation0 + $0x8] sm:$0x1] %vm145_vm7, %v144_v46  }
  0xa2   :  { %v157_v48 = vpop.permute.xlu0 %156  }
  0xa3   :  { %160 = vst.msk [vmem:[#allocation0 + $0x8] sm:$0x1] %vm158_vm9, %v157_v48  }
  0xa4   :  { %v164_v49 = vld [vmem:[#allocation0] sm:$0x1] }
  0xa5   :  { %166 = vst [vmem:[%s335_s1] sm:$0x1] %v164_v49 }
  0xaa   :  { %v168_v50 = vld [vmem:[#allocation0 + $0x8] sm:$0x1] }
  0xab   :  { %196 = vst [vmem:[%s335_s1 + $0x1] sm:$0x1] %v168_v50 }

// kernel: tile.18
= control target key start
LH: loop header
LB: loop body
LE: loop exit
PB: predicated region body
PF: predicated region fallthrough
CT: control target
= control target key end

     0   :  { %s22_s0 = inlined_call_operand.vmem [shape: f32[20], index: 0, kind: input, shape index: {}]   ;;  %s23_s1 = inlined_call_operand.vmem [shape: f32[8,20], index: 1, kind: output, shape index: {}]  }
   0x1   :  { %v4_v0 = vld [vmem:[%s22_s0] ss:$0 sm:$0xff] }
   0x2   :  { %5 = vst [vmem:[%s23_s1] sm:$0xff] %v4_v0 }

// kernel: tile.19
= control target key start
LH: loop header
LB: loop body
LE: loop exit
PB: predicated region body
PF: predicated region fallthrough
CT: control target
= control target key end

     0   :  { %vm9_vm0 = vcmask 64512   ;;  %s82_s12 = smov 120   ;;  %s83_s13 = smov 80   ;;  %vm3_vm1 = vcmask 162816   ;;  %vm13_vm2 = vcmask 97280   ;;  %vm16_vm3 = vcmask 1048512   ;;  %s132_s0 = inlined_call_operand.vmem [shape: f32[8,20], index: 0, kind: input, shape index: {}]   ;;  %s133_s1 = inlined_call_operand.vmem [shape: f32[1,160], index: 1, kind: output, shape index: {}]  }
   0x1   :  { %v66_v0 = vld [vmem:[%s132_s0 + $0x6] sm:$0x1]   ;;  %v69_v3 = vld [vmem:[%s132_s0 + $0x4] sm:$0x1]   ;;  %v68_v4 = vld [vmem:[%s132_s0 + $0x5] sm:$0x1]  }
   0x2   :  { %v67_v1 = vld [vmem:[%s132_s0 + $0x6] sm:$0x1]   ;;  %26 = vrot.lane.b32.xlu1 %v69_v3, %s83_s13  ;;  %v70_v5 = vld [vmem:[%s132_s0 + $0x3] sm:$0x1]   ;;  %v2_v6 = vld [vmem:[%s132_s0] sm:$0x1]  }
   0x3   :  { %v10_v2 = vsel %vm9_vm0, %v67_v1, %v66_v0  ;;  %4 = vst.msk [vmem:[#allocation0] sm:$0x1] %vm3_vm1, %v2_v6   ;;  %s84_s20 = smov 100   ;;  %s85_s21 = smov 60   ;;  %v71_v7 = vld [vmem:[%s132_s0 + $0x2] sm:$0x1]  }
   0x4   :  { %11 = vrot.lane.b32.xlu0 %v10_v2, %s82_s12  ;;  %v72_v8 = vld [vmem:[%s132_s0 + $0x1] sm:$0x1]   ;;  %s86_s26 = smov 40   ;;  %s87_s27 = smov 20   ;;  %v73_v9 = vld [vmem:[%s132_s0 + $0x7] sm:$0x1]  }
   0x5   :  { %s88_s0 = smov 12   ;;  %vm22_vm4 = vcmask 982816   ;;  %vm28_vm5 = vcmask 818816   ;;  %vm34_vm6 = vcmask 654816   ;;  %vm40_vm7 = vcmask 490816  }
   0x6   :  { %32 = vrot.lane.b32.xlu1 %v70_v5, %s85_s21  ;;  %vm46_vm8 = vcmask 326816   ;;  %vm52_vm9 = vcmask 261216  }
   0x8   :  { %20 = vrot.lane.b32.xlu0 %v68_v4, %s84_s20 }
   0xa   :  { %44 = vrot.lane.b32.xlu1 %v72_v8, %s87_s27 }
   0xc   :  { %38 = vrot.lane.b32.xlu0 %v71_v7, %s86_s26 }
  0x10   :  { %50 = vrot.lane.b32.xlu0 %v73_v9, %s88_s0 }
  0x74   :  { %v27_v11 = vpop.permute.xlu1 %26  }
  0x76   :  { %v12_v10 = vpop.permute.xlu0 %11  }
  0x77   :  { %15 = vst.msk [vmem:[#allocation0 + $0x8] sm:$0x1] %vm13_vm2, %v12_v10  }
  0x78   :  { %17 = vst.msk [vmem:[#allocation0] sm:$0x1] %vm16_vm3, %v12_v10   ;;  %v33_v13 = vpop.permute.xlu1 %32  }
  0x7a   :  { %v21_v12 = vpop.permute.xlu0 %20  }
  0x7b   :  { %23 = vst.msk [vmem:[#allocation0] sm:$0x1] %vm22_vm4, %v21_v12  }
  0x7c   :  { %29 = vst.msk [vmem:[#allocation0] sm:$0x1] %vm28_vm5, %v27_v11   ;;  %v45_v15 = vpop.permute.xlu1 %44  }
  0x7d   :  { %35 = vst.msk [vmem:[#allocation0] sm:$0x1] %vm34_vm6, %v33_v13  }
  0x7e   :  { %v39_v14 = vpop.permute.xlu0 %38  }
  0x7f   :  { %41 = vst.msk [vmem:[#allocation0] sm:$0x1] %vm40_vm7, %v39_v14  }
  0x80   :  { %47 = vst.msk [vmem:[#allocation0] sm:$0x1] %vm46_vm8, %v45_v15  }
  0x82   :  { %v51_v16 = vpop.permute.xlu0 %50  }
  0x83   :  { %54 = vst.msk [vmem:[#allocation0 + $0x8] sm:$0x1] %vm52_vm9, %v51_v16  }
  0x87   :  { %v58_v17 = vld [vmem:[#allocation0] sm:$0x1] }
  0x88   :  { %60 = vst [vmem:[%s133_s1] sm:$0x1] %v58_v17 }
  0x8a   :  { %v62_v18 = vld [vmem:[#allocation0 + $0x8] sm:$0x1] }
  0x8b   :  { %74 = vst [vmem:[%s133_s1 + $0x1] sm:$0x1] %v62_v18 }

// kernel: autoencoder_forward.2
= control target key start
LH: loop header
LB: loop body
LE: loop exit
PB: predicated region body
PF: predicated region fallthrough
CT: control target
= control target key end

     0   :  { %v2001_v43 = vmov 1983009808   ;;  %v160_v45 = vlaneseq  ;;  %s2935_s0 = inlined_call_operand.vmem [shape: f32[2,784], index: 0, kind: input, shape index: {}]   ;;  %s2936_s1 = inlined_call_operand.vmem [shape: f32[784,128], index: 1, kind: input, shape index: {}]   ;;  %s2937_s2 = inlined_call_operand.vmem [shape: f32[1,128], index: 2, kind: input, shape index: {}]   ;;  %s2938_s3 = inlined_call_operand.vmem [shape: f32[128,64], index: 3, kind: input, shape index: {}]   ;;  %s2939_s4 = inlined_call_operand.vmem [shape: f32[1,64], index: 4, kind: input, shape index: {}]   ;;  %s2940_s5 = inlined_call_operand.vmem [shape: f32[64,12], index: 5, kind: input, shape index: {}]   ;;  %s2941_s6 = inlined_call_operand.vmem [shape: f32[1,12], index: 6, kind: input, shape index: {}]   ;;  %s2942_s7 = inlined_call_operand.vmem [shape: f32[12,64], index: 7, kind: input, shape index: {}]   ;;  %s2943_s8 = inlined_call_operand.vmem [shape: f32[1,64], index: 8, kind: input, shape index: {}]   ;;  %s2944_s9 = inlined_call_operand.vmem [shape: f32[64,128], index: 9, kind: input, shape index: {}]   ;;  %s2945_s10 = inlined_call_operand.vmem [shape: f32[1,128], index: 10, kind: input, shape index: {}]   ;;  %s2946_s11 = inlined_call_operand.vmem [shape: f32[128,784], index: 11, kind: input, shape index: {}]   ;;  %s2947_s12 = inlined_call_operand.vmem [shape: f32[1,784], index: 12, kind: input, shape index: {}]   ;;  %s2948_s13 = inlined_call_operand.hbm [shape: f32[2,12], index: 13, kind: output, shape index: {0}]   ;;  %s2949_s14 = inlined_call_operand.vmem [shape: f32[2,784], index: 14, kind: output, shape index: {1}]  }
   0x1   :  { %v65_v0 = vld [vmem:[%s2936_s1 + $0x80] sm:$0xff]  ;;  %v66_v1 = vld [vmem:[%s2936_s1 + $0x88] sm:$0xff]  ;;  %v67_v11 = vld [vmem:[%s2936_s1 + $0x90] sm:$0xff]  ;;  %v158_v44 = vunpack.c.l.s4 %v2001_v43 }
   0x2   :  { %v49_v2 = vld [vmem:[%s2936_s1] sm:$0xff]  ;;  %v1670_v3 = vpack.c.bf16 %v66_v1, %v65_v0  ;;  %v50_v4 = vld [vmem:[%s2936_s1 + $0x8] sm:$0xff]  ;;  %v68_v13 = vld [vmem:[%s2936_s1 + $0x98] sm:$0xff]  ;;  %v2199_v60 = vshrl.u32 %v160_v45, 7 }
   0x3   :  { %v97_v5 = vld [vmem:[%s2936_s1 + $0x180] sm:$0xff]  ;;  %v98_v6 = vld [vmem:[%s2936_s1 + $0x188] sm:$0xff]  ;;  %v1672_v7 = vpack.c.bf16 %v50_v4, %v49_v2  ;;  %v51_v14 = vld [vmem:[%s2936_s1 + $0x10] sm:$0xff]  ;;  %v1674_v16 = vpack.c.bf16 %v68_v13, %v67_v11  ;;  %v159_v59 = vunpack.c.0.s8 %v158_v44 }
   0x4   :  { %v1702_v8 = vpack.c.bf16 %v98_v6, %v97_v5  ;;  %v81_v9 = vld [vmem:[%s2936_s1 + $0x100] sm:$0xff]  ;;  %v82_v10 = vld [vmem:[%s2936_s1 + $0x108] sm:$0xff]  ;;  %1671 = vmatprep.subr.bf16.mxu0 %v1670_v3  ;;  %v52_v15 = vld [vmem:[%s2936_s1 + $0x18] sm:$0xff] }
   0x5   :  { %v1704_v12 = vpack.c.bf16 %v82_v10, %v81_v9  ;;  %1673 = vmatpush3.bf16.msra.mxu0 %v1672_v7  ;;  %v1676_v17 = vpack.c.bf16 %v52_v15, %v51_v14  ;;  %v99_v18 = vld [vmem:[%s2936_s1 + $0x190] sm:$0xff]  ;;  %v100_v19 = vld [vmem:[%s2936_s1 + $0x198] sm:$0xff]  ;;  %v69_v23 = vld [vmem:[%s2936_s1 + $0xa0] sm:$0xff]  ;;  %v2229_v10 = vsub.s32 %v159_v59, %v2199_v60 }
   0x6   :  { %1703 = vmatprep.subr.bf16.mxu1 %v1702_v8  ;;  %v83_v20 = vld [vmem:[%s2936_s1 + $0x110] sm:$0xff]  ;;  %v1706_v21 = vpack.c.bf16 %v100_v19, %v99_v18  ;;  %v84_v22 = vld [vmem:[%s2936_s1 + $0x118] sm:$0xff]  ;;  %v70_v24 = vld [vmem:[%s2936_s1 + $0xa8] sm:$0xff]  ;;  %1675 = vmatprep.subr.bf16.mxu0 %v1674_v16 }
   0x7   :  { %1705 = vmatpush3.bf16.msra.mxu1 %v1704_v12  ;;  %v1708_v25 = vpack.c.bf16 %v84_v22, %v83_v20  ;;  %v1678_v26 = vpack.c.bf16 %v70_v24, %v69_v23  ;;  %v53_v27 = vld [vmem:[%s2936_s1 + $0x20] sm:$0xff]  ;;  %v54_v28 = vld [vmem:[%s2936_s1 + $0x28] sm:$0xff]  ;;  %v71_v35 = vld [vmem:[%s2936_s1 + $0xb0] sm:$0xff] }
   0x8   :  { %v101_v29 = vld [vmem:[%s2936_s1 + $0x1a0] sm:$0xff]  ;;  %1707 = vmatprep.subr.bf16.mxu1 %v1706_v21  ;;  %v102_v30 = vld [vmem:[%s2936_s1 + $0x1a8] sm:$0xff]  ;;  %v1680_v33 = vpack.c.bf16 %v54_v28, %v53_v27  ;;  %v72_v36 = vld [vmem:[%s2936_s1 + $0xb8] sm:$0xff] }
   0x9   :  { %v85_v31 = vld [vmem:[%s2936_s1 + $0x120] sm:$0xff]  ;;  %v86_v32 = vld [vmem:[%s2936_s1 + $0x128] sm:$0xff]  ;;  %1677 = vmatpush3.bf16.msra.mxu0 %v1676_v17  ;;  %v1710_v34 = vpack.c.bf16 %v102_v30, %v101_v29  ;;  %v55_v37 = vld [vmem:[%s2936_s1 + $0x30] sm:$0xff]  ;;  %v1682_v39 = vpack.c.bf16 %v72_v36, %v71_v35 }
   0xa   :  { %1679 = vmatprep.subr.bf16.mxu0 %v1678_v26  ;;  %v1712_v38 = vpack.c.bf16 %v86_v32, %v85_v31  ;;  %v56_v40 = vld [vmem:[%s2936_s1 + $0x38] sm:$0xff]  ;;  %v103_v41 = vld [vmem:[%s2936_s1 + $0x1b0] sm:$0xff]  ;;  %v73_v49 = vld [vmem:[%s2936_s1 + $0xc0] sm:$0xff] }
   0xb   :  { %1709 = vmatpush3.bf16.msra.mxu1 %v1708_v25  ;;  %v104_v42 = vld [vmem:[%s2936_s1 + $0x1b8] sm:$0xff]  ;;  %v87_v47 = vld [vmem:[%s2936_s1 + $0x130] sm:$0xff]  ;;  %v74_v50 = vld [vmem:[%s2936_s1 + $0xc8] sm:$0xff]  ;;  %v1684_v51 = vpack.c.bf16 %v56_v40, %v55_v37 }
   0xc   :  { %1711 = vmatprep.subr.bf16.mxu1 %v1710_v34  ;;  %v1714_v46 = vpack.c.bf16 %v104_v42, %v103_v41  ;;  %v88_v48 = vld [vmem:[%s2936_s1 + $0x138] sm:$0xff]  ;;  %v105_v52 = vld [vmem:[%s2936_s1 + $0x1c0] sm:$0xff]  ;;  %v106_v53 = vld [vmem:[%s2936_s1 + $0x1c8] sm:$0xff]  ;;  %v1686_v55 = vpack.c.bf16 %v74_v50, %v73_v49 }
   0xd   :  { %1681 = vmatpush3.bf16.msra.mxu0 %v1680_v33  ;;  %v1716_v54 = vpack.c.bf16 %v88_v48, %v87_v47  ;;  %v57_v56 = vld [vmem:[%s2936_s1 + $0x40] sm:$0xff]  ;;  %v58_v57 = vld [vmem:[%s2936_s1 + $0x48] sm:$0xff]  ;;  %v1718_v61 = vpack.c.bf16 %v106_v53, %v105_v52  ;;  %v75_v63 = vld [vmem:[%s2936_s1 + $0xd0] sm:$0xff] }
   0xe   :  { %1683 = vmatprep.subr.bf16.mxu0 %v1682_v39  ;;  %v89_v58 = vld [vmem:[%s2936_s1 + $0x140] sm:$0xff]  ;;  %v90_v62 = vld [vmem:[%s2936_s1 + $0x148] sm:$0xff]  ;;  %v76_v0 = vld [vmem:[%s2936_s1 + $0xd8] sm:$0xff]  ;;  %v1688_v3 = vpack.c.bf16 %v58_v57, %v57_v56 }
   0xf   :  { %1713 = vmatpush3.bf16.msra.mxu1 %v1712_v38  ;;  %v107_v1 = vld [vmem:[%s2936_s1 + $0x1d0] sm:$0xff]  ;;  %v108_v2 = vld [vmem:[%s2936_s1 + $0x1d8] sm:$0xff]  ;;  %v1720_v5 = vpack.c.bf16 %v90_v62, %v89_v58  ;;  %v1690_v6 = vpack.c.bf16 %v76_v0, %v75_v63  ;;  %v77_v12 = vld [vmem:[%s2936_s1 + $0xe0] sm:$0xff] }
  0x10   :  { %1715 = vmatprep.subr.bf16.mxu1 %v1714_v46  ;;  %v59_v4 = vld [vmem:[%s2936_s1 + $0x50] sm:$0xff]  ;;  %v60_v7 = vld [vmem:[%s2936_s1 + $0x58] sm:$0xff]  ;;  %v1722_v11 = vpack.c.bf16 %v108_v2, %v107_v1  ;;  %v78_v13 = vld [vmem:[%s2936_s1 + $0xe8] sm:$0xff] }
  0x11   :  { %1685 = vmatpush3.bf16.msra.mxu0 %v1684_v51  ;;  %v91_v8 = vld [vmem:[%s2936_s1 + $0x150] sm:$0xff]  ;;  %v92_v9 = vld [vmem:[%s2936_s1 + $0x158] sm:$0xff]  ;;  %v109_v14 = vld [vmem:[%s2936_s1 + $0x1e0] sm:$0xff]  ;;  %v1692_v16 = vpack.c.bf16 %v60_v7, %v59_v4  ;;  %v1694_v19 = vpack.c.bf16 %v78_v13, %v77_v12 }
  0x12   :  { %1687 = vmatprep.subr.bf16.mxu0 %v1686_v55  ;;  %v110_v15 = vld [vmem:[%s2936_s1 + $0x1e8] sm:$0xff]  ;;  %v1724_v17 = vpack.c.bf16 %v92_v9, %v91_v8  ;;  %v47_v18 = vld [vmem:[%s2935_s0] sm:$0xff]  ;;  %v79_v27 = vld [vmem:[%s2936_s1 + $0xf0] sm:$0xff] }
  0x13   :  { %1717 = vmatpush3.bf16.msra.mxu1 %v1716_v54  ;;  %v61_v20 = vld [vmem:[%s2936_s1 + $0x60] sm:$0xff]  ;;  %v62_v21 = vld [vmem:[%s2936_s1 + $0x68] sm:$0xff]  ;;  %v163_v23 = vrot.slane %v47_v18, %v2229_v10  ;;  %v156_v24 = vcombine.high %v47_v18, %v47_v18  ;;  %v1726_v25 = vpack.c.bf16 %v110_v15, %v109_v14  ;;  %v80_v28 = vld [vmem:[%s2936_s1 + $0xf8] sm:$0xff] }
  0x14   :  { %1719 = vmatprep.subr.bf16.mxu1 %v1718_v61  ;;  %v93_v22 = vld [vmem:[%s2936_s1 + $0x160] sm:$0xff]  ;;  %v94_v26 = vld [vmem:[%s2936_s1 + $0x168] sm:$0xff]  ;;  %v111_v29 = vld [vmem:[%s2936_s1 + $0x1f0] sm:$0xff]  ;;  %v1696_v33 = vpack.c.bf16 %v62_v21, %v61_v20  ;;  %v1698_v35 = vpack.c.bf16 %v80_v28, %v79_v27 }
  0x15   :  { %1689 = vmatpush3.bf16.msra.mxu0 %v1688_v3  ;;  %v112_v30 = vld [vmem:[%s2936_s1 + $0x1f8] sm:$0xff]  ;;  %v171_v31 = vcombine.high %v163_v23, %v163_v23  ;;  %v170_v32 = vrot.slane %v156_v24, %v2229_v10  ;;  %v1728_v34 = vpack.c.bf16 %v94_v26, %v93_v22  ;;  %v63_v36 = vld [vmem:[%s2936_s1 + $0x70] sm:$0xff]  ;;  %v129_v42 = vld [vmem:[%s2936_s1 + $0x280] sm:$0xff] }
  0x16   :  { %1691 = vmatprep.subr.bf16.mxu0 %v1690_v6  ;;  %v64_v37 = vld [vmem:[%s2936_s1 + $0x78] sm:$0xff]  ;;  %v95_v38 = vld [vmem:[%s2936_s1 + $0x170] sm:$0xff]  ;;  %v1730_v40 = vpack.c.bf16 %v112_v30, %v111_v29  ;;  %v130_v43 = vld [vmem:[%s2936_s1 + $0x288] sm:$0xff] }
  0x17   :  { %1721 = vmatpush3.bf16.msra.mxu1 %v1720_v5  ;;  %v172_v39 = vcombine.high %v170_v32, %v170_v32  ;;  %262 = vmatprep.mubr.f32.mxu0 %v171_v31  ;;  %v96_v41 = vld [vmem:[%s2936_s1 + $0x178] sm:$0xff]  ;;  %v1700_v44 = vpack.c.bf16 %v64_v37, %v63_v36  ;;  %v1734_v46 = vpack.c.bf16 %v130_v43, %v129_v42  ;;  %v113_v47 = vld [vmem:[%s2936_s1 + $0x200] sm:$0xff]  ;;  %v114_v48 = vld [vmem:[%s2936_s1 + $0x208] sm:$0xff] }
  0x18   :  { %1723 = vmatprep.subr.bf16.mxu1 %v1722_v11  ;;  %v1732_v45 = vpack.c.bf16 %v96_v41, %v95_v38  ;;  %v131_v49 = vld [vmem:[%s2936_s1 + $0x290] sm:$0xff]  ;;  %v132_v50 = vld [vmem:[%s2936_s1 + $0x298] sm:$0xff]  ;;  %v1736_v51 = vpack.c.bf16 %v114_v48, %v113_v47  ;;  %v2305_v52 = vld [vmem:[%s2935_s0 + $0x8] sm:$0x3f] }
  0x19   :  { %1693 = vmatpush3.bf16.msra.mxu0 %v1692_v16  ;;  %332 = vmatprep.mubr.f32.mxu1 %v172_v39  ;;  %v1738_v53 = vpack.c.bf16 %v132_v50, %v131_v49  ;;  %v115_v54 = vld [vmem:[%s2936_s1 + $0x210] sm:$0xff]  ;;  %v116_v55 = vld [vmem:[%s2936_s1 + $0x218] sm:$0xff]  ;;  %v2315_v56 = vrot.slane %v2305_v52, %v2229_v10 }
  0x1a   :  { %1695 = vmatprep.subr.bf16.mxu0 %v1694_v19 }
  0x1b   :  { %1725 = vmatpush3.bf16.msra.mxu1 %v1724_v17 }
  0x1c   :  { %1727 = vmatprep.subr.bf16.mxu1 %v1726_v25 }
  0x1d   :  { %1697 = vmatpush3.bf16.msra.mxu0 %v1696_v33 }
  0x1e   :  { %1699 = vmatprep.subr.bf16.mxu0 %v1698_v35 }
  0x1f   :  { %1729 = vmatpush3.bf16.msra.mxu1 %v1728_v34 }
  0x20   :  { %1731 = vmatprep.subr.bf16.mxu1 %v1730_v40 }
  0x21   :  { %1701 = vmatpush3.bf16.msra.mxu0 %v1700_v44 }
  0x22   :  { %1735 = vmatprep.subr.bf16.mxu0 %v1734_v46 }
  0x23   :  { %1733 = vmatpush3.bf16.msra.mxu1 %v1732_v45 }
  0x24   :  { %20 = vsyncpa [#allocation3], 0  ;;  %v133_v57 = vld [vmem:[%s2936_s1 + $0x2a0] sm:$0xff]  ;;  %v134_v58 = vld [vmem:[%s2936_s1 + $0x2a8] sm:$0xff]  ;;  %v2002_v59 = vmov 0.0|0.0   ;;  %263 = vmatmul.mubr.f32.vlgmr.msra.gmra.mrb[0].mxu0 %v163_v23  ;;  %v188_v61 = vcombine.high %v2315_v56, %v2315_v56  ;;  %v1740_v62 = vpack.c.bf16 %v116_v55, %v115_v54  ;;  %vm2003_vm0 = vmmov 0  }
  0x25   :  { %1769 = vmatprep.subr.bf16.mxu1 %v2002_v59  ;;  %1737 = vmatpush3.bf16.msra.mxu0 %v1736_v51  ;;  %v1742_v63 = vpack.c.bf16 %v134_v58, %v133_v57  ;;  %v117_v0 = vld [vmem:[%s2936_s1 + $0x220] sm:$0xff]  ;;  %v118_v1 = vld [vmem:[%s2936_s1 + $0x228] sm:$0xff]  ;;  %v135_v2 = vld [vmem:[%s2936_s1 + $0x2b0] sm:$0xff]  ;;  %v2004_v4 = vmov 0.0   ;;  %v173_v37 = vcombine.high %v2305_v52, %v2305_v52  ;;  %vm195_vm1 = vcmask 130048   ;;  %s2006_s22 = smov [#allocation2]  }
  0x26   :  { %333 = vmatmul.mubr.f32.vlgmr.msra.gmra.mrb[0].mxu1 %v170_v32  ;;  %1739 = vmatprep.subr.bf16.mxu0 %v1738_v53  ;;  %v136_v3 = vld [vmem:[%s2936_s1 + $0x2b8] sm:$0xff]  ;;  %v1744_v5 = vpack.c.bf16 %v118_v1, %v117_v0  ;;  %v119_v7 = vld [vmem:[%s2936_s1 + $0x230] sm:$0xff]  ;;  %v137_v9 = vld [vmem:[%s2936_s1 + $0x2c0] sm:$0xff]  ;;  %vm677_vm2 = vcmask 1043456   ;;  %vm2005_vm3 = vmmov 1   ;;  %vm588_vm5 = vcmask 523264  }
  0x27   :  { %402 = vmatprep.mubr.f32.mxu0 %v188_v61  ;;  %1587 = vmatprep.mubr.msk.f32.mxu1 %vm2003_vm0, %v2004_v4  ;;  %v1746_v6 = vpack.c.bf16 %v136_v3, %v135_v2  ;;  %v120_v8 = vld [vmem:[%s2936_s1 + $0x238] sm:$0xff]  ;;  %v138_v11 = vld [vmem:[%s2936_s1 + $0x2c8] sm:$0xff]  ;;  %v121_v14 = vld [vmem:[%s2936_s1 + $0x240] sm:$0xff]  ;;  %v187_v39 = vrot.slane %v173_v37, %v2229_v10  ;;  %vm673_vm6 = vcmask 97280   ;;  %vm662_vm7 = vcmask 91136   ;;  %s1363_s23 = sshll.u32 %s2006_s22, 4  ;;  %s1364_s23 = int_to_ptr.vmem [resolvable:$true] %s1363_s23 }
  0x28   :  { %v1748_v12 = vpack.c.bf16 %v120_v8, %v119_v7  ;;  %v1750_v13 = vpack.c.bf16 %v138_v11, %v137_v9  ;;  %v122_v15 = vld [vmem:[%s2936_s1 + $0x248] sm:$0xff]  ;;  %v139_v16 = vld [vmem:[%s2936_s1 + $0x2d0] sm:$0xff]  ;;  %v140_v17 = vld [vmem:[%s2936_s1 + $0x2d8] sm:$0xff]  ;;  %p1982_p1 = scmp.lt.s32.totalorder %s1364_s23, %s1364_s23 }
  0x29   :  { %1741 = vmatpush3.bf16.msra.mxu0 %v1740_v62  ;;  %v1752_v18 = vpack.c.bf16 %v122_v15, %v121_v14  ;;  %v1754_v19 = vpack.c.bf16 %v140_v17, %v139_v16  ;;  %v123_v20 = vld [vmem:[%s2936_s1 + $0x250] sm:$0xff]  ;;  %v124_v21 = vld [vmem:[%s2936_s1 + $0x258] sm:$0xff]  ;;  %v141_v22 = vld [vmem:[%s2936_s1 + $0x2e0] sm:$0xff] }
  0x2a   :  { %1743 = vmatprep.subr.bf16.mxu0 %v1742_v63  ;;  %v142_v23 = vld [vmem:[%s2936_s1 + $0x2e8] sm:$0xff]  ;;  %v1756_v24 = vpack.c.bf16 %v124_v21, %v123_v20  ;;  %v125_v26 = vld [vmem:[%s2936_s1 + $0x260] sm:$0xff]  ;;  %v143_v28 = vld [vmem:[%s2936_s1 + $0x2f0] sm:$0xff] }
  0x2b   :  { %v1758_v25 = vpack.c.bf16 %v142_v23, %v141_v22  ;;  %v126_v27 = vld [vmem:[%s2936_s1 + $0x268] sm:$0xff]  ;;  %v144_v29 = vld [vmem:[%s2936_s1 + $0x2f8] sm:$0xff]  ;;  %v127_v32 = vld [vmem:[%s2936_s1 + $0x270] sm:$0xff] }
  0x2c   :  { %v1760_v30 = vpack.c.bf16 %v126_v27, %v125_v26  ;;  %v1762_v31 = vpack.c.bf16 %v144_v29, %v143_v28  ;;  %v128_v33 = vld [vmem:[%s2936_s1 + $0x278] sm:$0xff]  ;;  %v145_v35 = vld [vmem:[%s2936_s1 + $0x300] sm:$0xff]  ;;  %v146_v36 = vld [vmem:[%s2936_s1 + $0x308] sm:$0xff] }
  0x2d   :  { %1745 = vmatpush3.bf16.msra.mxu0 %v1744_v5  ;;  %v1764_v34 = vpack.c.bf16 %v128_v33, %v127_v32  ;;  %v1767_v38 = vpack.c.bf16 %v146_v36, %v145_v35  ;;  %v479_v40 = vld [vmem:[%s2938_s3] sm:$0xff]  ;;  %v480_v41 = vld [vmem:[%s2938_s3 + $0x8] sm:$0xff]  ;;  %v481_v42 = vld [vmem:[%s2938_s3 + $0x10] sm:$0xff] }
  0x2e   :  { %1747 = vmatprep.subr.bf16.mxu0 %v1746_v6  ;;  %v1770_v43 = vpack.c.bf16 %v480_v41, %v479_v40  ;;  %v482_v44 = vld [vmem:[%s2938_s3 + $0x18] sm:$0xff]  ;;  %v483_v46 = vld [vmem:[%s2938_s3 + $0x20] sm:$0xff]  ;;  %v484_v47 = vld [vmem:[%s2938_s3 + $0x28] sm:$0xff] }
  0x2f   :  { %v1773_v45 = vpack.c.bf16 %v482_v44, %v481_v42  ;;  %v1776_v48 = vpack.c.bf16 %v484_v47, %v483_v46  ;;  %v485_v49 = vld [vmem:[%s2938_s3 + $0x30] sm:$0xff]  ;;  %v486_v50 = vld [vmem:[%s2938_s3 + $0x38] sm:$0xff]  ;;  %v487_v52 = vld [vmem:[%s2938_s3 + $0x40] sm:$0xff] }
  0x30   :  { %1771 = vmatpush3.bf16.msra.mxu1 %v1770_v43  ;;  %v1779_v51 = vpack.c.bf16 %v486_v50, %v485_v49  ;;  %v488_v53 = vld [vmem:[%s2938_s3 + $0x48] sm:$0xff]  ;;  %v489_v55 = vld [vmem:[%s2938_s3 + $0x50] sm:$0xff]  ;;  %v491_v58 = vld [vmem:[%s2938_s3 + $0x60] sm:$0xff] }
  0x31   :  { %1749 = vmatpush3.bf16.msra.mxu0 %v1748_v12  ;;  %1772 = vmatprep.subr.bf16.mxu1 %v2002_v59  ;;  %v1782_v54 = vpack.c.bf16 %v488_v53, %v487_v52  ;;  %v492_v61 = vld [vmem:[%s2938_s3 + $0x68] sm:$0xff]  ;;  %v493_v63 = vld [vmem:[%s2938_s3 + $0x70] sm:$0xff]  ;;  %v494_v0 = vld [vmem:[%s2938_s3 + $0x78] sm:$0xff] }
  0x32   :  { %1751 = vmatprep.subr.bf16.mxu0 %v1750_v13  ;;  %v1788_v62 = vpack.c.bf16 %v492_v61, %v491_v58  ;;  %v1791_v1 = vpack.c.bf16 %v494_v0, %v493_v63  ;;  %v573_v2 = vld [vmem:[%s2940_s5] sm:$0xff]  ;;  %v574_v3 = vld [vmem:[%s2940_s5 + $0x8] sm:$0xff]  ;;  %v575_v5 = vld [vmem:[%s2940_s5 + $0x10] sm:$0xff] }
  0x33   :  { %v1794_v6 = vpack.c.bf16 %v574_v3, %v573_v2  ;;  %v576_v7 = vld [vmem:[%s2940_s5 + $0x18] sm:$0xff]  ;;  %v577_v9 = vld [vmem:[%s2940_s5 + $0x20] sm:$0xff]  ;;  %v578_v11 = vld [vmem:[%s2940_s5 + $0x28] sm:$0xff] }
  0x34   :  { %1774 = vmatpush3.bf16.msra.mxu1 %v1773_v45  ;;  %v1797_v8 = vpack.c.bf16 %v576_v7, %v575_v5  ;;  %v1800_v12 = vpack.c.bf16 %v578_v11, %v577_v9  ;;  %v1375_v14 = vld [vmem:[%s2937_s2] ss:$0 sm:$0xff]  ;;  %vm1807_vm4 = vmpackc.low %vm677_vm2, %vm2005_vm3  ;;  %v753_v42 = vld [vmem:[%s2944_s9 + $0x8] sm:$0xff] }
  0x35   :  { %1753 = vmatpush3.bf16.msra.mxu0 %v1752_v18  ;;  %1775 = vmatprep.subr.bf16.mxu1 %v2002_v59  ;;  %v664_v33 = vld [vmem:[%s2942_s7] sm:$0xff]  ;;  %v755_v49 = vld [vmem:[%s2944_s9 + $0x18] sm:$0xff]  ;;  %v757_v52 = vld [vmem:[%s2944_s9 + $0x28] sm:$0xff] }
  0x36   :  { %1755 = vmatprep.subr.bf16.mxu0 %v1754_v19  ;;  %v1377_v36 = vld [vmem:[%s2939_s4] ss:$0 sm:$0xff]  ;;  %v844_v61 = vld [vmem:[%s2946_s11 + $0x18] sm:$0xff]  ;;  %v851_v63 = vld [vmem:[%s2946_s11 + $0x50] sm:$0xff] }
  0x37   :  { %v752_v41 = vld [vmem:[%s2944_s9] sm:$0xff]  ;;  %v1853_v2 = vpack.c.bf16 %v851_v63, %v844_v61  ;;  %v856_v5 = vld [vmem:[%s2946_s11 + $0x78] sm:$0xff]  ;;  %v862_v9 = vld [vmem:[%s2946_s11 + $0xa8] sm:$0xff] }
  0x38   :  { %1777 = vmatpush3.bf16.msra.mxu1 %v1776_v48  ;;  %v1378_v43 = vld [vmem:[%s2941_s6] ss:$0 sm:$0xff]  ;;  %v1810_v45 = vpack.c.bf16 %v753_v42, %v752_v41  ;;  %v754_v48 = vld [vmem:[%s2944_s9 + $0x10] sm:$0xff]  ;;  %v886_v63 = vld [vmem:[%s2946_s11 + $0x168] sm:$0xff] }
  0x39   :  { %1757 = vmatpush3.bf16.msra.mxu0 %v1756_v24  ;;  %1778 = vmatprep.subr.bf16.mxu1 %v2002_v59  ;;  %v1813_v50 = vpack.c.bf16 %v755_v49, %v754_v48  ;;  %v849_v58 = vld [vmem:[%s2946_s11 + $0x40] sm:$0xff]  ;;  %v871_v61 = vld [vmem:[%s2946_s11 + $0xf0] sm:$0xff] }
  0x3a   :  { %1759 = vmatprep.subr.bf16.mxu0 %v1758_v25  ;;  %v841_v0 = vld [vmem:[%s2946_s11] sm:$0xff] }
  0x3b   :  { %v1380_v42 = vld [vmem:[%s2943_s8] ss:$0 sm:$0xff]  ;;  %s1977_s8 = scalar_lea.vmem %s1364_s23, 32 }
  0x3c   :  { %1780 = vmatpush3.bf16.msra.mxu1 %v1779_v51  ;;  %v756_v51 = vld [vmem:[%s2944_s9 + $0x20] sm:$0xff]  ;;  %p1978_p0 = scmp.ne.s32.totalorder %s1364_s23, %s1977_s8  ;;  %p1983_p2 = scmp.lt.s32.totalorder %s1977_s8, %s1977_s8 }
  0x3d   :  { %1761 = vmatpush3.bf16.msra.mxu0 %v1760_v30  ;;  %1781 = vmatprep.subr.bf16.mxu1 %v2002_v59  ;;  %v579_v30 = vld [vmem:[%s2940_s5 + $0x30] sm:$0xff]  ;;  %v1816_v53 = vpack.c.bf16 %v757_v52, %v756_v51 }
  0x3e   :  { %1763 = vmatprep.subr.bf16.mxu0 %v1762_v31  ;;  %v580_v31 = vld [vmem:[%s2940_s5 + $0x38] sm:$0xff]  ;;  %p1984_p3 = por %p1983_p2, %p1982_p1 }
  0x3f   :  { %v1803_v32 = vpack.c.bf16 %v580_v31, %v579_v30  ;;  %v912_v30 = vld [vmem:[%s2946_s11 + $0x238] sm:$0xff]  ;;  %v919_v31 = vld [vmem:[%s2946_s11 + $0x270] sm:$0xff] }
  0x40   :  { %1783 = vmatpush3.bf16.msra.mxu1 %v1782_v54  ;;  %v758_v54 = vld [vmem:[%s2944_s9 + $0x30] sm:$0xff]  ;;  %p1985_p4 = pnand %p1984_p3, %p1978_p0 }
  0x41   :  { %1765 = vmatpush3.bf16.msra.mxu0 %v1764_v34  ;;  %1784 = vmatprep.subr.bf16.mxu1 %v2002_v59  ;;  %v665_v34 = vld [vmem:[%s2942_s7 + $0x8] sm:$0xf] }
  0x42   :  { %1766 = vmatprep.subr.bf16.mxu0 %v2002_v59  ;;  %v1806_v35 = vpack.c.bf16 %v665_v34, %v664_v33  ;;  %v911_v33 = vld [vmem:[%s2946_s11 + $0x230] sm:$0xff]  ;;  %v918_v34 = vld [vmem:[%s2946_s11 + $0x268] sm:$0xff] }
  0x44   :  { %403 = vmatmul.mubr.f32.vlgmr.msra.gmra.mrb[2].mxu0 %v2315_v56  ;;  %v490_v56 = vld [vmem:[%s2938_s3 + $0x58] sm:$0xff] }
  0x45   :  { %1768 = vmatpush3.bf16.msra.mxu0 %v1767_v38  ;;  %1552 = vmatprep.mubr.msk.f32.mxu0 %vm2003_vm0, %v2004_v4  ;;  %v1785_v57 = vpack.c.bf16 %v490_v56, %v489_v55  ;;  %v759_v55 = vld [vmem:[%s2944_s9 + $0x38] sm:$0xff] }
  0x46   :  { %1793 = vmatprep.subr.bf16.mxu0 %v2002_v59  ;;  %v1819_v56 = vpack.c.bf16 %v759_v55, %v758_v54  ;;  %v864_v54 = vld [vmem:[%s2946_s11 + $0xb8] sm:$0xff] }
  0x47   :  { %1786 = vmatpush3.bf16.msra.mxu1 %v1785_v57  ;;  %v842_v57 = vld [vmem:[%s2946_s11 + $0x8] sm:$0xff]  ;;  %v872_v55 = vld [vmem:[%s2946_s11 + $0xf8] sm:$0xff] }
  0x48   :  { %1553 = vmatmul.mubr.msk.f32.vlgmr.msra.gmra.mrb[4].mxu0 %vm195_vm1, %v187_v39  ;;  %1787 = vmatprep.subr.bf16.mxu1 %v2002_v59 }
  0x49   :  { %1606 = vmatprep.mubr.msk.f32.mxu0 %vm2003_vm0, %v2004_v4  ;;  %1795 = vmatpush3.bf16.msra.mxu0 %v1794_v6  ;;  %v863_v6 = vld [vmem:[%s2946_s11 + $0xb0] sm:$0xff] }
  0x4a   :  { %1796 = vmatprep.subr.bf16.mxu0 %v2002_v59  ;;  %v1825_v7 = vpack.c.bf16 %v863_v6, %v856_v5  ;;  %v892_v5 = vld [vmem:[%s2946_s11 + $0x198] sm:$0xff] }
  0x4b   :  { %1789 = vmatpush3.bf16.msra.mxu1 %v1788_v62  ;;  %v1821_v62 = vpack.c.bf16 %v849_v58, %v842_v57  ;;  %v900_v6 = vld [vmem:[%s2946_s11 + $0x1d8] sm:$0xff] }
  0x4c   :  { %1790 = vmatprep.subr.bf16.mxu1 %v2002_v59 }
  0x4d   :  { %1798 = vmatpush3.bf16.msra.mxu0 %v1797_v8  ;;  %v855_v8 = vld [vmem:[%s2946_s11 + $0x70] sm:$0xff] }
  0x4e   :  { %1799 = vmatprep.subr.bf16.mxu0 %v2002_v59  ;;  %v1827_v11 = vpack.c.bf16 %v862_v9, %v855_v8 }
  0x4f   :  { %1792 = vmatpush3.bf16.msra.mxu1 %v1791_v1  ;;  %v848_v1 = vld [vmem:[%s2946_s11 + $0x38] sm:$0xff] }
  0x50   :  { %1805 = vmatprep.subr.bf16.mxu1 %v2002_v59  ;;  %v1823_v3 = vpack.c.bf16 %v848_v1, %v841_v0  ;;  %v893_v0 = vld [vmem:[%s2946_s11 + $0x1a0] sm:$0xff] }
  0x51   :  { %1801 = vmatpush3.bf16.msra.mxu0 %v1800_v12  ;;  %v870_v12 = vld [vmem:[%s2946_s11 + $0xe8] sm:$0xff] }
  0x52   :  { %1802 = vmatprep.subr.bf16.mxu0 %v2002_v59 }
  0x55   :  { %1804 = vmatpush3.bf16.msra.mxu0 %v1803_v32  ;;  %v1841_v32 = vpack.c.bf16 %v919_v31, %v912_v30  ;;  %v949_v30 = vld [vmem:[%s2946_s11 + $0x360] sm:$0xff]  ;;  %v939_v31 = vld [vmem:[%s2946_s11 + $0x310] sm:$0xff] }
  0x56   :  { %1822 = vmatprep.subr.bf16.mxu0 %v1821_v62  ;;  %v878_v62 = vld [vmem:[%s2946_s11 + $0x128] sm:$0xff] }
  0x57   :  { %v1863_v1 = vpack.c.bf16 %v878_v62, %v871_v61  ;;  %v874_v61 = vld [vmem:[%s2946_s11 + $0x108] sm:$0xff]  ;;  %v881_v62 = vld [vmem:[%s2946_s11 + $0x140] sm:$0xff] }
  0xf7   :  { %v1417_v13 = vpop.f32.mrb[0].mxu0 }
  0xf8   :  { %v1418_v15 = vpop.f32.mrb[1].mxu0 }
  0xf9   :  { %v1452_v16 = vpop.f32.mrb[0].mxu1  ;;  %v1419_v17 = vadd.f32 %v1418_v15, %v1417_v13  ;;  %v877_v13 = vld [vmem:[%s2946_s11 + $0x120] sm:$0xff] }
  0xfa   :  { %v1453_v18 = vpop.f32.mrb[1].mxu1  ;;  %v869_v15 = vld [vmem:[%s2946_s11 + $0xe0] sm:$0xff] }
  0xfb   :  { %v1454_v19 = vadd.f32 %v1453_v18, %v1452_v16  ;;  %v265_v20 = vadd.f32 %v1419_v17, %v1375_v14  ;;  %v1829_v14 = vpack.c.bf16 %v877_v13, %v870_v12  ;;  %v876_v16 = vld [vmem:[%s2946_s11 + $0x118] sm:$0xff]  ;;  %v906_v12 = vld [vmem:[%s2946_s11 + $0x208] sm:$0xff] }
  0xfc   :  { %v1831_v17 = vpack.c.bf16 %v876_v16, %v869_v15  ;;  %v884_v18 = vld [vmem:[%s2946_s11 + $0x158] sm:$0xff]  ;;  %v914_v13 = vld [vmem:[%s2946_s11 + $0x248] sm:$0xff] }
  0xfd   :  { %v335_v21 = vadd.f32 %v1454_v19, %v265_v20  ;;  %v891_v19 = vld [vmem:[%s2946_s11 + $0x190] sm:$0xff] }
  0xfe   :  { %v1833_v20 = vpack.c.bf16 %v891_v19, %v884_v18  ;;  %v920_v18 = vld [vmem:[%s2946_s11 + $0x278] sm:$0xff] }
  0xff   :  { %v928_v19 = vld [vmem:[%s2946_s11 + $0x2b8] sm:$0xff] }
 0x117   :  { %v1487_v22 = vpop.f32.mrb[2].mxu0 }
 0x118   :  { %v1488_v23 = vpop.f32.mrb[3].mxu0 }
 0x119   :  { %v1489_v24 = vadd.f32 %v1488_v23, %v1487_v22  ;;  %v890_v22 = vld [vmem:[%s2946_s11 + $0x188] sm:$0xff] }
 0x11b   :  { %v405_v25 = vadd.f32 %v1489_v24, %v335_v21  ;;  %v474_v26 = vpop.f32.mrb[4].mxu0  ;;  %v883_v21 = vld [vmem:[%s2946_s11 + $0x150] sm:$0xff]  ;;  %v898_v24 = vld [vmem:[%s2946_s11 + $0x1c8] sm:$0xff] }
 0x11c   :  { %v1554_v27 = vpop.f32.mrb[5].mxu0  ;;  %v1835_v23 = vpack.c.bf16 %v890_v22, %v883_v21 }
 0x11d   :  { %v475_v28 = vadd.f32 %v474_v26, %v405_v25  ;;  %v905_v25 = vld [vmem:[%s2946_s11 + $0x200] sm:$0xff] }
 0x11e   :  { %v1837_v26 = vpack.c.bf16 %v905_v25, %v898_v24  ;;  %v897_v27 = vld [vmem:[%s2946_s11 + $0x1c0] sm:$0xff]  ;;  %v934_v24 = vld [vmem:[%s2946_s11 + $0x2e8] sm:$0xff] }
 0x11f   :  { %v478_v29 = vmax.f32 %v475_v28, 0.0  ;;  %v904_v28 = vld [vmem:[%s2946_s11 + $0x1f8] sm:$0xff] }
 0x121   :  { %1588 = vmatmul.mubr.f32.vlgmr.msra.gmra.mrb[2].mxu1 %v478_v29  ;;  %v1839_v29 = vpack.c.bf16 %v904_v28, %v897_v27  ;;  %v947_v27 = vld [vmem:[%s2946_s11 + $0x350] sm:$0xff]  ;;  %v942_v28 = vld [vmem:[%s2946_s11 + $0x328] sm:$0xff] }
 0x122   :  { %1613 = vmatprep.mubr.msk.f32.mxu1 %vm2003_vm0, %v2004_v4  ;;  %1808 = vmatpush3.bf16.msk.msra.mxu1 %vm1807_vm4, %v1806_v35  ;;  %v1843_v35 = vpack.c.bf16 %v918_v34, %v911_v33  ;;  %v1881_v33 = vpack.c.bf16 %v949_v30, %v942_v28 }
 0x123   :  { %1809 = vmatprep.subr.bf16.mxu1 %v2002_v59 }
 0x1f4   :  { %v568_v37 = vpop.f32.mrb[2].mxu1 }
 0x1f5   :  { %v569_v38 = vadd.f32 %v1377_v36, %v568_v37  ;;  %v1589_v39 = vpop.f32.mrb[3].mxu1  ;;  %v926_v36 = vld [vmem:[%s2946_s11 + $0x2a8] sm:$0xff]  ;;  %v933_v37 = vld [vmem:[%s2946_s11 + $0x2e0] sm:$0xff] }
 0x1f6   :  { %v925_v39 = vld [vmem:[%s2946_s11 + $0x2a0] sm:$0xff] }
 0x1f7   :  { %v572_v40 = vmax.f32 %v569_v38, 0.0  ;;  %v1845_v38 = vpack.c.bf16 %v933_v37, %v926_v36  ;;  %v948_v36 = vld [vmem:[%s2946_s11 + $0x358] sm:$0xff] }
 0x1f9   :  { %1607 = vmatmul.mubr.msk.f32.vlgmr.msra.gmra.mrb[6].mxu0 %vm588_vm5, %v572_v40  ;;  %v932_v40 = vld [vmem:[%s2946_s11 + $0x2d8] sm:$0xff] }
 0x1fa   :  { %1054 = vmatprep.mubr.f32.mxu0 %v2004_v4  ;;  %1824 = vmatpush1.bf16.msra.mxu0 %v1823_v3  ;;  %v1847_v41 = vpack.c.bf16 %v932_v40, %v925_v39  ;;  %v885_v3 = vld [vmem:[%s2946_s11 + $0x160] sm:$0xff] }
 0x1fb   :  { %1826 = vmatprep.subr.bf16.mxu0 %v1825_v7  ;;  %v907_v7 = vld [vmem:[%s2946_s11 + $0x210] sm:$0xff]  ;;  %v1867_v8 = vpack.c.bf16 %v892_v5, %v885_v3  ;;  %v853_v39 = vld [vmem:[%s2946_s11 + $0x60] sm:$0xff]  ;;  %v880_v3 = vld [vmem:[%s2946_s11 + $0x138] sm:$0xff] }
 0x1fc   :  { %v1869_v9 = vpack.c.bf16 %v907_v7, %v900_v6  ;;  %v875_v5 = vld [vmem:[%s2946_s11 + $0x110] sm:$0xff]  ;;  %v882_v6 = vld [vmem:[%s2946_s11 + $0x148] sm:$0xff]  ;;  %v888_v7 = vld [vmem:[%s2946_s11 + $0x178] sm:$0xff] }
 0x1fe   :  { %1828 = vmatpush1.bf16.msra.mxu0 %v1827_v11  ;;  %v899_v11 = vld [vmem:[%s2946_s11 + $0x1d0] sm:$0xff] }
 0x1ff   :  { %1830 = vmatprep.subr.bf16.mxu0 %v1829_v14  ;;  %v921_v14 = vld [vmem:[%s2946_s11 + $0x280] sm:$0xff]  ;;  %v1871_v15 = vpack.c.bf16 %v906_v12, %v899_v11  ;;  %v1924_v11 = vpack.c.bf16 %v882_v6, %v875_v5  ;;  %v887_v12 = vld [vmem:[%s2946_s11 + $0x170] sm:$0xff] }
 0x200   :  { %v1873_v16 = vpack.c.bf16 %v921_v14, %v914_v13  ;;  %v894_v14 = vld [vmem:[%s2946_s11 + $0x1a8] sm:$0xff] }
 0x202   :  { %1832 = vmatpush1.bf16.msra.mxu0 %v1831_v17  ;;  %v913_v17 = vld [vmem:[%s2946_s11 + $0x240] sm:$0xff] }
 0x203   :  { %1834 = vmatprep.subr.bf16.mxu0 %v1833_v20  ;;  %v935_v20 = vld [vmem:[%s2946_s11 + $0x2f0] sm:$0xff]  ;;  %v1875_v21 = vpack.c.bf16 %v920_v18, %v913_v17  ;;  %v909_v17 = vld [vmem:[%s2946_s11 + $0x220] sm:$0xff]  ;;  %v1899_v18 = vpack.c.bf16 %v894_v14, %v887_v12 }
 0x204   :  { %v1877_v22 = vpack.c.bf16 %v935_v20, %v928_v19  ;;  %v901_v20 = vld [vmem:[%s2946_s11 + $0x1e0] sm:$0xff] }
 0x206   :  { %1836 = vmatpush1.bf16.msra.mxu0 %v1835_v23  ;;  %v927_v23 = vld [vmem:[%s2946_s11 + $0x2b0] sm:$0xff] }
 0x207   :  { %1838 = vmatprep.subr.bf16.mxu0 %v1837_v26  ;;  %v1879_v25 = vpack.c.bf16 %v934_v24, %v927_v23  ;;  %v940_v26 = vld [vmem:[%s2946_s11 + $0x318] sm:$0xff]  ;;  %v903_v23 = vld [vmem:[%s2946_s11 + $0x1f0] sm:$0xff]  ;;  %v910_v24 = vld [vmem:[%s2946_s11 + $0x228] sm:$0xff] }
 0x208   :  { %v1930_v28 = vpack.c.bf16 %v910_v24, %v903_v23 }
 0x20a   :  { %1840 = vmatpush1.bf16.msra.mxu0 %v1839_v29  ;;  %v1849_v29 = vpack.c.bf16 %v947_v27, %v940_v26  ;;  %v923_v26 = vld [vmem:[%s2946_s11 + $0x290] sm:$0xff] }
 0x20b   :  { %1842 = vmatprep.subr.bf16.mxu0 %v1841_v32  ;;  %v946_v32 = vld [vmem:[%s2946_s11 + $0x348] sm:$0xff] }
 0x20c   :  { %v1851_v34 = vpack.c.bf16 %v946_v32, %v939_v31  ;;  %v922_v31 = vld [vmem:[%s2946_s11 + $0x288] sm:$0xff]  ;;  %v917_v32 = vld [vmem:[%s2946_s11 + $0x260] sm:$0xff] }
 0x20e   :  { %1844 = vmatpush1.bf16.msra.mxu0 %v1843_v35  ;;  %v941_v35 = vld [vmem:[%s2946_s11 + $0x320] sm:$0xff] }
 0x20f   :  { %1846 = vmatprep.subr.bf16.mxu0 %v1845_v38  ;;  %v1883_v37 = vpack.c.bf16 %v948_v36, %v941_v35  ;;  %v846_v38 = vld [vmem:[%s2946_s11 + $0x28] sm:$0xff]  ;;  %v937_v35 = vld [vmem:[%s2946_s11 + $0x300] sm:$0xff] }
 0x210   :  { %v1885_v40 = vpack.c.bf16 %v853_v39, %v846_v38  ;;  %v929_v38 = vld [vmem:[%s2946_s11 + $0x2c0] sm:$0xff] }
 0x212   :  { %1848 = vmatpush1.bf16.msra.mxu0 %v1847_v41  ;;  %v1383_v41 = vld [vmem:[%s2945_s10] ss:$0 sm:$0xff] }
 0x213   :  { %1850 = vmatprep.subr.bf16.mxu0 %v1849_v29  ;;  %v915_v29 = vld [vmem:[%s2946_s11 + $0x250] sm:$0xff] }
 0x214   :  { %v1907_v36 = vpack.c.bf16 %v922_v31, %v915_v29 }
 0x216   :  { %1852 = vmatpush1.bf16.msra.mxu0 %v1851_v34  ;;  %v930_v34 = vld [vmem:[%s2946_s11 + $0x2c8] sm:$0xff] }
 0x217   :  { %1886 = vmatprep.subr.bf16.mxu0 %v1885_v40  ;;  %v1909_v39 = vpack.c.bf16 %v937_v35, %v930_v34  ;;  %v936_v40 = vld [vmem:[%s2946_s11 + $0x2f8] sm:$0xff] }
 0x2cc   :  { %v658_v44 = vpop.f32.mrb[6].mxu0 }
 0x2cd   :  { %v659_v46 = vadd.f32 %v1378_v43, %v658_v44  ;;  %v1608_v47 = vpop.f32.mrb[7].mxu0  ;;  %v843_v43 = vld [vmem:[%s2946_s11 + $0x10] sm:$0xff]  ;;  %v850_v44 = vld [vmem:[%s2946_s11 + $0x48] sm:$0xff] }
 0x2ce   :  { %v865_v47 = vld [vmem:[%s2946_s11 + $0xc0] sm:$0xff] }
 0x2cf   :  { %1614 = vmatmul.mubr.msk.f32.vlgmr.msra.gmra.mrb[4].mxu1 %vm673_vm6, %v659_v46  ;;  %663 = vst.msk [vmem:[#allocation2] sm:$0x3] %vm662_vm7, %v659_v46  ;;  %v858_v46 = vld [vmem:[%s2946_s11 + $0x88] sm:$0xff] }
 0x2d0   :  { %1811 = vmatpush3.bf16.msra.mxu1 %v1810_v45  ;;  %1632 = vmatprep.mubr.msk.f32.mxu1 %vm2003_vm0, %v2004_v4  ;;  %v1857_v52 = vpack.c.bf16 %v865_v47, %v858_v46  ;;  %v860_v47 = vld [vmem:[%s2946_s11 + $0x98] sm:$0xff] }
 0x2d1   :  { %1812 = vmatprep.subr.bf16.mxu1 %v2002_v59 }
 0x2d4   :  { %1814 = vmatpush3.bf16.msra.mxu1 %v1813_v50  ;;  %v1855_v50 = vpack.c.bf16 %v850_v44, %v843_v43  ;;  %v852_v43 = vld [vmem:[%s2946_s11 + $0x58] sm:$0xff]  ;;  %v847_v44 = vld [vmem:[%s2946_s11 + $0x30] sm:$0xff] }
 0x2d5   :  { %1815 = vmatprep.subr.bf16.mxu1 %v2002_v59 }
 0x2d8   :  { %1817 = vmatpush3.bf16.msra.mxu1 %v1816_v53  ;;  %v857_v53 = vld [vmem:[%s2946_s11 + $0x80] sm:$0xff] }
 0x2d9   :  { %1818 = vmatprep.subr.bf16.mxu1 %v2002_v59  ;;  %v1859_v57 = vpack.c.bf16 %v864_v54, %v857_v53  ;;  %v859_v53 = vld [vmem:[%s2946_s11 + $0x90] sm:$0xff] }
 0x2dc   :  { %1820 = vmatpush3.bf16.msra.mxu1 %v1819_v56  ;;  %v879_v56 = vld [vmem:[%s2946_s11 + $0x130] sm:$0xff] }
 0x2dd   :  { %1854 = vmatprep.subr.bf16.mxu1 %v1853_v2  ;;  %v1861_v58 = vpack.c.bf16 %v879_v56, %v872_v55  ;;  %v1865_v2 = vpack.c.bf16 %v893_v0, %v886_v63  ;;  %v866_v56 = vld [vmem:[%s2946_s11 + $0xc8] sm:$0xff] }
 0x2de   :  { %v1891_v63 = vpack.c.bf16 %v866_v56, %v859_v53 }
 0x3a2   :  { %v747_v45 = vpop.f32.mrb[4].mxu1 }
 0x3a3   :  { %v748_v48 = vadd.f32 %v1380_v42, %v747_v45  ;;  %v1615_v49 = vpop.f32.mrb[5].mxu1  ;;  %v845_v42 = vld [vmem:[%s2946_s11 + $0x20] sm:$0xff]  ;;  %v854_v45 = vld [vmem:[%s2946_s11 + $0x68] sm:$0xff] }
 0x3a5   :  { %v751_v51 = vmax.f32 %v748_v48, 0.0  ;;  %v867_v48 = vld [vmem:[%s2946_s11 + $0xd0] sm:$0xff] }
 0x3a6   :  { %v1889_v55 = vpack.c.bf16 %v867_v48, %v860_v47  ;;  %v943_v47 = vld [vmem:[%s2946_s11 + $0x330] sm:$0xff] }
 0x3a7   :  { %1633 = vmatmul.mubr.msk.f32.vlgmr.msra.gmra.mrb[6].mxu1 %vm588_vm5, %v751_v51  ;;  %v1887_v51 = vpack.c.bf16 %v852_v43, %v845_v42  ;;  %v938_v42 = vld [vmem:[%s2946_s11 + $0x308] sm:$0xff]  ;;  %v944_v43 = vld [vmem:[%s2946_s11 + $0x338] sm:$0xff] }
 0x3a8   :  { %1856 = vmatpush1.bf16.msra.mxu1 %v1855_v50  ;;  %1125 = vmatprep.mubr.f32.mxu1 %v2004_v4 }
 0x3a9   :  { %1858 = vmatprep.subr.bf16.mxu1 %v1857_v52  ;;  %v1918_v52 = vpack.c.bf16 %v854_v45, %v847_v44  ;;  %v951_v44 = vld [vmem:[%s2946_s11 + $0x370] sm:$0xff]  ;;  %v1911_v45 = vpack.c.bf16 %v936_v40, %v929_v38 }
 0x3aa   :  { %v1913_v48 = vpack.c.bf16 %v951_v44, %v944_v43 }
 0x3ac   :  { %1860 = vmatpush1.bf16.msra.mxu1 %v1859_v57  ;;  %v861_v57 = vld [vmem:[%s2946_s11 + $0xa0] sm:$0xff] }
 0x3ad   :  { %1862 = vmatprep.subr.bf16.mxu1 %v1861_v58  ;;  %v868_v58 = vld [vmem:[%s2946_s11 + $0xd8] sm:$0xff] }
 0x3ae   :  { %v1921_v0 = vpack.c.bf16 %v868_v58, %v861_v57 }
 0x3b0   :  { %1864 = vmatpush1.bf16.msra.mxu1 %v1863_v1  ;;  %v873_v1 = vld [vmem:[%s2946_s11 + $0x100] sm:$0xff] }
 0x3b1   :  { %1866 = vmatprep.subr.bf16.mxu1 %v1865_v2  ;;  %v1893_v2 = vpack.c.bf16 %v881_v62, %v874_v61 }
 0x3b4   :  { %1868 = vmatpush1.bf16.msra.mxu1 %v1867_v8  ;;  %v895_v8 = vld [vmem:[%s2946_s11 + $0x1b0] sm:$0xff] }
 0x3b5   :  { %1870 = vmatprep.subr.bf16.mxu1 %v1869_v9  ;;  %v1895_v9 = vpack.c.bf16 %v880_v3, %v873_v1  ;;  %v1897_v13 = vpack.c.bf16 %v895_v8, %v888_v7 }
 0x3b8   :  { %1872 = vmatpush1.bf16.msra.mxu1 %v1871_v15  ;;  %v896_v15 = vld [vmem:[%s2946_s11 + $0x1b8] sm:$0xff] }
 0x3b9   :  { %1874 = vmatprep.subr.bf16.mxu1 %v1873_v16  ;;  %v902_v16 = vld [vmem:[%s2946_s11 + $0x1e8] sm:$0xff] }
 0x3bc   :  { %1876 = vmatpush1.bf16.msra.mxu1 %v1875_v21  ;;  %v1901_v21 = vpack.c.bf16 %v909_v17, %v902_v16 }
 0x3bd   :  { %1878 = vmatprep.subr.bf16.mxu1 %v1877_v22  ;;  %v908_v22 = vld [vmem:[%s2946_s11 + $0x218] sm:$0xff] }
 0x3be   :  { %v1903_v27 = vpack.c.bf16 %v908_v22, %v901_v20 }
 0x3c0   :  { %1880 = vmatpush1.bf16.msra.mxu1 %v1879_v25  ;;  %v916_v25 = vld [vmem:[%s2946_s11 + $0x258] sm:$0xff] }
 0x3c1   :  { %1882 = vmatprep.subr.bf16.mxu1 %v1881_v33  ;;  %v1905_v30 = vpack.c.bf16 %v923_v26, %v916_v25  ;;  %v924_v33 = vld [vmem:[%s2946_s11 + $0x298] sm:$0xff] }
 0x3c4   :  { %1884 = vmatpush1.bf16.msra.mxu1 %v1883_v37  ;;  %v1933_v37 = vpack.c.bf16 %v924_v33, %v917_v32 }
 0x3c5   :  { %1917 = vmatprep.subr.bf16.mxu1 %v2002_v59 }
 0x47a   :  { %v836_v46 = vpop.f32.mrb[6].mxu1 }
 0x47b   :  { %v837_v49 = vadd.f32 %v1383_v41, %v836_v46  ;;  %v1634_v50 = vpop.f32.mrb[7].mxu1  ;;  %v931_v41 = vld [vmem:[%s2946_s11 + $0x2d0] sm:$0xff] }
 0x47c   :  { %v1936_v46 = vpack.c.bf16 %v938_v42, %v931_v41  ;;  %v945_v50 = vld [vmem:[%s2946_s11 + $0x340] sm:$0xff] }
 0x47d   :  { %v2770_v54 = vmax.f32 %v837_v49, 0.0  ;;  %v950_v49 = vld [vmem:[%s2946_s11 + $0x368] sm:$0xff] }
 0x47f   :  { %1055 = vmatmul.mubr.f32.vlgmr.msra.gmra.mrb[8].mxu0 %v2770_v54  ;;  %1126 = vmatmul.mubr.f32.vlgmr.msra.gmra.mrb[8].mxu1 %v2770_v54 }
 0x480   :  { %1888 = vmatpush1.bf16.msra.mxu0 %v1887_v51  ;;  %1919 = vmatpush3.bf16.msra.mxu1 %v1918_v52  ;;  %v952_v51 = vld [vmem:[%s2946_s11 + $0x378] sm:$0xff]  ;;  %v1915_v52 = vpack.c.bf16 %v950_v49, %v943_v47 }
 0x481   :  { %1890 = vmatprep.subr.bf16.mxu0 %v1889_v55  ;;  %1920 = vmatprep.subr.bf16.mxu1 %v2002_v59  ;;  %v1939_v53 = vpack.c.bf16 %v952_v51, %v945_v50 }
 0x482   :  { %1196 = vmatprep.mubr.f32.mxu0 %v2004_v4  ;;  %1667 = vmatprep.mubr.msk.f32.mxu1 %vm2003_vm0, %v2004_v4  ;;  %v889_v4 = vld [vmem:[%s2946_s11 + $0x180] sm:$0xff] }
 0x483   :  { %v1927_v19 = vpack.c.bf16 %v896_v15, %v889_v4 }
 0x484   :  { %1892 = vmatpush1.bf16.msra.mxu0 %v1891_v63  ;;  %1922 = vmatpush3.bf16.msra.mxu1 %v1921_v0 }
 0x485   :  { %1894 = vmatprep.subr.bf16.mxu0 %v1893_v2  ;;  %1923 = vmatprep.subr.bf16.mxu1 %v2002_v59 }
 0x488   :  { %1896 = vmatpush1.bf16.msra.mxu0 %v1895_v9  ;;  %1925 = vmatpush3.bf16.msra.mxu1 %v1924_v11 }
 0x489   :  { %1898 = vmatprep.subr.bf16.mxu0 %v1897_v13  ;;  %1926 = vmatprep.subr.bf16.mxu1 %v2002_v59 }
 0x48c   :  { %1900 = vmatpush1.bf16.msra.mxu0 %v1899_v18  ;;  %1928 = vmatpush3.bf16.msra.mxu1 %v1927_v19 }
 0x48d   :  { %1902 = vmatprep.subr.bf16.mxu0 %v1901_v21  ;;  %1929 = vmatprep.subr.bf16.mxu1 %v2002_v59 }
 0x490   :  { %1904 = vmatpush1.bf16.msra.mxu0 %v1903_v27  ;;  %1931 = vmatpush3.bf16.msra.mxu1 %v1930_v28 }
 0x491   :  { %1906 = vmatprep.subr.bf16.mxu0 %v1905_v30  ;;  %1932 = vmatprep.subr.bf16.mxu1 %v2002_v59 }
 0x494   :  { %1908 = vmatpush1.bf16.msra.mxu0 %v1907_v36  ;;  %1934 = vmatpush3.bf16.msra.mxu1 %v1933_v37 }
 0x495   :  { %1910 = vmatprep.subr.bf16.mxu0 %v1909_v39  ;;  %1935 = vmatprep.subr.bf16.mxu1 %v2002_v59 }
 0x498   :  { %1912 = vmatpush1.bf16.msra.mxu0 %v1911_v45  ;;  %1937 = vmatpush3.bf16.msra.mxu1 %v1936_v46 }
 0x499   :  { %1914 = vmatprep.subr.bf16.mxu0 %v1913_v48  ;;  %1938 = vmatprep.subr.bf16.mxu1 %v2002_v59 }
 0x49c   :  { %1916 = vmatpush1.bf16.msra.mxu0 %v1915_v52  ;;  %1940 = vmatpush3.bf16.msra.mxu1 %v1939_v53 }
 0x49f   :  { %1197 = vmatmul.mubr.f32.vlgmr.msra.gmra.mrb[10].mxu0 %v2770_v54  ;;  %1668 = vmatmul.mubr.f32.vlgmr.msra.gmra.mrb[10].mxu1 %v2770_v54 }
 0x4a0   :  { %1988 = shalt.err (!%p1985_p4)
}
 0x4a1   :  { %s1989_s2 = scalar_lea.hbm %s2948_s13, 32 }
 0x4a2   :  { %p1990_p5 = scmp.ne.s32.totalorder %s2948_s13, %s1989_s2  ;;  %p1993_p6 = scmp.lt.u32.totalorder %s1989_s2, %s2948_s13 }
 0x4a4   :  { %p1995_p7 = pnand %p1993_p6, %p1990_p5 }
 0x4a6   :  { %1998 = shalt.err (!%p1995_p7)
}
 0x4a7   :  { %1366 = dma.vmem_to_hbm [thread:$0]  %s1364_s23, 32, %s2948_s13, [#allocation3]   ;;  %v957_v59 = vsub.s32 0, %v2199_v60  ;;  %v965_v54 = vsub.s32 2, %v2199_v60  ;;  %v953_v55 = vld [vmem:[%s2947_s12] sm:$0x7f] }
 0x4a8   :  { %v961_v56 = vsub.s32 1, %v2199_v60  ;;  %v969_v57 = vsub.s32 3, %v2199_v60  ;;  %v973_v25 = vsub.s32 4, %v2199_v60  ;;  %v981_v26 = vsub.s32 6, %v2199_v60 }
 0x4a9   :  { %v958_v58 = vrot.slane %v953_v55, %v957_v59  ;;  %v966_v61 = vrot.slane %v953_v55, %v965_v54  ;;  %v977_v27 = vsub.s32 5, %v2199_v60  ;;  %vm1351_vm8 = vcmask 1041408  }
 0x4aa   :  { %v962_v62 = vrot.slane %v953_v55, %v961_v56  ;;  %v970_v63 = vrot.slane %v953_v55, %v969_v57  ;;  %v974_v28 = vrot.slane %v953_v55, %v973_v25  ;;  %v982_v29 = vrot.slane %v953_v55, %v981_v26 }
 0x4ab   :  { %v978_v31 = vrot.slane %v953_v55, %v977_v27  ;;  %vm1352_vm9 = vcmask 1043458   ;;  %vm1354_vm11 = vcmask 128004  }
 0x4ac   :  { %vm1353_vm10 = vmor %vm1352_vm9, %vm1351_vm8 }
 0x4ad   :  { %vm1355_vm12 = vmor %vm1354_vm11, %vm1353_vm10 }
 0x552   :  { %v1056_v0 = vpop.f32.mrb[8].mxu0  ;;  %v1127_v1 = vpop.f32.mrb[8].mxu1 }
 0x553   :  { %v1057_v2 = vadd.f32 %v1056_v0, %v958_v58  ;;  %v1128_v3 = vadd.f32 %v1127_v1, %v966_v61  ;;  %v1058_v5 = vpop.f32.mrb[9].mxu0  ;;  %v1129_v6 = vpop.f32.mrb[9].mxu1 }
 0x554   :  { %v1059_v7 = vadd.f32 %v1058_v5, %v962_v62  ;;  %v1130_v8 = vadd.f32 %v1129_v6, %v970_v63 }
 0x555   :  { %v1273_v9 = vsub.f32 0.0, %v1057_v2  ;;  %v1275_v11 = vsub.f32 0.0, %v1128_v3 }
 0x556   :  { %v1274_v12 = vsub.f32 0.0, %v1059_v7  ;;  %v1276_v13 = vsub.f32 0.0, %v1130_v8 }
 0x557   :  { %v1280_v14 = vmul.f32 1.442695, %v1273_v9  ;;  %v1284_v4 = vmul.f32 1.442695, %v1275_v11 }
 0x558   :  { %v1282_v15 = vmul.f32 1.442695, %v1274_v12  ;;  %v1286_v16 = vmul.f32 1.442695, %v1276_v13 }
 0x559   :  { %1949 = vpow2.f32 %v1280_v14 }
 0x55a   :  { %1951 = vpow2.f32 %v1284_v4 }
 0x55b   :  { %1953 = vpow2.f32 %v1282_v15 }
 0x55c   :  { %1955 = vpow2.f32 %v1286_v16 }
 0x563   :  { %v1950_v17 = vpop.eup %1949 }
 0x564   :  { %v1952_v18 = vpop.eup %1951  ;;  %v1294_v19 = vadd.f32 1.0, %v1950_v17 }
 0x565   :  { %v1954_v20 = vpop.eup %1953  ;;  %v1296_v21 = vadd.f32 1.0, %v1952_v18 }
 0x566   :  { %v1956_v22 = vpop.eup %1955  ;;  %1957 = vrcp.f32 %v1294_v19  ;;  %v1295_v23 = vadd.f32 1.0, %v1954_v20 }
 0x567   :  { %1959 = vrcp.f32 %v1296_v21  ;;  %v1297_v24 = vadd.f32 1.0, %v1956_v22 }
 0x568   :  { %1961 = vrcp.f32 %v1295_v23 }
 0x569   :  { %1963 = vrcp.f32 %v1297_v24 }
 0x570   :  { %v1958_v30 = vpop.eup %1957 }
 0x571   :  { %v1960_v32 = vpop.eup %1959 }
 0x572   :  { %v1962_v33 = vpop.eup %1961  ;;  %v1198_v34 = vpop.f32.mrb[10].mxu0 }
 0x573   :  { %v1269_v35 = vpop.f32.mrb[10].mxu1  ;;  %v1964_v36 = vpop.eup %1963  ;;  %v1315_v37 = vcombine.low %v1958_v30, %v1962_v33  ;;  %v1199_v38 = vadd.f32 %v1198_v34, %v974_v28 }
 0x574   :  { %v1270_v39 = vadd.f32 %v1269_v35, %v982_v29  ;;  %v1200_v40 = vpop.f32.mrb[11].mxu0  ;;  %v1669_v41 = vpop.f32.mrb[11].mxu1  ;;  %v1316_v42 = vcombine.low %v1960_v32, %v1964_v36 }
 0x575   :  { %v1201_v43 = vadd.f32 %v1200_v40, %v978_v31  ;;  %v1323_v44 = vrot.slane %v1315_v37, %v2229_v10  ;;  %v1277_v45 = vsub.f32 0.0, %v1199_v38 }
 0x576   :  { %v1279_v60 = vsub.f32 0.0, %v1270_v39  ;;  %v1330_v46 = vrot.slane %v1316_v42, %v2229_v10 }
 0x577   :  { %v1278_v47 = vsub.f32 0.0, %v1201_v43  ;;  %v1288_v48 = vmul.f32 1.442695, %v1277_v45 }
 0x578   :  { %v1292_v49 = vmul.f32 1.442695, %v1279_v60  ;;  %v1331_v50 = vcombine.low %v1323_v44, %v1330_v46 }
 0x579   :  { %v1290_v51 = vmul.f32 1.442695, %v1278_v47  ;;  %1965 = vpow2.f32 %v1288_v48 }
 0x57a   :  { %1350 = vst [vmem:[%s2949_s14] sm:$0xff] %v1331_v50  ;;  %1967 = vpow2.f32 %v1292_v49 }
 0x57b   :  { %1969 = vpow2.f32 %v1290_v51 }
 0x583   :  { %v1966_v52 = vpop.eup %1965 }
 0x584   :  { %v1968_v53 = vpop.eup %1967  ;;  %v1298_v59 = vadd.f32 1.0, %v1966_v52 }
 0x585   :  { %v1970_v54 = vpop.eup %1969  ;;  %v1300_v55 = vadd.f32 1.0, %v1968_v53 }
 0x586   :  { %1971 = vrcp.f32 %v1298_v59  ;;  %v1299_v56 = vadd.f32 1.0, %v1970_v54 }
 0x587   :  { %1973 = vrcp.f32 %v1300_v55 }
 0x588   :  { %1975 = vrcp.f32 %v1299_v56 }
 0x590   :  { %v1972_v57 = vpop.eup %1971 }
 0x591   :  { %v1974_v58 = vpop.eup %1973 }
 0x592   :  { %v1976_v61 = vpop.eup %1975  ;;  %v1346_v63 = vrot.slane %v1974_v58, %v2229_v10 }
 0x593   :  { %v1332_v62 = vcombine.low %v1972_v57, %v1976_v61 }
 0x595   :  { %v1339_v0 = vrot.slane %v1332_v62, %v2229_v10 }
 0x597   :  { %v1347_v1 = vcombine.low %v1339_v0, %v1346_v63 }
 0x599   :  { %1356 = vst.msk [vmem:[%s2949_s14 + $0x8] sm:$0x3f] %vm1355_vm12, %v1347_v1 }
 0x59a   :  { %1999 = dma.done.wait [#allocation3], 32  }
 0x59b   :  { %2000 = vsyncadd [#allocation3], 4294967264 }
 0x59c   :  { %1374 = vsyncpa [#allocation3], 1 }

// kernel: autoencoder_forward.3
= control target key start
LH: loop header
LB: loop body
LE: loop exit
PB: predicated region body
PF: predicated region fallthrough
CT: control target
= control target key end

     0   :  { %vm57_vm0 = vcmask 1043456   ;;  %v10822_v7 = vmov 0.0   ;;  %vm7965_vm1 = vmmov 1   ;;  %v10837_v10 = vmov 0  ;;  %s10812_s0 = inlined_call_operand.vmem [shape: f32[2,4,7,28], index: 0, kind: input, shape index: {}]   ;;  %s10813_s1 = inlined_call_operand.vmem [shape: f32[5,28,240], index: 1, kind: input, shape index: {}]   ;;  %s10814_s2 = inlined_call_operand.vmem [shape: f32[1,240], index: 2, kind: input, shape index: {}]   ;;  %s10815_s3 = inlined_call_operand.vmem [shape: f32[5,120,160], index: 3, kind: input, shape index: {}]   ;;  %s10816_s4 = inlined_call_operand.vmem [shape: f32[1,160], index: 4, kind: input, shape index: {}]   ;;  %s10817_s5 = inlined_call_operand.vmem [shape: f32[320,50], index: 5, kind: input, shape index: {}]   ;;  %s10818_s6 = inlined_call_operand.vmem [shape: f32[1,50], index: 6, kind: input, shape index: {}]   ;;  %s10819_s7 = inlined_call_operand.vmem [shape: f32[50,10], index: 7, kind: input, shape index: {}]   ;;  %s10820_s8 = inlined_call_operand.vmem [shape: f32[1,10], index: 8, kind: input, shape index: {}]   ;;  %s10821_s9 = inlined_call_operand.hbm [shape: f32[2,10], index: 9, kind: output, shape index: {}]  }
   0x1   :  { %v5935_v0 = vld [vmem:[%s10813_s1 + $0x48] sm:$0xff]  ;;  %v5937_v1 = vld [vmem:[%s10813_s1 + $0x58] sm:$0xff]  ;;  %v5934_v2 = vld [vmem:[%s10813_s1 + $0x40] sm:$0xff]  ;;  %128 = vmatprep.mubr.f32.mxu0 %v10822_v7  ;;  %571 = vmatprep.mubr.f32.mxu1 %v10822_v7  ;;  %vm53_vm3 = vcmask 228352  }
   0x2   :  { %v8030_v3 = vpack.c.bf16 %v5937_v1, %v5935_v0  ;;  %v5936_v4 = vld [vmem:[%s10813_s1 + $0x50] sm:$0xff]  ;;  %v5939_v5 = vld [vmem:[%s10813_s1 + $0x68] sm:$0xff]  ;;  %v5941_v6 = vld [vmem:[%s10813_s1 + $0x78] sm:$0xf] }
   0x3   :  { %v8043_v8 = vpack.c.bf16 %v5936_v4, %v5934_v2  ;;  %v8045_v9 = vpack.c.bf16 %v5941_v6, %v5939_v5  ;;  %vm8047_vm2 = vmpackc.low %vm57_vm0, %vm7965_vm1  ;;  %v5938_v11 = vld [vmem:[%s10813_s1 + $0x60] sm:$0xff]  ;;  %v5940_v12 = vld [vmem:[%s10813_s1 + $0x70] sm:$0xf] }
   0x4   :  { %v10838_v10 = vsel %vm8047_vm2, 4294967295, %v10837_v10  ;;  %6726 = vmatprep.subr.bf16.mxu0 %v8030_v3  ;;  %6776 = vmatprep.subr.bf16.mxu1 %v8030_v3  ;;  %v35_v13 = vld [vmem:[%s10813_s1 + $0x8] sm:$0xff]  ;;  %v37_v14 = vld [vmem:[%s10813_s1 + $0x18] sm:$0xff]  ;;  %v8067_v15 = vpack.c.bf16 %v5940_v12, %v5938_v11  ;;  %v34_v17 = vld [vmem:[%s10813_s1] sm:$0xff] }
   0x5   :  { %10839 = vst [vmem:[#allocation5_spill] sm:$0xff] %v10838_v10  ;;  %6728 = vmatpush1.bf16.msra.mxu0 %v8043_v8  ;;  %6778 = vmatpush1.bf16.msra.mxu1 %v8043_v8  ;;  %v8075_v16 = vpack.c.bf16 %v37_v14, %v35_v13  ;;  %v36_v18 = vld [vmem:[%s10813_s1 + $0x10] sm:$0xff]  ;;  %v39_v19 = vld [vmem:[%s10813_s1 + $0x28] sm:$0xff]  ;;  %v41_v20 = vld [vmem:[%s10813_s1 + $0x38] sm:$0xf] }
   0x6   :  { %6731 = vmatprep.subr.msk.bf16.mxu0 %vm8047_vm2, %v8045_v9  ;;  %6781 = vmatprep.subr.msk.bf16.mxu1 %vm8047_vm2, %v8045_v9  ;;  %v5933_v21 = vld [vmem:[%s10812_s0 + $0x8] sm:$0x3f]  ;;  %v8101_v22 = vld [vmem:[%s10812_s0 + $0x10] sm:$0x3f]  ;;  %v8103_v23 = vpack.c.bf16 %v36_v18, %v34_v17  ;;  %v8107_v24 = vpack.c.bf16 %v41_v20, %v39_v19  ;;  %v38_v25 = vld [vmem:[%s10813_s1 + $0x20] sm:$0xff] }
   0x7   :  { %v40_v26 = vld [vmem:[%s10813_s1 + $0x30] sm:$0xf]  ;;  %v5950_v27 = vld [vmem:[%s10813_s1 + $0x88] sm:$0xff]  ;;  %v5952_v28 = vld [vmem:[%s10813_s1 + $0x98] sm:$0xff] }
   0x8   :  { %v8126_v29 = vpack.c.bf16 %v40_v26, %v38_v25  ;;  %v8134_v30 = vpack.c.bf16 %v5952_v28, %v5950_v27  ;;  %v5949_v31 = vld [vmem:[%s10813_s1 + $0x80] sm:$0xff]  ;;  %v5951_v32 = vld [vmem:[%s10813_s1 + $0x90] sm:$0xff]  ;;  %v5954_v33 = vld [vmem:[%s10813_s1 + $0xa8] sm:$0xff] }
   0x9   :  { %6734 = vmatpush1.bf16.msk.msra.mxu0 %vm8047_vm2, %v8067_v15  ;;  %6784 = vmatpush1.bf16.msk.msra.mxu1 %vm8047_vm2, %v8067_v15  ;;  %v5956_v34 = vld [vmem:[%s10813_s1 + $0xb8] sm:$0xf]  ;;  %v33_v35 = vld [vmem:[%s10812_s0] sm:$0x3f]  ;;  %v8159_v36 = vpack.c.bf16 %v5951_v32, %v5949_v31 }
   0xa   :  { %6736 = vmatprep.subr.bf16.mxu0 %v8075_v16  ;;  %6786 = vmatprep.subr.bf16.mxu1 %v8075_v16 }
   0xc   :  { %5944 = vmatmul.mubr.msk.f32.vlgmr.msra.gmra.mrb[0].mxu0 %vm53_vm3, %v5933_v21  ;;  %5985 = vmatmul.mubr.msk.f32.vlgmr.msra.gmra.mrb[0].mxu1 %vm53_vm3, %v8101_v22 }
   0xd   :  { %6738 = vmatpush1.bf16.msra.mxu0 %v8103_v23  ;;  %6788 = vmatpush1.bf16.msra.mxu1 %v8103_v23 }
   0xe   :  { %6741 = vmatprep.subr.msk.bf16.mxu0 %vm8047_vm2, %v8107_v24  ;;  %6791 = vmatprep.subr.msk.bf16.mxu1 %vm8047_vm2, %v8107_v24 }
   0xf   :  { %208 = vmatprep.mubr.f32.mxu0 %v10822_v7  ;;  %642 = vmatprep.mubr.f32.mxu1 %v10822_v7 }
  0x11   :  { %6744 = vmatpush1.bf16.msk.msra.mxu0 %vm8047_vm2, %v8126_v29  ;;  %6794 = vmatpush1.bf16.msk.msra.mxu1 %vm8047_vm2, %v8126_v29 }
  0x12   :  { %14 = vsyncpa [#allocation3], 0  ;;  %6746 = vmatprep.subr.bf16.mxu0 %v8134_v30  ;;  %6796 = vmatprep.subr.bf16.mxu1 %v8134_v30  ;;  %v8163_v37 = vpack.c.bf16 %v5956_v34, %v5954_v33  ;;  %v5953_v38 = vld [vmem:[%s10813_s1 + $0xa0] sm:$0xff]  ;;  %v5955_v39 = vld [vmem:[%s10813_s1 + $0xb0] sm:$0xf]  ;;  %s7966_s24 = smov 8  }
  0x13   :  { %v5962_v40 = vld [vmem:[%s10813_s1 + $0xc8] sm:$0xff]  ;;  %v5964_v41 = vld [vmem:[%s10813_s1 + $0xd8] sm:$0xff]  ;;  %v8181_v42 = vpack.c.bf16 %v5955_v39, %v5953_v38  ;;  %v5961_v44 = vld [vmem:[%s10813_s1 + $0xc0] sm:$0xff]  ;;  %vm1616_vm4 = vcmask 64512   ;;  %vm1694_vm5 = vcmask 982016   ;;  %vm7968_vm6 = vmmov 0  }
  0x14   :  { %5947 = vmatmul.mubr.msk.f32.vlgmr.msra.gmra.mrb[0].mxu0 %vm53_vm3, %v33_v35  ;;  %5988 = vmatmul.mubr.msk.f32.vlgmr.msra.gmra.mrb[0].mxu1 %vm53_vm3, %v5933_v21  ;;  %v8189_v43 = vpack.c.bf16 %v5964_v41, %v5962_v40  ;;  %v5963_v45 = vld [vmem:[%s10813_s1 + $0xd0] sm:$0xff]  ;;  %v5966_v46 = vld [vmem:[%s10813_s1 + $0xe8] sm:$0xff]  ;;  %v5968_v47 = vld [vmem:[%s10813_s1 + $0xf8] sm:$0xf]  ;;  %s7969_s22 = smov 48   ;;  %vm2552_vm7 = vcmask 392192  }
  0x15   :  { %6748 = vmatpush1.bf16.msra.mxu0 %v8159_v36  ;;  %6798 = vmatpush1.bf16.msra.mxu1 %v8159_v36  ;;  %v8214_v48 = vld [vmem:[%s10812_s0 + $0x18] sm:$0x3f]  ;;  %v8216_v49 = vpack.c.bf16 %v5963_v45, %v5961_v44  ;;  %v8220_v50 = vpack.c.bf16 %v5968_v47, %v5966_v46  ;;  %v5965_v51 = vld [vmem:[%s10813_s1 + $0xe0] sm:$0xff]  ;;  %v5967_v52 = vld [vmem:[%s10813_s1 + $0xf0] sm:$0xf]  ;;  %v495_v44 = vlaneseq  ;;  %vm2568_vm8 = vcmask 654336  }
  0x16   :  { %6751 = vmatprep.subr.msk.bf16.mxu0 %vm8047_vm2, %v8163_v37  ;;  %6801 = vmatprep.subr.msk.bf16.mxu1 %vm8047_vm2, %v8163_v37  ;;  %v5973_v53 = vld [vmem:[%s10813_s1 + $0x108] sm:$0xff]  ;;  %v5975_v54 = vld [vmem:[%s10813_s1 + $0x118] sm:$0xff]  ;;  %v8240_v55 = vpack.c.bf16 %v5967_v52, %v5965_v51  ;;  %v5972_v57 = vld [vmem:[%s10813_s1 + $0x100] sm:$0xff]  ;;  %vm2908_vm9 = vcmask 1041408   ;;  %vm2904_vm10 = vcmask 408576   ;;  %vm2982_vm11 = vcmask 73728  }
  0x17   :  { %299 = vmatprep.mubr.f32.mxu0 %v10822_v7  ;;  %713 = vmatprep.mubr.f32.mxu1 %v10822_v7  ;;  %v8248_v56 = vpack.c.bf16 %v5975_v54, %v5973_v53  ;;  %v5974_v58 = vld [vmem:[%s10813_s1 + $0x110] sm:$0xff]  ;;  %v5977_v59 = vld [vmem:[%s10813_s1 + $0x128] sm:$0xff]  ;;  %v5979_v60 = vld [vmem:[%s10813_s1 + $0x138] sm:$0xf]  ;;  %v496_v45 = vshrl.u32 %v495_v44, 7  ;;  %s7970_s30 = smov [#allocation2]  }
  0x18   :  { %v401_v61 = vld [vmem:[%s10812_s0 + $0x1] sm:$0x3f]  ;;  %v8273_v62 = vpack.c.bf16 %v5974_v58, %v5972_v57  ;;  %v8277_v63 = vpack.c.bf16 %v5979_v60, %v5977_v59  ;;  %v5978_v1 = vld [vmem:[%s10813_s1 + $0x130] sm:$0xf]  ;;  %v5995_v4 = vld [vmem:[%s10812_s0 + $0x9] sm:$0x3f] }
  0x19   :  { %6754 = vmatpush1.bf16.msk.msra.mxu0 %vm8047_vm2, %v8181_v42  ;;  %6804 = vmatpush1.bf16.msk.msra.mxu1 %vm8047_vm2, %v8181_v42  ;;  %v5976_v0 = vld [vmem:[%s10813_s1 + $0x120] sm:$0xff]  ;;  %v6027_v5 = vld [vmem:[%s10812_s0 + $0x19] sm:$0x3f]  ;;  %v1634_v6 = vld [vmem:[%s10815_s3 + $0x8] sm:$0xff]  ;;  %v8544_v51 = vsub.s32 0, %v496_v45  ;;  %v8551_v54 = vsub.s32 1, %v496_v45 }
  0x1a   :  { %6756 = vmatprep.subr.bf16.mxu0 %v8189_v43  ;;  %6806 = vmatprep.subr.bf16.mxu1 %v8189_v43  ;;  %v8290_v2 = vpack.c.bf16 %v5978_v1, %v5976_v0  ;;  %v1635_v12 = vld [vmem:[%s10815_s3 + $0x10] sm:$0xff]  ;;  %v1638_v13 = vld [vmem:[%s10815_s3 + $0x28] sm:$0xff]  ;;  %v1640_v14 = vld [vmem:[%s10815_s3 + $0x38] sm:$0xff] }
  0x1b   :  { %v1637_v17 = vld [vmem:[%s10815_s3 + $0x20] sm:$0xff]  ;;  %v1639_v18 = vld [vmem:[%s10815_s3 + $0x30] sm:$0xff]  ;;  %v1642_v19 = vld [vmem:[%s10815_s3 + $0x48] sm:$0xff]  ;;  %10840 = vst [vmem:[#allocation6_spill] sm:$0xff] %v8544_v51 }
  0x1c   :  { %5959 = vmatmul.mubr.msk.f32.vlgmr.msra.gmra.mrb[0].mxu0 %vm53_vm3, %v8101_v22  ;;  %5991 = vmatmul.mubr.msk.f32.vlgmr.msra.gmra.mrb[0].mxu1 %vm53_vm3, %v8214_v48  ;;  %v1644_v20 = vld [vmem:[%s10815_s3 + $0x58] sm:$0xff]  ;;  %v8460_v21 = vpack.c.bf16 %v1639_v18, %v1637_v17  ;;  %v1646_v25 = vld [vmem:[%s10815_s3 + $0x68] sm:$0xff]  ;;  %v1649_v35 = vld [vmem:[%s10815_s3 + $0x80] sm:$0xff]  ;;  %10841 = vst [vmem:[#allocation7_spill] sm:$0xff] %v8551_v54 }
  0x1d   :  { %6758 = vmatpush1.bf16.msra.mxu0 %v8216_v49  ;;  %6808 = vmatpush1.bf16.msra.mxu1 %v8216_v49  ;;  %v1648_v26 = vld [vmem:[%s10815_s3 + $0x78] sm:$0xff]  ;;  %v1650_v31 = vld [vmem:[%s10815_s3 + $0x88] sm:$0xff]  ;;  %v1653_v41 = vld [vmem:[%s10815_s3 + $0xa0] sm:$0xff] }
  0x1e   :  { %6761 = vmatprep.subr.msk.bf16.mxu0 %vm8047_vm2, %v8220_v50  ;;  %6811 = vmatprep.subr.msk.bf16.mxu1 %vm8047_vm2, %v8220_v50  ;;  %v8481_v28 = vpack.c.bf16 %v1648_v26, %v1646_v25  ;;  %v1652_v32 = vld [vmem:[%s10815_s3 + $0x98] sm:$0xff]  ;;  %v1658_v46 = vld [vmem:[%s10815_s3 + $0xc8] sm:$0xff]  ;;  %v493_v53 = vld [vmem:[%s10814_s2] sm:$0x3] }
  0x1f   :  { %392 = vmatprep.mubr.f32.mxu0 %v10822_v7  ;;  %786 = vmatprep.mubr.f32.mxu1 %v10822_v7  ;;  %v8499_v34 = vpack.c.bf16 %v1652_v32, %v1650_v31  ;;  %v1656_v38 = vld [vmem:[%s10815_s3 + $0xb8] sm:$0xff]  ;;  %v6066_v57 = vld [vmem:[%s10815_s3 + $0x1e8] sm:$0xff]  ;;  %v8570_v59 = vrot.slane %v493_v53, %v8551_v54  ;;  %v8576_v60 = vld [vmem:[%s10815_s3 + $0xe0] sm:$0xff] }
  0x20   :  { %v1660_v47 = vld [vmem:[%s10815_s3 + $0xd8] sm:$0xff]  ;;  %v6033_v17 = vld [vmem:[%s10815_s3 + $0x100] sm:$0xff]  ;;  %v6039_v32 = vld [vmem:[%s10815_s3 + $0x130] sm:$0xff] }
  0x21   :  { %6764 = vmatpush1.bf16.msk.msra.mxu0 %vm8047_vm2, %v8240_v55  ;;  %6814 = vmatpush1.bf16.msk.msra.mxu1 %vm8047_vm2, %v8240_v55  ;;  %v6068_v58 = vld [vmem:[%s10815_s3 + $0x1f8] sm:$0xff]  ;;  %v6037_v25 = vld [vmem:[%s10815_s3 + $0x120] sm:$0xff]  ;;  %v6105_v10 = vld [vmem:[%s10815_s3 + $0x310] sm:$0xff] }
  0x22   :  { %6766 = vmatprep.subr.bf16.mxu0 %v8248_v56  ;;  %6816 = vmatprep.subr.bf16.mxu1 %v8248_v56  ;;  %v6045_v44 = vld [vmem:[%s10815_s3 + $0x160] sm:$0xff]  ;;  %v6110_v54 = vld [vmem:[%s10815_s3 + $0x338] sm:$0xff] }
  0x24   :  { %5971 = vmatmul.mubr.msk.f32.vlgmr.msra.gmra.mrb[0].mxu0 %vm53_vm3, %v8214_v48  ;;  %5994 = vmatmul.mubr.msk.f32.vlgmr.msra.gmra.mrb[0].mxu1 %vm53_vm3, %v401_v61 }
  0x25   :  { %6768 = vmatpush1.bf16.msra.mxu0 %v8273_v62  ;;  %6818 = vmatpush1.bf16.msra.mxu1 %v8273_v62 }
  0x26   :  { %6771 = vmatprep.subr.msk.bf16.mxu0 %vm8047_vm2, %v8277_v63  ;;  %6821 = vmatprep.subr.msk.bf16.mxu1 %vm8047_vm2, %v8277_v63 }
  0x27   :  { %484 = vmatprep.mubr.f32.mxu0 %v10822_v7  ;;  %863 = vmatprep.mubr.f32.mxu1 %v10822_v7 }
  0x29   :  { %6774 = vmatpush1.bf16.msk.msra.mxu0 %vm8047_vm2, %v8290_v2  ;;  %6824 = vmatpush1.bf16.msk.msra.mxu1 %vm8047_vm2, %v8290_v2 }
  0x2a   :  { %6826 = vmatprep.subr.bf16.mxu0 %v8030_v3  ;;  %6876 = vmatprep.subr.bf16.mxu1 %v8030_v3  ;;  %v6011_v3 = vld [vmem:[%s10812_s0 + $0x11] sm:$0x3f] }
  0x2c   :  { %5982 = vmatmul.mubr.msk.f32.vlgmr.msra.gmra.mrb[0].mxu0 %vm53_vm3, %v401_v61  ;;  %5998 = vmatmul.mubr.msk.f32.vlgmr.msra.gmra.mrb[0].mxu1 %vm53_vm3, %v5995_v4 }
  0x2d   :  { %6828 = vmatpush1.bf16.msra.mxu0 %v8043_v8  ;;  %6878 = vmatpush1.bf16.msra.mxu1 %v8043_v8  ;;  %v1636_v8 = vld [vmem:[%s10815_s3 + $0x18] sm:$0xff] }
  0x2e   :  { %6831 = vmatprep.subr.msk.bf16.mxu0 %vm8047_vm2, %v8045_v9  ;;  %6881 = vmatprep.subr.msk.bf16.mxu1 %vm8047_vm2, %v8045_v9  ;;  %v1633_v9 = vld [vmem:[%s10815_s3] sm:$0xff]  ;;  %v8431_v11 = vpack.c.bf16 %v1636_v8, %v1634_v6 }
  0x2f   :  { %938 = vmatprep.mubr.f32.mxu0 %v10822_v7  ;;  %1305 = vmatprep.mubr.f32.mxu1 %v10822_v7 }
  0x31   :  { %6834 = vmatpush1.bf16.msk.msra.mxu0 %vm8047_vm2, %v8067_v15  ;;  %6884 = vmatpush1.bf16.msk.msra.mxu1 %vm8047_vm2, %v8067_v15  ;;  %v8442_v15 = vpack.c.bf16 %v1635_v12, %v1633_v9  ;;  %v6032_v9 = vld [vmem:[%s10815_s3 + $0xf8] sm:$0xff]  ;;  %v6034_v12 = vld [vmem:[%s10815_s3 + $0x108] sm:$0xff] }
  0x32   :  { %6836 = vmatprep.subr.bf16.mxu0 %v8075_v16  ;;  %6886 = vmatprep.subr.bf16.mxu1 %v8075_v16  ;;  %v8444_v16 = vpack.c.bf16 %v1640_v14, %v1638_v13  ;;  %v8597_v13 = vpack.c.bf16 %v6034_v12, %v6032_v9  ;;  %v6031_v14 = vld [vmem:[%s10815_s3 + $0xf0] sm:$0xff]  ;;  %v6057_v9 = vld [vmem:[%s10815_s3 + $0x1c0] sm:$0xff] }
  0x33   :  { %v8605_v18 = vpack.c.bf16 %v6033_v17, %v6031_v14  ;;  %v8720_v14 = vld [vmem:[%s10815_s3 + $0x1d8] sm:$0xff]  ;;  %v8726_v17 = vld [vmem:[%s10815_s3 + $0x1d0] sm:$0xff] }
  0x34   :  { %6001 = vmatmul.mubr.msk.f32.vlgmr.msra.gmra.mrb[2].mxu0 %vm53_vm3, %v8214_v48  ;;  %6017 = vmatmul.mubr.msk.f32.vlgmr.msra.gmra.mrb[2].mxu1 %vm53_vm3, %v401_v61 }
  0x35   :  { %6838 = vmatpush1.bf16.msra.mxu0 %v8103_v23  ;;  %6888 = vmatpush1.bf16.msra.mxu1 %v8103_v23  ;;  %v1641_v23 = vld [vmem:[%s10815_s3 + $0x40] sm:$0xff] }
  0x36   :  { %6841 = vmatprep.subr.msk.bf16.mxu0 %vm8047_vm2, %v8107_v24  ;;  %6891 = vmatprep.subr.msk.bf16.mxu1 %vm8047_vm2, %v8107_v24  ;;  %v1643_v24 = vld [vmem:[%s10815_s3 + $0x50] sm:$0xff] }
  0x37   :  { %1009 = vmatprep.mubr.f32.mxu0 %v10822_v7  ;;  %1376 = vmatprep.mubr.f32.mxu1 %v10822_v7  ;;  %v8478_v27 = vpack.c.bf16 %v1643_v24, %v1641_v23  ;;  %v6035_v24 = vld [vmem:[%s10815_s3 + $0x110] sm:$0xff] }
  0x38   :  { %v8623_v26 = vpack.c.bf16 %v6037_v25, %v6035_v24 }
  0x39   :  { %6844 = vmatpush1.bf16.msk.msra.mxu0 %vm8047_vm2, %v8126_v29  ;;  %6894 = vmatpush1.bf16.msk.msra.mxu1 %vm8047_vm2, %v8126_v29  ;;  %v1645_v29 = vld [vmem:[%s10815_s3 + $0x60] sm:$0xff] }
  0x3a   :  { %6846 = vmatprep.subr.bf16.mxu0 %v8134_v30  ;;  %6896 = vmatprep.subr.bf16.mxu1 %v8134_v30  ;;  %v1647_v30 = vld [vmem:[%s10815_s3 + $0x70] sm:$0xff] }
  0x3b   :  { %v8496_v33 = vpack.c.bf16 %v1647_v30, %v1645_v29  ;;  %v6040_v29 = vld [vmem:[%s10815_s3 + $0x138] sm:$0xff]  ;;  %v6042_v30 = vld [vmem:[%s10815_s3 + $0x148] sm:$0xff] }
  0x3c   :  { %6004 = vmatmul.mubr.msk.f32.vlgmr.msra.gmra.mrb[2].mxu0 %vm53_vm3, %v8101_v22  ;;  %6020 = vmatmul.mubr.msk.f32.vlgmr.msra.gmra.mrb[2].mxu1 %vm53_vm3, %v8214_v48  ;;  %v8463_v22 = vpack.c.bf16 %v1644_v20, %v1642_v19  ;;  %v1657_v48 = vld [vmem:[%s10815_s3 + $0xc0] sm:$0xff]  ;;  %v6036_v19 = vld [vmem:[%s10815_s3 + $0x118] sm:$0xff]  ;;  %v6038_v20 = vld [vmem:[%s10815_s3 + $0x128] sm:$0xff]  ;;  %v8633_v31 = vpack.c.bf16 %v6042_v30, %v6040_v29 }
  0x3d   :  { %6848 = vmatpush1.bf16.msra.mxu0 %v8159_v36  ;;  %6898 = vmatpush1.bf16.msra.mxu1 %v8159_v36  ;;  %v1651_v36 = vld [vmem:[%s10815_s3 + $0x90] sm:$0xff]  ;;  %v8615_v23 = vpack.c.bf16 %v6038_v20, %v6036_v19 }
  0x3e   :  { %6851 = vmatprep.subr.msk.bf16.mxu0 %vm8047_vm2, %v8163_v37  ;;  %6901 = vmatprep.subr.msk.bf16.mxu1 %vm8047_vm2, %v8163_v37  ;;  %v1654_v37 = vld [vmem:[%s10815_s3 + $0xa8] sm:$0xff]  ;;  %v8514_v39 = vpack.c.bf16 %v1651_v36, %v1649_v35  ;;  %v6041_v35 = vld [vmem:[%s10815_s3 + $0x140] sm:$0xff] }
  0x3f   :  { %1080 = vmatprep.mubr.f32.mxu0 %v10822_v7  ;;  %1447 = vmatprep.mubr.f32.mxu1 %v10822_v7  ;;  %v8517_v40 = vpack.c.bf16 %v1656_v38, %v1654_v37  ;;  %v8641_v36 = vpack.c.bf16 %v6041_v35, %v6039_v32  ;;  %v6044_v37 = vld [vmem:[%s10815_s3 + $0x158] sm:$0xff]  ;;  %v6046_v38 = vld [vmem:[%s10815_s3 + $0x168] sm:$0xff] }
  0x41   :  { %6854 = vmatpush1.bf16.msk.msra.mxu0 %vm8047_vm2, %v8181_v42  ;;  %6904 = vmatpush1.bf16.msk.msra.mxu1 %vm8047_vm2, %v8181_v42  ;;  %v1655_v42 = vld [vmem:[%s10815_s3 + $0xb0] sm:$0xff] }
  0x42   :  { %6856 = vmatprep.subr.bf16.mxu0 %v8189_v43  ;;  %6906 = vmatprep.subr.bf16.mxu1 %v8189_v43  ;;  %v8526_v43 = vpack.c.bf16 %v1655_v42, %v1653_v41  ;;  %v8651_v41 = vpack.c.bf16 %v6046_v38, %v6044_v37  ;;  %v6043_v42 = vld [vmem:[%s10815_s3 + $0x150] sm:$0xff] }
  0x43   :  { %v8659_v45 = vpack.c.bf16 %v6045_v44, %v6043_v42 }
  0x44   :  { %6007 = vmatmul.mubr.msk.f32.vlgmr.msra.gmra.mrb[2].mxu0 %vm53_vm3, %v401_v61  ;;  %6023 = vmatmul.mubr.msk.f32.vlgmr.msra.gmra.mrb[2].mxu1 %vm53_vm3, %v5995_v4  ;;  %v8578_v61 = vpack.c.bf16 %v6068_v58, %v6066_v57  ;;  %v6052_v58 = vld [vmem:[%s10815_s3 + $0x198] sm:$0xff] }
  0x45   :  { %6858 = vmatpush1.bf16.msra.mxu0 %v8216_v49  ;;  %6908 = vmatpush1.bf16.msra.mxu1 %v8216_v49  ;;  %v8539_v49 = vpack.c.bf16 %v1660_v47, %v1658_v46  ;;  %v6048_v46 = vld [vmem:[%s10815_s3 + $0x178] sm:$0xff]  ;;  %v6050_v47 = vld [vmem:[%s10815_s3 + $0x188] sm:$0xff] }
  0x46   :  { %6861 = vmatprep.subr.msk.bf16.mxu0 %vm8047_vm2, %v8220_v50  ;;  %6911 = vmatprep.subr.msk.bf16.mxu1 %vm8047_vm2, %v8220_v50  ;;  %v1659_v50 = vld [vmem:[%s10815_s3 + $0xd0] sm:$0xff] }
  0x47   :  { %1153 = vmatprep.mubr.f32.mxu0 %v10822_v7  ;;  %1520 = vmatprep.mubr.f32.mxu1 %v10822_v7  ;;  %v8546_v52 = vpack.c.bf16 %v1659_v50, %v1657_v48  ;;  %v8669_v48 = vpack.c.bf16 %v6050_v47, %v6048_v46  ;;  %v6047_v50 = vld [vmem:[%s10815_s3 + $0x170] sm:$0xff]  ;;  %v6070_v46 = vld [vmem:[%s10815_s3 + $0x208] sm:$0xff]  ;;  %v6072_v47 = vld [vmem:[%s10815_s3 + $0x218] sm:$0xff] }
  0x49   :  { %6864 = vmatpush1.bf16.msk.msra.mxu0 %vm8047_vm2, %v8240_v55  ;;  %6914 = vmatpush1.bf16.msk.msra.mxu1 %vm8047_vm2, %v8240_v55  ;;  %v8556_v55 = vrot.slane %v493_v53, %v8544_v51  ;;  %v6049_v53 = vld [vmem:[%s10815_s3 + $0x180] sm:$0xff] }
  0x4a   :  { %6866 = vmatprep.subr.bf16.mxu0 %v8248_v56  ;;  %6916 = vmatprep.subr.bf16.mxu1 %v8248_v56  ;;  %v8561_v56 = vld [vmem:[%s10815_s3 + $0xe8] sm:$0xff]  ;;  %v8677_v57 = vpack.c.bf16 %v6049_v53, %v6047_v50 }
  0x4c   :  { %6010 = vmatmul.mubr.msk.f32.vlgmr.msra.gmra.mrb[2].mxu0 %vm53_vm3, %v5995_v4  ;;  %6026 = vmatmul.mubr.msk.f32.vlgmr.msra.gmra.mrb[2].mxu1 %vm53_vm3, %v6011_v3 }
  0x4d   :  { %6868 = vmatpush1.bf16.msra.mxu0 %v8273_v62  ;;  %6918 = vmatpush1.bf16.msra.mxu1 %v8273_v62 }
  0x4e   :  { %6871 = vmatprep.subr.msk.bf16.mxu0 %vm8047_vm2, %v8277_v63  ;;  %6921 = vmatprep.subr.msk.bf16.mxu1 %vm8047_vm2, %v8277_v63 }
  0x4f   :  { %1230 = vmatprep.mubr.f32.mxu0 %v10822_v7  ;;  %1597 = vmatprep.mubr.f32.mxu1 %v10822_v7 }
  0x51   :  { %6874 = vmatpush1.bf16.msk.msra.mxu0 %vm8047_vm2, %v8290_v2  ;;  %6924 = vmatpush1.bf16.msk.msra.mxu1 %vm8047_vm2, %v8290_v2 }
  0x52   :  { %6954 = vmatprep.subr.bf16.mxu0 %v8431_v11  ;;  %6926 = vmatprep.subr.bf16.mxu1 %v8597_v13 }
  0x54   :  { %6014 = vmatmul.mubr.msk.f32.vlgmr.msra.gmra.mrb[2].mxu0 %vm53_vm3, %v6011_v3  ;;  %6030 = vmatmul.mubr.msk.f32.vlgmr.msra.gmra.mrb[2].mxu1 %vm53_vm3, %v6027_v5 }
  0x55   :  { %1836 = vmatprep.mubr.f32.mxu0 %v10822_v7  ;;  %1762 = vmatprep.mubr.f32.mxu1 %v10822_v7 }
  0x56   :  { %6956 = vmatpush1.bf16.msra.mxu0 %v8442_v15  ;;  %6928 = vmatpush1.bf16.msra.mxu1 %v8605_v18 }
  0x57   :  { %6958 = vmatprep.subr.bf16.mxu0 %v8444_v16  ;;  %6930 = vmatprep.subr.bf16.mxu1 %v8615_v23 }
  0x5a   :  { %6960 = vmatpush1.bf16.msra.mxu0 %v8460_v21  ;;  %6932 = vmatpush1.bf16.msra.mxu1 %v8623_v26 }
  0x5b   :  { %6962 = vmatprep.subr.bf16.mxu0 %v8463_v22  ;;  %6934 = vmatprep.subr.bf16.mxu1 %v8633_v31 }
  0x5e   :  { %6964 = vmatpush1.bf16.msra.mxu0 %v8478_v27  ;;  %6936 = vmatpush1.bf16.msra.mxu1 %v8641_v36 }
  0x5f   :  { %6966 = vmatprep.subr.bf16.mxu0 %v8481_v28  ;;  %6938 = vmatprep.subr.bf16.mxu1 %v8651_v41 }
  0x62   :  { %6968 = vmatpush1.bf16.msra.mxu0 %v8496_v33  ;;  %6940 = vmatpush1.bf16.msra.mxu1 %v8659_v45 }
  0x63   :  { %6970 = vmatprep.subr.bf16.mxu0 %v8499_v34  ;;  %6942 = vmatprep.subr.bf16.mxu1 %v8669_v48 }
  0x66   :  { %6972 = vmatpush1.bf16.msra.mxu0 %v8514_v39  ;;  %6944 = vmatpush1.bf16.msra.mxu1 %v8677_v57 }
  0x67   :  { %6974 = vmatprep.subr.bf16.mxu0 %v8517_v40 }
  0x6a   :  { %6976 = vmatpush1.bf16.msra.mxu0 %v8526_v43 }
  0x6b   :  { %6978 = vmatprep.subr.bf16.mxu0 %v8539_v49 }
  0x6e   :  { %6980 = vmatpush1.bf16.msra.mxu0 %v8546_v52 }
  0x6f   :  { %1800 = vmatprep.subr.mxu0 %v8561_v56 }
  0x72   :  { %1801 = vmatpush1.msra.mxu0 %v8576_v60 }
  0x73   :  { %7038 = vmatprep.subr.bf16.mxu0 %v8578_v61 }
  0xff   :  { %v486_v62 = vpop.f32.mrb[0].mxu0  ;;  %v865_v63 = vpop.f32.mrb[0].mxu1 }
 0x100   :  { %v505_v0 = vadd.f32 %v8556_v55, %v486_v62  ;;  %v872_v1 = vadd.f32 %v865_v63, %v8556_v55  ;;  %v488_v2 = vpop.f32.mrb[1].mxu0  ;;  %v867_v4 = vpop.f32.mrb[1].mxu1  ;;  %v6054_v62 = vld [vmem:[%s10815_s3 + $0x1a8] sm:$0xff] }
 0x101   :  { %v506_v3 = vadd.f32 %v8570_v59, %v488_v2  ;;  %v873_v5 = vadd.f32 %v867_v4, %v8570_v59  ;;  %v8687_v63 = vpack.c.bf16 %v6054_v62, %v6052_v58  ;;  %v6056_v4 = vld [vmem:[%s10815_s3 + $0x1b8] sm:$0xff]  ;;  %v8757_v62 = vpack.c.bf16 %v6072_v47, %v6070_v46 }
 0x102   :  { %v8586_v6 = vmax.f32 %v505_v0, %v872_v1  ;;  %v6051_v0 = vld [vmem:[%s10815_s3 + $0x190] sm:$0xff]  ;;  %v6053_v1 = vld [vmem:[%s10815_s3 + $0x1a0] sm:$0xff]  ;;  %v6088_v46 = vld [vmem:[%s10815_s3 + $0x298] sm:$0xff] }
 0x103   :  { %v1609_v8 = vmax.f32 %v506_v3, %v873_v5  ;;  %v8695_v2 = vpack.c.bf16 %v6053_v1, %v6051_v0  ;;  %6946 = vmatprep.subr.bf16.mxu1 %v8687_v63  ;;  %v6058_v3 = vld [vmem:[%s10815_s3 + $0x1c8] sm:$0xff]  ;;  %v6069_v0 = vld [vmem:[%s10815_s3 + $0x200] sm:$0xff]  ;;  %v6071_v1 = vld [vmem:[%s10815_s3 + $0x210] sm:$0xff] }
 0x104   :  { %1612 = vrot.lane.b32.xlu1 %v8586_v6, %s7966_s24  ;;  %v8705_v5 = vpack.c.bf16 %v6058_v3, %v6056_v4  ;;  %v6074_v4 = vld [vmem:[%s10815_s3 + $0x228] sm:$0xff]  ;;  %v8774_v3 = vpack.c.bf16 %v6071_v1, %v6069_v0  ;;  %v6085_v0 = vld [vmem:[%s10815_s3 + $0x280] sm:$0xff]  ;;  %v6087_v1 = vld [vmem:[%s10815_s3 + $0x290] sm:$0xff] }
 0x105   :  { %6948 = vmatpush1.bf16.msra.mxu1 %v8695_v2 }
 0x106   :  { %6950 = vmatprep.subr.bf16.mxu1 %v8705_v5 }
 0x108   :  { %1614 = vrot.lane.b32.xlu1 %v1609_v8, %s7966_s24  ;;  %v6055_v8 = vld [vmem:[%s10815_s3 + $0x1b0] sm:$0xff] }
 0x109   :  { %v8713_v12 = vpack.c.bf16 %v6057_v9, %v6055_v8  ;;  %v6073_v9 = vld [vmem:[%s10815_s3 + $0x220] sm:$0xff] }
 0x10b   :  { %6952 = vmatpush1.bf16.msra.mxu1 %v8713_v12 }
 0x10c   :  { %1726 = vmatprep.subr.mxu1 %v8720_v14 }
 0x10f   :  { %1727 = vmatpush1.msra.mxu1 %v8726_v17 }
 0x110   :  { %6982 = vmatprep.subr.bf16.mxu1 %v8597_v13  ;;  %v6067_v13 = vld [vmem:[%s10815_s3 + $0x1f0] sm:$0xff] }
 0x127   :  { %v1232_v19 = vpop.f32.mrb[2].mxu0  ;;  %v1599_v20 = vpop.f32.mrb[2].mxu1 }
 0x128   :  { %v1239_v24 = vadd.f32 %v1232_v19, %v8556_v55  ;;  %v1606_v25 = vadd.f32 %v1599_v20, %v8556_v55  ;;  %v1234_v29 = vpop.f32.mrb[3].mxu0  ;;  %v1601_v30 = vpop.f32.mrb[3].mxu1  ;;  %v6065_v55 = vld [vmem:[%s10815_s3 + $0x1e0] sm:$0xff]  ;;  %v6075_v19 = vld [vmem:[%s10815_s3 + $0x230] sm:$0xff]  ;;  %v6078_v20 = vld [vmem:[%s10815_s3 + $0x248] sm:$0xff] }
 0x129   :  { %v1240_v32 = vadd.f32 %v1234_v29, %v8570_v59  ;;  %v1607_v35 = vadd.f32 %v1601_v30, %v8570_v59  ;;  %v8753_v53 = vpack.c.bf16 %v6067_v13, %v6065_v55  ;;  %v6077_v30 = vld [vmem:[%s10815_s3 + $0x240] sm:$0xff]  ;;  %v6083_v13 = vld [vmem:[%s10815_s3 + $0x270] sm:$0xff] }
 0x12a   :  { %v8734_v37 = vmax.f32 %v1239_v24, %v1606_v25  ;;  %v6080_v24 = vld [vmem:[%s10815_s3 + $0x258] sm:$0xff]  ;;  %v8793_v25 = vpack.c.bf16 %v6075_v19, %v6073_v9  ;;  %v6081_v55 = vld [vmem:[%s10815_s3 + $0x260] sm:$0xff]  ;;  %v8847_v9 = vpack.c.bf16 %v6087_v1, %v6085_v0 }
 0x12b   :  { %v1622_v38 = vmax.f32 %v1240_v32, %v1607_v35  ;;  %v8796_v29 = vpack.c.bf16 %v6080_v24, %v6078_v20  ;;  %v6079_v32 = vld [vmem:[%s10815_s3 + $0x250] sm:$0xff]  ;;  %v6082_v35 = vld [vmem:[%s10815_s3 + $0x268] sm:$0xff]  ;;  %v8829_v47 = vpack.c.bf16 %v6083_v13, %v6081_v55  ;;  %v6089_v20 = vld [vmem:[%s10815_s3 + $0x2a0] sm:$0xff] }
 0x12c   :  { %1625 = vrot.lane.b32.xlu0 %v8734_v37, %s7966_s24  ;;  %v6091_v24 = vld [vmem:[%s10815_s3 + $0x2b0] sm:$0xff]  ;;  %v6099_v13 = vld [vmem:[%s10815_s3 + $0x2e0] sm:$0xff] }
 0x12d   :  { %v6097_v55 = vld [vmem:[%s10815_s3 + $0x2d0] sm:$0xff]  ;;  %v8890_v0 = vld [vmem:[%s10815_s3 + $0x2c0] sm:$0xff] }
 0x130   :  { %1627 = vrot.lane.b32.xlu0 %v1622_v38, %s7966_s24  ;;  %v6084_v38 = vld [vmem:[%s10815_s3 + $0x278] sm:$0xff] }
 0x176   :  { %v1613_v42 = vpop.permute.xlu1 %1612 }
 0x17a   :  { %v1615_v44 = vpop.permute.xlu1 %1614 }
 0x17b   :  { %v1617_v59 = vsel %vm1616_vm4, %v1613_v42, %v1615_v44  ;;  %v8811_v42 = vpack.c.bf16 %v6079_v32, %v6077_v30  ;;  %v8814_v44 = vpack.c.bf16 %v6084_v38, %v6082_v35  ;;  %v8859_v30 = vpack.c.bf16 %v6091_v24, %v6089_v20  ;;  %v8865_v32 = vld [vmem:[%s10815_s3 + $0x2c8] sm:$0xff]  ;;  %v6098_v35 = vld [vmem:[%s10815_s3 + $0x2d8] sm:$0xff]  ;;  %v6101_v24 = vld [vmem:[%s10815_s3 + $0x2f0] sm:$0xff] }
 0x17c   :  { %v1619_v50 = vmax.f32 %v8586_v6, %v1617_v59  ;;  %v6076_v6 = vld [vmem:[%s10815_s3 + $0x238] sm:$0xff]  ;;  %v6086_v59 = vld [vmem:[%s10815_s3 + $0x288] sm:$0xff] }
 0x17d   :  { %v8778_v8 = vpack.c.bf16 %v6076_v6, %v6074_v4  ;;  %v6090_v4 = vld [vmem:[%s10815_s3 + $0x2a8] sm:$0xff]  ;;  %v6092_v6 = vld [vmem:[%s10815_s3 + $0x2b8] sm:$0xff] }
 0x17e   :  { %v8755_v58 = vmax.f32 %v1619_v50, 0.0  ;;  %v8832_v50 = vpack.c.bf16 %v6088_v46, %v6086_v59  ;;  %v8850_v19 = vpack.c.bf16 %v6092_v6, %v6090_v4  ;;  %v6100_v38 = vld [vmem:[%s10815_s3 + $0x2e8] sm:$0xff]  ;;  %v6102_v59 = vld [vmem:[%s10815_s3 + $0x2f8] sm:$0xff]  ;;  %v8894_v4 = vpack.c.bf16 %v6099_v13, %v6097_v55 }
 0x17f   :  { %v6104_v46 = vld [vmem:[%s10815_s3 + $0x308] sm:$0xff]  ;;  %v8892_v1 = vpack.c.bf16 %v6100_v38, %v6098_v35  ;;  %v6106_v35 = vld [vmem:[%s10815_s3 + $0x318] sm:$0xff] }
 0x180   :  { %6062 = vmatmul.mubr.msk.f32.vlgmr.msra.gmra.mrb[4].mxu0 %vm1694_vm5, %v8755_v58  ;;  %10843 = vst [vmem:[#allocation9_spill] sm:$0xff] %v8894_v4  ;;  %v10826_v6 = vrot.slane %v8755_v58, 1  ;;  %v8897_v20 = vpack.c.bf16 %v6104_v46, %v6102_v59  ;;  %v6108_v38 = vld [vmem:[%s10815_s3 + $0x328] sm:$0xff]  ;;  %v10845_v59 = vmov 0.0  }
 0x181   :  { %7040 = vmatpush1.bf16.msra.mxu0 %v8753_v53  ;;  %2083 = vmatprep.mubr.f32.mxu0 %v10822_v7  ;;  %10842 = vst [vmem:[#allocation8_spill] sm:$0xff] %v8892_v1  ;;  %v6103_v7 = vld [vmem:[%s10815_s3 + $0x300] sm:$0xff]  ;;  %v8921_v46 = vpack.c.bf16 %v6108_v38, %v6106_v35 }
 0x182   :  { %7042 = vmatprep.subr.bf16.mxu0 %v8757_v62  ;;  %10844 = vst [vmem:[#allocation10_spill] sm:$0xff] %v8897_v20  ;;  %v8917_v13 = vpack.c.bf16 %v6103_v7, %v6101_v24  ;;  %v6112_v7 = vld [vmem:[%s10815_s3 + $0x348] sm:$0xff] }
 0x185   :  { %7044 = vmatpush1.bf16.msra.mxu0 %v8774_v3 }
 0x186   :  { %7046 = vmatprep.subr.bf16.mxu0 %v8778_v8 }
 0x189   :  { %7048 = vmatpush1.bf16.msra.mxu0 %v8793_v25 }
 0x18a   :  { %7050 = vmatprep.subr.bf16.mxu0 %v8796_v29 }
 0x18d   :  { %7052 = vmatpush1.bf16.msra.mxu0 %v8811_v42 }
 0x18e   :  { %7054 = vmatprep.subr.bf16.mxu0 %v8814_v44 }
 0x191   :  { %7056 = vmatpush1.bf16.msra.mxu0 %v8829_v47 }
 0x192   :  { %7058 = vmatprep.subr.bf16.mxu0 %v8832_v50 }
 0x195   :  { %7060 = vmatpush1.bf16.msra.mxu0 %v8847_v9 }
 0x196   :  { %7062 = vmatprep.subr.bf16.mxu0 %v8850_v19 }
 0x199   :  { %7064 = vmatpush1.bf16.msra.mxu0 %v8859_v30 }
 0x19a   :  { %2047 = vmatprep.subr.mxu0 %v8865_v32 }
 0x19d   :  { %2048 = vmatpush1.msra.mxu0 %v8890_v0 }
 0x19e   :  { %6095 = vmatmul.mubr.msk.f32.vlgmr.msra.gmra.mrb[4].mxu0 %vm1694_vm5, %v10826_v6  ;;  %7094 = vmatprep.subr.bf16.mxu0 %v8892_v1  ;;  %v1626_v55 = vpop.permute.xlu0 %1625  ;;  %v6107_v6 = vld [vmem:[%s10815_s3 + $0x320] sm:$0xff] }
 0x19f   :  { %7096 = vmatpush1.bf16.msra.mxu0 %v8894_v4  ;;  %2263 = vmatprep.mubr.f32.mxu0 %v10845_v59  ;;  %v8937_v38 = vpack.c.bf16 %v6107_v6, %v6105_v10  ;;  %v6109_v4 = vld [vmem:[%s10815_s3 + $0x330] sm:$0xff]  ;;  %v6111_v1 = vld [vmem:[%s10815_s3 + $0x340] sm:$0xff]  ;;  %v6116_v10 = vld [vmem:[%s10815_s3 + $0x368] sm:$0xff] }
 0x1a0   :  { %7098 = vmatprep.subr.bf16.mxu0 %v8897_v20  ;;  %v8941_v20 = vpack.c.bf16 %v6112_v7, %v6110_v54  ;;  %v8958_v54 = vpack.c.bf16 %v6111_v1, %v6109_v4  ;;  %v6113_v7 = vld [vmem:[%s10815_s3 + $0x350] sm:$0xff]  ;;  %v6118_v1 = vld [vmem:[%s10815_s3 + $0x378] sm:$0xff]  ;;  %v6120_v4 = vld [vmem:[%s10815_s3 + $0x388] sm:$0xff] }
 0x1a2   :  { %v1628_v24 = vpop.permute.xlu0 %1627 }
 0x1a3   :  { %v1629_v35 = vsel %vm1616_vm4, %v1626_v55, %v1628_v24  ;;  %7100 = vmatpush1.bf16.msra.mxu0 %v8917_v13  ;;  %v6114_v55 = vld [vmem:[%s10815_s3 + $0x358] sm:$0xff] }
 0x1a4   :  { %v1631_v51 = vmax.f32 %v8734_v37, %v1629_v35  ;;  %7102 = vmatprep.subr.bf16.mxu0 %v8921_v46  ;;  %v8963_v6 = vpack.c.bf16 %v6116_v10, %v6114_v55  ;;  %v8984_v35 = vpack.c.bf16 %v6120_v4, %v6118_v1  ;;  %v6119_v55 = vld [vmem:[%s10815_s3 + $0x380] sm:$0xff]  ;;  %v6124_v10 = vld [vmem:[%s10815_s3 + $0x3a8] sm:$0xff]  ;;  %v9022_v4 = vld [vmem:[%s10815_s3 + $0x3b8] sm:$0xff] }
 0x1a5   :  { %v6123_v1 = vld [vmem:[%s10815_s3 + $0x3a0] sm:$0xff]  ;;  %10848 = vst [vmem:[#allocation13_spill] sm:$0xff] %v9022_v4 }
 0x1a6   :  { %v8955_v37 = vmax.f32 %v1631_v51, 0.0  ;;  %v6115_v51 = vld [vmem:[%s10815_s3 + $0x360] sm:$0xff] }
 0x1a7   :  { %7104 = vmatpush1.bf16.msra.mxu0 %v8937_v38  ;;  %v8981_v24 = vpack.c.bf16 %v6115_v51, %v6113_v7 }
 0x1a8   :  { %6061 = vmatmul.mubr.msk.f32.vlgmr.msra.gmra.mrb[4].mxu1 %vm1694_vm5, %v8955_v37  ;;  %7106 = vmatprep.subr.bf16.mxu0 %v8941_v20 }
 0x1a9   :  { %6984 = vmatpush1.bf16.msra.mxu1 %v8605_v18  ;;  %1910 = vmatprep.mubr.f32.mxu1 %v10845_v59  ;;  %v6117_v18 = vld [vmem:[%s10815_s3 + $0x370] sm:$0xff] }
 0x1aa   :  { %6986 = vmatprep.subr.bf16.mxu1 %v8615_v23  ;;  %v6122_v23 = vld [vmem:[%s10815_s3 + $0x398] sm:$0xff]  ;;  %v9001_v7 = vpack.c.bf16 %v6119_v55, %v6117_v18  ;;  %v6130_v18 = vld [vmem:[%s10815_s3 + $0x3c8] sm:$0xff] }
 0x1ab   :  { %7108 = vmatpush1.bf16.msra.mxu0 %v8958_v54  ;;  %v9004_v51 = vpack.c.bf16 %v6124_v10, %v6122_v23  ;;  %v6134_v55 = vld [vmem:[%s10815_s3 + $0x3e8] sm:$0xff]  ;;  %v6136_v23 = vld [vmem:[%s10815_s3 + $0x3f8] sm:$0xff] }
 0x1ac   :  { %7110 = vmatprep.subr.bf16.mxu0 %v8963_v6 }
 0x1ad   :  { %6988 = vmatpush1.bf16.msra.mxu1 %v8623_v26  ;;  %10846 = vst [vmem:[#allocation11_spill] sm:$0xff] %v9004_v51  ;;  %v6121_v26 = vld [vmem:[%s10815_s3 + $0x390] sm:$0xff] }
 0x1ae   :  { %6990 = vmatprep.subr.bf16.mxu1 %v8633_v31  ;;  %v9015_v31 = vpack.c.bf16 %v6123_v1, %v6121_v26  ;;  %v2092_v1 = vrot.slane %v8955_v37, 1 }
 0x1af   :  { %7112 = vmatpush1.bf16.msra.mxu0 %v8981_v24 }
 0x1b0   :  { %7114 = vmatprep.subr.bf16.mxu0 %v8984_v35  ;;  %10847 = vst [vmem:[#allocation12_spill] sm:$0xff] %v9015_v31 }
 0x1b1   :  { %6992 = vmatpush1.bf16.msra.mxu1 %v8641_v36  ;;  %v6132_v36 = vld [vmem:[%s10815_s3 + $0x3d8] sm:$0xff] }
 0x1b2   :  { %6994 = vmatprep.subr.bf16.mxu1 %v8651_v41  ;;  %v6129_v41 = vld [vmem:[%s10815_s3 + $0x3c0] sm:$0xff]  ;;  %v9050_v10 = vpack.c.bf16 %v6132_v36, %v6130_v18 }
 0x1b3   :  { %7116 = vmatpush1.bf16.msra.mxu0 %v9001_v7 }
 0x1b4   :  { %7118 = vmatprep.subr.bf16.mxu0 %v9004_v51  ;;  %v6135_v51 = vld [vmem:[%s10815_s3 + $0x3f0] sm:$0xff] }
 0x1b5   :  { %6996 = vmatpush1.bf16.msra.mxu1 %v8659_v45  ;;  %v6131_v45 = vld [vmem:[%s10815_s3 + $0x3d0] sm:$0xff] }
 0x1b6   :  { %6998 = vmatprep.subr.bf16.mxu1 %v8669_v48  ;;  %v9048_v48 = vld [vmem:[%s10815_s3 + $0x3b0] sm:$0xff]  ;;  %v9053_v26 = vpack.c.bf16 %v6131_v45, %v6129_v41  ;;  %v6137_v41 = vld [vmem:[%s10815_s3 + $0x400] sm:$0xff] }
 0x1b7   :  { %7120 = vmatpush1.bf16.msra.mxu0 %v9015_v31  ;;  %v9057_v31 = vpack.c.bf16 %v6136_v23, %v6134_v55  ;;  %v6139_v45 = vld [vmem:[%s10815_s3 + $0x410] sm:$0xff] }
 0x1b8   :  { %2227 = vmatprep.subr.mxu0 %v9022_v4  ;;  %v6133_v4 = vld [vmem:[%s10815_s3 + $0x3e0] sm:$0xff]  ;;  %v6143_v55 = vld [vmem:[%s10815_s3 + $0x430] sm:$0xff] }
 0x1b9   :  { %7000 = vmatpush1.bf16.msra.mxu1 %v8677_v57  ;;  %v6138_v57 = vld [vmem:[%s10815_s3 + $0x408] sm:$0xff]  ;;  %v9078_v18 = vpack.c.bf16 %v6135_v51, %v6133_v4  ;;  %v9099_v51 = vpack.c.bf16 %v6139_v45, %v6137_v41  ;;  %v6141_v4 = vld [vmem:[%s10815_s3 + $0x420] sm:$0xff] }
 0x1ba   :  { %7002 = vmatprep.subr.bf16.mxu1 %v8687_v63  ;;  %v6140_v63 = vld [vmem:[%s10815_s3 + $0x418] sm:$0xff]  ;;  %v6145_v45 = vld [vmem:[%s10815_s3 + $0x440] sm:$0xff] }
 0x1bb   :  { %2228 = vmatpush1.msra.mxu0 %v9048_v48  ;;  %v9082_v36 = vpack.c.bf16 %v6140_v63, %v6138_v57  ;;  %v9119_v57 = vpack.c.bf16 %v6143_v55, %v6141_v4  ;;  %v10849_v63 = vrot.slane %v8755_v58, 1  ;;  %v6149_v4 = vld [vmem:[%s10815_s3 + $0x460] sm:$0xff]  ;;  %v6151_v55 = vld [vmem:[%s10815_s3 + $0x470] sm:$0xff] }
 0x1bc   :  { %6127 = vmatmul.mubr.msk.f32.vlgmr.msra.gmra.mrb[4].mxu0 %vm1694_vm5, %v2092_v1  ;;  %7150 = vmatprep.subr.bf16.mxu0 %v9050_v10 }
 0x1bd   :  { %7004 = vmatpush1.bf16.msra.mxu1 %v8695_v2  ;;  %7152 = vmatpush1.bf16.msra.mxu0 %v9053_v26  ;;  %v6142_v2 = vld [vmem:[%s10815_s3 + $0x428] sm:$0xff] }
 0x1be   :  { %7006 = vmatprep.subr.bf16.mxu1 %v8705_v5  ;;  %7154 = vmatprep.subr.bf16.mxu0 %v9057_v31  ;;  %v6144_v5 = vld [vmem:[%s10815_s3 + $0x438] sm:$0xff] }
 0x1bf   :  { %2443 = vmatprep.mubr.f32.mxu0 %v10845_v59  ;;  %v9109_v23 = vpack.c.bf16 %v6144_v5, %v6142_v2  ;;  %v6150_v2 = vld [vmem:[%s10815_s3 + $0x468] sm:$0xff] }
 0x1c1   :  { %7008 = vmatpush1.bf16.msra.mxu1 %v8713_v12  ;;  %7156 = vmatpush1.bf16.msra.mxu0 %v9078_v18  ;;  %v6146_v12 = vld [vmem:[%s10815_s3 + $0x448] sm:$0xff] }
 0x1c2   :  { %1874 = vmatprep.subr.mxu1 %v8720_v14  ;;  %7158 = vmatprep.subr.bf16.mxu0 %v9082_v36  ;;  %v6148_v14 = vld [vmem:[%s10815_s3 + $0x458] sm:$0xff] }
 0x1c3   :  { %v9125_v41 = vpack.c.bf16 %v6148_v14, %v6146_v12  ;;  %v6156_v12 = vld [vmem:[%s10815_s3 + $0x498] sm:$0xff]  ;;  %v9164_v14 = vpack.c.bf16 %v6151_v55, %v6149_v4 }
 0x1c5   :  { %1875 = vmatpush1.msra.mxu1 %v8726_v17  ;;  %7160 = vmatpush1.bf16.msra.mxu0 %v9099_v51  ;;  %v6147_v17 = vld [vmem:[%s10815_s3 + $0x450] sm:$0xff] }
 0x1c6   :  { %6063 = vmatmul.mubr.msk.f32.vlgmr.msra.gmra.mrb[6].mxu1 %vm1694_vm5, %v10849_v63  ;;  %7010 = vmatprep.subr.bf16.mxu1 %v8431_v11  ;;  %v6152_v11 = vld [vmem:[%s10815_s3 + $0x478] sm:$0xff]  ;;  %v9144_v5 = vpack.c.bf16 %v6147_v17, %v6145_v45  ;;  %v6155_v45 = vld [vmem:[%s10815_s3 + $0x490] sm:$0xff]  ;;  %v9185_v17 = vld [vmem:[%s10815_s3 + $0x4a8] sm:$0xff] }
 0x1c7   :  { %7012 = vmatpush1.bf16.msra.mxu1 %v8442_v15  ;;  %7162 = vmatprep.subr.bf16.mxu0 %v9109_v23  ;;  %v9147_v15 = vpack.c.bf16 %v6152_v11, %v6150_v2  ;;  %v2900_v11 = vld [vmem:[%s10819_s7 + $0x20] sm:$0xff] }
 0x1c8   :  { %7014 = vmatprep.subr.bf16.mxu1 %v8444_v16  ;;  %1981 = vmatprep.mubr.f32.mxu1 %v10845_v59  ;;  %v6154_v16 = vld [vmem:[%s10815_s3 + $0x488] sm:$0xff] }
 0x1c9   :  { %7164 = vmatpush1.bf16.msra.mxu0 %v9119_v57  ;;  %v9167_v63 = vpack.c.bf16 %v6156_v12, %v6154_v16  ;;  %v2643_v16 = vld [vmem:[%s10817_s5 + $0x50] sm:$0xff]  ;;  %v2644_v12 = vld [vmem:[%s10817_s5 + $0x58] sm:$0xff] }
 0x1ca   :  { %7166 = vmatprep.subr.bf16.mxu0 %v9125_v41 }
 0x1cb   :  { %7016 = vmatpush1.bf16.msra.mxu1 %v8460_v21  ;;  %v6153_v21 = vld [vmem:[%s10815_s3 + $0x480] sm:$0xff] }
 0x1cc   :  { %7018 = vmatprep.subr.bf16.mxu1 %v8463_v22  ;;  %v9178_v22 = vpack.c.bf16 %v6155_v45, %v6153_v21  ;;  %v7221_v21 = vpack.c.bf16 %v2644_v12, %v2643_v16  ;;  %v6173_v12 = vld [vmem:[%s10813_s1 + $0x60] sm:$0xff] }
 0x1cd   :  { %7168 = vmatpush1.bf16.msra.mxu0 %v9144_v5 }
 0x1ce   :  { %7170 = vmatprep.subr.bf16.mxu0 %v9147_v15 }
 0x1cf   :  { %7020 = vmatpush1.bf16.msra.mxu1 %v8478_v27  ;;  %v9193_v27 = vld [vmem:[%s10815_s3 + $0x4a0] sm:$0xff] }
 0x1d0   :  { %7022 = vmatprep.subr.bf16.mxu1 %v8481_v28  ;;  %v2272_v28 = vrot.slane %v8755_v58, 2  ;;  %v2560_v58 = vld [vmem:[%s10817_s5 + $0x10] sm:$0xff] }
 0x1d1   :  { %7172 = vmatpush1.bf16.msra.mxu0 %v9164_v14 }
 0x1d2   :  { %7174 = vmatprep.subr.bf16.mxu0 %v9167_v63 }
 0x1d3   :  { %7024 = vmatpush1.bf16.msra.mxu1 %v8496_v33  ;;  %v10850_v33 = vld [vmem:[#allocation8_spill] sm:$0xff] }
 0x1d4   :  { %7026 = vmatprep.subr.bf16.mxu1 %v8499_v34  ;;  %v10851_v34 = vld [vmem:[#allocation9_spill] sm:$0xff] }
 0x1d5   :  { %7176 = vmatpush1.bf16.msra.mxu0 %v9178_v22 }
 0x1d6   :  { %2407 = vmatprep.subr.mxu0 %v9185_v17 }
 0x1d7   :  { %7028 = vmatpush1.bf16.msra.mxu1 %v8514_v39  ;;  %v10852_v39 = vld [vmem:[#allocation10_spill] sm:$0xff] }
 0x1d8   :  { %7030 = vmatprep.subr.bf16.mxu1 %v8517_v40  ;;  %v10853_v40 = vld [vmem:[#allocation11_spill] sm:$0xff] }
 0x1d9   :  { %2408 = vmatpush1.msra.mxu0 %v9193_v27 }
 0x1da   :  { %6159 = vmatmul.mubr.msk.f32.vlgmr.msra.gmra.mrb[4].mxu0 %vm1694_vm5, %v2272_v28 }
 0x1db   :  { %7032 = vmatpush1.bf16.msra.mxu1 %v8526_v43  ;;  %v10854_v43 = vld [vmem:[#allocation12_spill] sm:$0xff]  ;;  %6527 = vmatprep.mubr.msk.f32.mxu0 %vm7968_vm6, %v10845_v59 }
 0x1dc   :  { %7034 = vmatprep.subr.bf16.mxu1 %v8539_v49  ;;  %v10855_v49 = vld [vmem:[#allocation13_spill] sm:$0xff] }
 0x1df   :  { %7036 = vmatpush1.bf16.msra.mxu1 %v8546_v52  ;;  %v2452_v52 = vrot.slane %v8955_v37, 2 }
 0x1e0   :  { %1945 = vmatprep.subr.mxu1 %v8561_v56 }
 0x1e3   :  { %1946 = vmatpush1.msra.mxu1 %v8576_v60 }
 0x1e4   :  { %6064 = vmatmul.mubr.msk.f32.vlgmr.msra.gmra.mrb[6].mxu1 %vm1694_vm5, %v8955_v37  ;;  %7066 = vmatprep.subr.bf16.mxu1 %v8578_v61  ;;  %v2558_v61 = vld [vmem:[%s10817_s5] sm:$0xff]  ;;  %v10856_v37 = vld [vmem:[#allocation6_spill] sm:$0xff] }
 0x1e5   :  { %7068 = vmatpush1.bf16.msra.mxu1 %v8753_v53  ;;  %2159 = vmatprep.mubr.f32.mxu1 %v10845_v59  ;;  %v2559_v53 = vld [vmem:[%s10817_s5 + $0x8] sm:$0xff] }
 0x1e6   :  { %7070 = vmatprep.subr.bf16.mxu1 %v8757_v62  ;;  %v7967_v62 = vmov 0.0|0.0  }
 0x1e7   :  { %7205 = vmatprep.subr.bf16.mxu0 %v7967_v62 }
 0x1e9   :  { %7072 = vmatpush1.bf16.msra.mxu1 %v8774_v3  ;;  %v7206_v3 = vpack.c.bf16 %v2559_v53, %v2558_v61  ;;  %v2728_v61 = vld [vmem:[%s10817_s5 + $0xa8] sm:$0xff] }
 0x1ea   :  { %7074 = vmatprep.subr.bf16.mxu1 %v8778_v8  ;;  %v2561_v8 = vld [vmem:[%s10817_s5 + $0x18] sm:$0xff] }
 0x1eb   :  { %7207 = vmatpush3.bf16.msra.mxu0 %v7206_v3  ;;  %v2729_v3 = vld [vmem:[%s10817_s5 + $0xb0] sm:$0xff] }
 0x1ec   :  { %7208 = vmatprep.subr.bf16.mxu0 %v7967_v62 }
 0x1ed   :  { %7076 = vmatpush1.bf16.msra.mxu1 %v8793_v25  ;;  %v7209_v25 = vpack.c.bf16 %v2561_v8, %v2560_v58  ;;  %v2730_v8 = vld [vmem:[%s10817_s5 + $0xb8] sm:$0xff] }
 0x1ee   :  { %7078 = vmatprep.subr.bf16.mxu1 %v8796_v29  ;;  %v2562_v29 = vld [vmem:[%s10817_s5 + $0x20] sm:$0xff] }
 0x1ef   :  { %7210 = vmatpush3.bf16.msra.mxu0 %v7209_v25  ;;  %v7239_v25 = vpack.c.bf16 %v2730_v8, %v2729_v3  ;;  %v6186_v3 = vld [vmem:[%s10813_s1 + $0x90] sm:$0xff]  ;;  %v6189_v8 = vld [vmem:[%s10813_s1 + $0xa8] sm:$0xff] }
 0x1f0   :  { %7211 = vmatprep.subr.bf16.mxu0 %v7967_v62 }
 0x1f1   :  { %7080 = vmatpush1.bf16.msra.mxu1 %v8811_v42  ;;  %v2563_v42 = vld [vmem:[%s10817_s5 + $0x28] sm:$0xff] }
 0x1f2   :  { %7082 = vmatprep.subr.bf16.mxu1 %v8814_v44  ;;  %v7212_v44 = vpack.c.bf16 %v2563_v42, %v2562_v29  ;;  %v2731_v29 = vld [vmem:[%s10817_s5 + $0xc0] sm:$0xff]  ;;  %v2732_v42 = vld [vmem:[%s10817_s5 + $0xc8] sm:$0xff] }
 0x1f4   :  { %7213 = vmatpush3.bf16.msra.mxu0 %v7212_v44  ;;  %v7242_v44 = vpack.c.bf16 %v2732_v42, %v2731_v29  ;;  %v9574_v42 = vld [vmem:[%s10812_s0 + $0x30] sm:$0x3f] }
 0x1f5   :  { %7084 = vmatpush1.bf16.msra.mxu1 %v8829_v47  ;;  %v2564_v47 = vld [vmem:[%s10817_s5 + $0x30] sm:$0xff]  ;;  %7214 = vmatprep.subr.bf16.mxu0 %v7967_v62 }
 0x1f6   :  { %7086 = vmatprep.subr.bf16.mxu1 %v8832_v50  ;;  %v2565_v50 = vld [vmem:[%s10817_s5 + $0x38] sm:$0xff] }
 0x1f9   :  { %7088 = vmatpush1.bf16.msra.mxu1 %v8847_v9  ;;  %v7215_v9 = vpack.c.bf16 %v2565_v50, %v2564_v47  ;;  %v2733_v47 = vld [vmem:[%s10817_s5 + $0xd0] sm:$0xff]  ;;  %v2734_v50 = vld [vmem:[%s10817_s5 + $0xd8] sm:$0xff] }
 0x1fa   :  { %7090 = vmatprep.subr.bf16.mxu1 %v8850_v19 }
 0x1fb   :  { %7216 = vmatpush3.bf16.msra.mxu0 %v7215_v9  ;;  %v7245_v9 = vpack.c.bf16 %v2734_v50, %v2733_v47  ;;  %v6188_v47 = vld [vmem:[%s10813_s1 + $0xa0] sm:$0xff]  ;;  %v6190_v50 = vld [vmem:[%s10813_s1 + $0xb0] sm:$0xf] }
 0x1fc   :  { %7217 = vmatprep.subr.bf16.mxu0 %v7967_v62 }
 0x1fd   :  { %7092 = vmatpush1.bf16.msra.mxu1 %v8859_v30 }
 0x1fe   :  { %2123 = vmatprep.subr.mxu1 %v8865_v32 }
 0x201   :  { %2124 = vmatpush1.msra.mxu1 %v8890_v0 }
 0x202   :  { %6096 = vmatmul.mubr.msk.f32.vlgmr.msra.gmra.mrb[6].mxu1 %vm1694_vm5, %v2092_v1  ;;  %7122 = vmatprep.subr.bf16.mxu1 %v10850_v33  ;;  %v2648_v33 = vld [vmem:[%s10817_s5 + $0x78] sm:$0xff] }
 0x203   :  { %7124 = vmatpush1.bf16.msra.mxu1 %v10851_v34  ;;  %2339 = vmatprep.mubr.f32.mxu1 %v10845_v59 }
 0x204   :  { %7126 = vmatprep.subr.bf16.mxu1 %v10852_v39  ;;  %v2649_v39 = vld [vmem:[%s10817_s5 + $0x80] sm:$0xff] }
 0x207   :  { %7128 = vmatpush1.bf16.msra.mxu1 %v8917_v13  ;;  %v2567_v13 = vld [vmem:[%s10817_s5 + $0x48] sm:$0xff] }
 0x208   :  { %7130 = vmatprep.subr.bf16.mxu1 %v8921_v46 }
 0x20b   :  { %7132 = vmatpush1.bf16.msra.mxu1 %v8937_v38  ;;  %v2528_v38 = vld [vmem:[%s10816_s4] sm:$0x3] }
 0x20c   :  { %7134 = vmatprep.subr.bf16.mxu1 %v8941_v20  ;;  %v2566_v20 = vld [vmem:[%s10817_s5 + $0x40] sm:$0xff] }
 0x20d   :  { %v7218_v46 = vpack.c.bf16 %v2567_v13, %v2566_v20  ;;  %v2812_v20 = vld [vmem:[%s10817_s5 + $0xf8] sm:$0xff] }
 0x20f   :  { %7136 = vmatpush1.bf16.msra.mxu1 %v8958_v54  ;;  %7219 = vmatpush3.bf16.msra.mxu0 %v7218_v46  ;;  %v2533_v54 = vrot.slane %v2528_v38, %v10856_v37 }
 0x210   :  { %7138 = vmatprep.subr.bf16.mxu1 %v8963_v6  ;;  %7220 = vmatprep.subr.bf16.mxu0 %v7967_v62  ;;  %v10857_v6 = vld [vmem:[#allocation7_spill] sm:$0xff] }
 0x213   :  { %7140 = vmatpush1.bf16.msra.mxu1 %v8981_v24  ;;  %v2537_v24 = vrot.slane %v2528_v38, %v10857_v6  ;;  %v2813_v38 = vld [vmem:[%s10817_s5 + $0x100] sm:$0xff] }
 0x214   :  { %7142 = vmatprep.subr.bf16.mxu1 %v8984_v35 }
 0x217   :  { %7144 = vmatpush1.bf16.msra.mxu1 %v9001_v7 }
 0x218   :  { %7146 = vmatprep.subr.bf16.mxu1 %v10853_v40  ;;  %v2650_v40 = vld [vmem:[%s10817_s5 + $0x88] sm:$0xff] }
 0x21b   :  { %7148 = vmatpush1.bf16.msra.mxu1 %v10854_v43  ;;  %v7230_v43 = vpack.c.bf16 %v2650_v40, %v2649_v39  ;;  %v9526_v40 = vld [vmem:[%s10812_s0 + $0x38] sm:$0x3f] }
 0x21c   :  { %2303 = vmatprep.subr.mxu1 %v10855_v49  ;;  %v2651_v49 = vld [vmem:[%s10817_s5 + $0x90] sm:$0xff] }
 0x21f   :  { %2304 = vmatpush1.msra.mxu1 %v9048_v48 }
 0x220   :  { %6128 = vmatmul.mubr.msk.f32.vlgmr.msra.gmra.mrb[6].mxu1 %vm1694_vm5, %v2272_v28  ;;  %7178 = vmatprep.subr.bf16.mxu1 %v9050_v10  ;;  %v2647_v28 = vld [vmem:[%s10817_s5 + $0x70] sm:$0xff] }
 0x221   :  { %7180 = vmatpush1.bf16.msra.mxu1 %v9053_v26  ;;  %2519 = vmatprep.mubr.f32.mxu1 %v10845_v59  ;;  %v7227_v34 = vpack.c.bf16 %v2648_v33, %v2647_v28  ;;  %v2988_v28 = vld [vmem:[%s10813_s1 + $0x10] sm:$0xff]  ;;  %v2991_v33 = vld [vmem:[%s10813_s1 + $0x28] sm:$0xff] }
 0x222   :  { %7182 = vmatprep.subr.bf16.mxu1 %v9057_v31 }
 0x225   :  { %7184 = vmatpush1.bf16.msra.mxu1 %v9078_v18 }
 0x226   :  { %7186 = vmatprep.subr.bf16.mxu1 %v9082_v36  ;;  %v2896_v36 = vld [vmem:[%s10819_s7] sm:$0xff] }
 0x229   :  { %7188 = vmatpush1.bf16.msra.mxu1 %v9099_v51  ;;  %v2897_v51 = vld [vmem:[%s10819_s7 + $0x8] sm:$0xff] }
 0x22a   :  { %7190 = vmatprep.subr.bf16.mxu1 %v9109_v23  ;;  %v2898_v23 = vld [vmem:[%s10819_s7 + $0x10] sm:$0xff] }
 0x22d   :  { %7192 = vmatpush1.bf16.msra.mxu1 %v9119_v57  ;;  %v7266_v57 = vpack.c.bf16 %v2897_v51, %v2896_v36 }
 0x22e   :  { %7194 = vmatprep.subr.bf16.mxu1 %v9125_v41  ;;  %v2899_v41 = vld [vmem:[%s10819_s7 + $0x18] sm:$0xff] }
 0x22f   :  { %v7269_v2 = vpack.c.bf16 %v2899_v41, %v2898_v23  ;;  %v6170_v23 = vld [vmem:[%s10813_s1 + $0x48] sm:$0xff]  ;;  %v2902_v41 = vld [vmem:[%s10819_s7 + $0x30] sm:$0x3] }
 0x231   :  { %7196 = vmatpush1.bf16.msra.mxu1 %v9144_v5  ;;  %v2901_v5 = vld [vmem:[%s10819_s7 + $0x28] sm:$0xff] }
 0x232   :  { %7198 = vmatprep.subr.bf16.mxu1 %v9147_v15  ;;  %v7272_v15 = vpack.c.bf16 %v2901_v5, %v2900_v11  ;;  %v6169_v11 = vld [vmem:[%s10813_s1 + $0x40] sm:$0xff]  ;;  %v6171_v5 = vld [vmem:[%s10813_s1 + $0x50] sm:$0xff] }
 0x235   :  { %7200 = vmatpush1.bf16.msra.mxu1 %v9164_v14 }
 0x236   :  { %7202 = vmatprep.subr.bf16.mxu1 %v9167_v63 }
 0x239   :  { %7204 = vmatpush1.bf16.msra.mxu1 %v9178_v22  ;;  %v2645_v22 = vld [vmem:[%s10817_s5 + $0x60] sm:$0xff] }
 0x23a   :  { %2483 = vmatprep.subr.mxu1 %v9185_v17  ;;  %v2646_v17 = vld [vmem:[%s10817_s5 + $0x68] sm:$0xff] }
 0x23d   :  { %2484 = vmatpush1.msra.mxu1 %v9193_v27  ;;  %v7224_v27 = vpack.c.bf16 %v2646_v17, %v2645_v22  ;;  %v2989_v22 = vld [vmem:[%s10813_s1 + $0x18] sm:$0xff] }
 0x23e   :  { %6160 = vmatmul.mubr.msk.f32.vlgmr.msra.gmra.mrb[6].mxu1 %vm1694_vm5, %v2452_v52  ;;  %7265 = vmatprep.subr.bf16.mxu1 %v7967_v62  ;;  %v2652_v52 = vld [vmem:[%s10817_s5 + $0x98] sm:$0xff] }
 0x23f   :  { %6613 = vmatprep.mubr.msk.f32.mxu1 %vm7968_vm6, %v10845_v59  ;;  %7267 = vmatpush3.bf16.msra.mxu1 %v7266_v57  ;;  %v6172_v57 = vld [vmem:[%s10813_s1 + $0x58] sm:$0xff] }
 0x240   :  { %7268 = vmatprep.subr.bf16.mxu1 %v7967_v62 }
 0x243   :  { %7270 = vmatpush3.bf16.msra.mxu1 %v7269_v2  ;;  %v9464_v2 = vpack.c.bf16 %v6172_v57, %v6170_v23  ;;  %v9670_v57 = vld [vmem:[%s10812_s0 + $0x29] sm:$0x3f] }
 0x244   :  { %7271 = vmatprep.subr.bf16.mxu1 %v7967_v62 }
 0x247   :  { %7273 = vmatpush3.bf16.msra.mxu1 %v7272_v15  ;;  %v9473_v15 = vpack.c.bf16 %v6171_v5, %v6169_v11  ;;  %v6212_v11 = vld [vmem:[%s10813_s1 + $0x120] sm:$0xff]  ;;  %v6214_v5 = vld [vmem:[%s10813_s1 + $0x130] sm:$0xf] }
 0x248   :  { %6611 = vmatprep.subr.mxu1 %v10845_v59 }
 0x24b   :  { %6612 = vmatpush3.msk.msra.mxu1 %vm2908_vm9, %v2902_v41 }
 0x24c   :  { %7275 = vmatprep.subr.bf16.mxu1 %v9464_v2 }
 0x27b   :  { %v1764_v56 = vpop.f32.mrb[4].mxu1 }
 0x27c   :  { %v1766_v60 = vpop.f32.mrb[5].mxu1 }
 0x2ad   :  { %v2445_v19 = vpop.f32.mrb[4].mxu0 }
 0x2ae   :  { %v7823_v30 = vadd.f32 %v2445_v19, %v1764_v56  ;;  %v2447_v32 = vpop.f32.mrb[5].mxu0  ;;  %v7233_v56 = vpack.c.bf16 %v2652_v52, %v2651_v49  ;;  %v2735_v19 = vld [vmem:[%s10817_s5 + $0xe0] sm:$0xff]  ;;  %v2992_v52 = vld [vmem:[%s10813_s1 + $0x30] sm:$0xf] }
 0x2af   :  { %v7824_v0 = vadd.f32 %v2447_v32, %v1766_v60  ;;  %v2727_v60 = vld [vmem:[%s10817_s5 + $0xa0] sm:$0xff] }
 0x2b0   :  { %v2540_v7 = vadd.f32 %v7823_v30, %v2533_v54  ;;  %v7236_v53 = vpack.c.bf16 %v2728_v61, %v2727_v60  ;;  %v2736_v30 = vld [vmem:[%s10817_s5 + $0xe8] sm:$0xff]  ;;  %v2990_v49 = vld [vmem:[%s10813_s1 + $0x20] sm:$0xff]  ;;  %v6187_v60 = vld [vmem:[%s10813_s1 + $0x98] sm:$0xff] }
 0x2b1   :  { %v2541_v10 = vadd.f32 %v7824_v0, %v2537_v24  ;;  %v7248_v32 = vpack.c.bf16 %v2736_v30, %v2735_v19  ;;  %v2811_v0 = vld [vmem:[%s10817_s5 + $0xf0] sm:$0xff]  ;;  %v9549_v61 = vpack.c.bf16 %v2992_v52, %v2990_v49  ;;  %v6199_v19 = vld [vmem:[%s10813_s1 + $0xd8] sm:$0xff]  ;;  %v9597_v30 = vpack.c.bf16 %v6190_v50, %v6188_v47  ;;  %v6274_v49 = vld [vmem:[%s10815_s3 + $0x128] sm:$0xff] }
 0x2b2   :  { %v7251_v13 = vpack.c.bf16 %v2812_v20, %v2811_v0  ;;  %v6196_v0 = vld [vmem:[%s10813_s1 + $0xc0] sm:$0xff]  ;;  %v6198_v20 = vld [vmem:[%s10813_s1 + $0xd0] sm:$0xff]  ;;  %v6280_v50 = vld [vmem:[%s10815_s3 + $0x158] sm:$0xff] }
 0x2b3   :  { %v6277_v47 = vld [vmem:[%s10815_s3 + $0x140] sm:$0xff] }
 0x311   :  { %v2521_v35 = vpop.f32.mrb[6].mxu1 }
 0x312   :  { %v2542_v31 = vadd.f32 %v2533_v54, %v2521_v35  ;;  %v2523_v48 = vpop.f32.mrb[7].mxu1  ;;  %v2814_v54 = vld [vmem:[%s10817_s5 + $0x108] sm:$0xff]  ;;  %v2815_v35 = vld [vmem:[%s10817_s5 + $0x110] sm:$0xff] }
 0x313   :  { %v2543_v26 = vadd.f32 %v2537_v24, %v2523_v48  ;;  %v7254_v24 = vpack.c.bf16 %v2814_v54, %v2813_v38  ;;  %v2817_v48 = vld [vmem:[%s10817_s5 + $0x120] sm:$0xff]  ;;  %v9617_v38 = vpack.c.bf16 %v6198_v20, %v6196_v0  ;;  %v6284_v20 = vld [vmem:[%s10815_s3 + $0x178] sm:$0xff] }
 0x314   :  { %v2544_v1 = vmax.f32 %v2540_v7, %v2542_v31  ;;  %v2816_v7 = vld [vmem:[%s10817_s5 + $0x118] sm:$0xff]  ;;  %v9622_v54 = vld [vmem:[%s10812_s0 + $0x21] sm:$0x3f] }
 0x315   :  { %v2545_v18 = vmax.f32 %v2541_v10, %v2543_v26  ;;  %v7257_v31 = vpack.c.bf16 %v2816_v7, %v2815_v35  ;;  %v2818_v10 = vld [vmem:[%s10817_s5 + $0x128] sm:$0xff]  ;;  %v6200_v35 = vld [vmem:[%s10813_s1 + $0xe0] sm:$0xff]  ;;  %v6202_v7 = vld [vmem:[%s10813_s1 + $0xf0] sm:$0xf] }
 0x316   :  { %2548 = vrot.lane.b32.xlu0 %v2544_v1, %s7969_s22  ;;  %v7260_v26 = vpack.c.bf16 %v2818_v10, %v2817_v48  ;;  %v6211_v48 = vld [vmem:[%s10813_s1 + $0x118] sm:$0xff]  ;;  %v9645_v10 = vpack.c.bf16 %v6202_v7, %v6200_v35  ;;  %v6281_v0 = vld [vmem:[%s10815_s3 + $0x160] sm:$0xff]  ;;  %v6290_v7 = vld [vmem:[%s10815_s3 + $0x1a8] sm:$0xff] }
 0x317   :  { %2550 = vrot.lane.b32.xlu1 %v2545_v18, %s7969_s22  ;;  %v2820_v18 = vld [vmem:[%s10817_s5 + $0x138] sm:$0xff] }
 0x318   :  { %v6288_v35 = vld [vmem:[%s10815_s3 + $0x198] sm:$0xff] }
 0x388   :  { %v2549_v4 = vpop.permute.xlu0 %2548 }
 0x389   :  { %v2551_v55 = vpop.permute.xlu1 %2550 }
 0x38a   :  { %v2553_v14 = vsel %vm2552_vm7, %v2549_v4, %v2551_v55  ;;  %v6174_v4 = vld [vmem:[%s10813_s1 + $0x68] sm:$0xff]  ;;  %v6176_v55 = vld [vmem:[%s10813_s1 + $0x78] sm:$0xf] }
 0x38b   :  { %v2555_v63 = vmax.f32 %v2544_v1, %v2553_v14  ;;  %v2819_v1 = vld [vmem:[%s10817_s5 + $0x130] sm:$0xff]  ;;  %v9484_v16 = vpack.c.bf16 %v6176_v55, %v6174_v4  ;;  %v9687_v4 = vpack.c.bf16 %v6214_v5, %v6212_v11  ;;  %v6293_v11 = vld [vmem:[%s10815_s3 + $0x1c0] sm:$0xff] }
 0x38c   :  { %v7263_v36 = vpack.c.bf16 %v2820_v18, %v2819_v1  ;;  %v6175_v14 = vld [vmem:[%s10813_s1 + $0x70] sm:$0xf]  ;;  %v6208_v1 = vld [vmem:[%s10813_s1 + $0x100] sm:$0xff] }
 0x38d   :  { %v9340_v45 = vmax.f32 %v2555_v63, 0.0  ;;  %v9492_v63 = vpack.c.bf16 %v6175_v14, %v6173_v12  ;;  %v6210_v18 = vld [vmem:[%s10813_s1 + $0x110] sm:$0xff]  ;;  %v2557_v12 = vld [vmem:[%s10818_s6] sm:$0x1] }
 0x38e   :  { %v9665_v23 = vpack.c.bf16 %v6210_v18, %v6208_v1  ;;  %v9695_v55 = vld [vmem:[%s10812_s0 + $0x31] sm:$0x3f] }
 0x38f   :  { %6528 = vmatmul.mubr.msk.f32.vlgmr.msra.gmra.mrb[6].mxu0 %vm2568_vm8, %v9340_v45  ;;  %v2653_v58 = vrot.slane %v9340_v45, 1  ;;  %v2737_v46 = vrot.slane %v9340_v45, 2  ;;  %v2821_v51 = vrot.slane %v9340_v45, 3  ;;  %v2987_v45 = vld [vmem:[%s10813_s1 + $0x8] sm:$0xff] }
 0x390   :  { %7222 = vmatpush3.bf16.msra.mxu0 %v7221_v21  ;;  %6550 = vmatprep.mubr.msk.f32.mxu0 %vm7968_vm6, %v10845_v59  ;;  %v9506_v17 = vpack.c.bf16 %v2989_v22, %v2987_v45  ;;  %v6268_v21 = vld [vmem:[%s10815_s3 + $0xf8] sm:$0xff] }
 0x391   :  { %7223 = vmatprep.subr.bf16.mxu0 %v7967_v62 }
 0x394   :  { %7225 = vmatpush3.bf16.msra.mxu0 %v7224_v27  ;;  %v2986_v27 = vld [vmem:[%s10813_s1] sm:$0xff] }
 0x395   :  { %7226 = vmatprep.subr.bf16.mxu0 %v7967_v62  ;;  %v9521_v39 = vpack.c.bf16 %v2988_v28, %v2986_v27  ;;  %v6168_v28 = vld [vmem:[%s10812_s0 + $0x28] sm:$0x3f] }
 0x398   :  { %7228 = vmatpush3.bf16.msra.mxu0 %v7227_v34  ;;  %v2993_v34 = vld [vmem:[%s10813_s1 + $0x38] sm:$0xf] }
 0x399   :  { %7229 = vmatprep.subr.bf16.mxu0 %v7967_v62 }
 0x39c   :  { %7231 = vmatpush3.bf16.msra.mxu0 %v7230_v43  ;;  %v9528_v43 = vpack.c.bf16 %v2993_v34, %v2991_v33  ;;  %v6167_v33 = vld [vmem:[%s10812_s0 + $0x20] sm:$0x3f]  ;;  %v6267_v34 = vld [vmem:[%s10815_s3 + $0xf0] sm:$0xff] }
 0x39d   :  { %7232 = vmatprep.subr.bf16.mxu0 %v7967_v62 }
 0x3a0   :  { %7234 = vmatpush3.bf16.msra.mxu0 %v7233_v56  ;;  %v6185_v56 = vld [vmem:[%s10813_s1 + $0x88] sm:$0xff] }
 0x3a1   :  { %7235 = vmatprep.subr.bf16.mxu0 %v7967_v62 }
 0x3a3   :  { %6551 = vmatmul.mubr.msk.f32.vlgmr.msra.gmra.mrb[6].mxu0 %vm2568_vm8, %v2653_v58  ;;  %v6184_v58 = vld [vmem:[%s10813_s1 + $0x80] sm:$0xff] }
 0x3a4   :  { %7237 = vmatpush3.bf16.msra.mxu0 %v7236_v53  ;;  %6573 = vmatprep.mubr.msk.f32.mxu0 %vm7968_vm6, %v10845_v59  ;;  %v9551_v53 = vpack.c.bf16 %v6187_v60, %v6185_v56  ;;  %v9569_v29 = vpack.c.bf16 %v6186_v3, %v6184_v58  ;;  %v6276_v58 = vld [vmem:[%s10815_s3 + $0x138] sm:$0xff] }
 0x3a5   :  { %7238 = vmatprep.subr.bf16.mxu0 %v7967_v62 }
 0x3a8   :  { %7240 = vmatpush3.bf16.msra.mxu0 %v7239_v25  ;;  %v6191_v25 = vld [vmem:[%s10813_s1 + $0xb8] sm:$0xf] }
 0x3a9   :  { %7241 = vmatprep.subr.bf16.mxu0 %v7967_v62 }
 0x3ac   :  { %7243 = vmatpush3.bf16.msra.mxu0 %v7242_v44  ;;  %v9576_v44 = vpack.c.bf16 %v6191_v25, %v6189_v8  ;;  %v6278_v25 = vld [vmem:[%s10815_s3 + $0x148] sm:$0xff] }
 0x3ad   :  { %7244 = vmatprep.subr.bf16.mxu0 %v7967_v62 }
 0x3b0   :  { %7246 = vmatpush3.bf16.msra.mxu0 %v7245_v9  ;;  %v6197_v9 = vld [vmem:[%s10813_s1 + $0xc8] sm:$0xff] }
 0x3b1   :  { %7247 = vmatprep.subr.bf16.mxu0 %v7967_v62 }
 0x3b4   :  { %7249 = vmatpush3.bf16.msra.mxu0 %v7248_v32  ;;  %v9599_v32 = vpack.c.bf16 %v6199_v19, %v6197_v9  ;;  %v6282_v9 = vld [vmem:[%s10815_s3 + $0x168] sm:$0xff] }
 0x3b5   :  { %7250 = vmatprep.subr.bf16.mxu0 %v7967_v62 }
 0x3b7   :  { %6574 = vmatmul.mubr.msk.f32.vlgmr.msra.gmra.mrb[6].mxu0 %vm2568_vm8, %v2737_v46  ;;  %v6203_v46 = vld [vmem:[%s10813_s1 + $0xf8] sm:$0xf] }
 0x3b8   :  { %7252 = vmatpush3.bf16.msra.mxu0 %v7251_v13  ;;  %6596 = vmatprep.mubr.msk.f32.mxu0 %vm7968_vm6, %v10845_v59  ;;  %v6201_v13 = vld [vmem:[%s10813_s1 + $0xe8] sm:$0xff] }
 0x3b9   :  { %7253 = vmatprep.subr.bf16.mxu0 %v7967_v62 }
 0x3bc   :  { %7255 = vmatpush3.bf16.msra.mxu0 %v7254_v24  ;;  %v9624_v24 = vpack.c.bf16 %v6203_v46, %v6201_v13  ;;  %v6286_v13 = vld [vmem:[%s10815_s3 + $0x188] sm:$0xff] }
 0x3bd   :  { %7256 = vmatprep.subr.bf16.mxu0 %v7967_v62 }
 0x3c0   :  { %7258 = vmatpush3.bf16.msra.mxu0 %v7257_v31  ;;  %v6209_v31 = vld [vmem:[%s10813_s1 + $0x108] sm:$0xff] }
 0x3c1   :  { %7259 = vmatprep.subr.bf16.mxu0 %v7967_v62 }
 0x3c4   :  { %7261 = vmatpush3.bf16.msra.mxu0 %v7260_v26  ;;  %v9647_v26 = vpack.c.bf16 %v6211_v48, %v6209_v31  ;;  %v7494_v48 = vpack.c.bf16 %v6290_v7, %v6288_v35  ;;  %v4593_v35 = vld [vmem:[%s10815_s3 + $0x78] sm:$0xff] }
 0x3c5   :  { %7262 = vmatprep.subr.bf16.mxu0 %v7967_v62 }
 0x3c8   :  { %7264 = vmatpush3.bf16.msra.mxu0 %v7263_v36  ;;  %v6213_v36 = vld [vmem:[%s10813_s1 + $0x128] sm:$0xff] }
 0x3c9   :  { %7375 = vmatprep.subr.bf16.mxu0 %v9464_v2 }
 0x3cb   :  { %6597 = vmatmul.mubr.msk.f32.vlgmr.msra.gmra.mrb[6].mxu0 %vm2568_vm8, %v2821_v51  ;;  %v6215_v51 = vld [vmem:[%s10813_s1 + $0x138] sm:$0xf] }
 0x3cc   :  { %3884 = vmatprep.mubr.f32.mxu0 %v10845_v59  ;;  %7377 = vmatpush1.bf16.msra.mxu0 %v9473_v15  ;;  %v9672_v41 = vpack.c.bf16 %v6215_v51, %v6213_v36  ;;  %v6292_v51 = vld [vmem:[%s10815_s3 + $0x1b8] sm:$0xff] }
 0x3cd   :  { %7380 = vmatprep.subr.msk.bf16.mxu0 %vm8047_vm2, %v9484_v16 }
 0x3d0   :  { %7383 = vmatpush1.bf16.msk.msra.mxu0 %vm8047_vm2, %v9492_v63 }
 0x3d1   :  { %7385 = vmatprep.subr.bf16.mxu0 %v9506_v17 }
 0x3d3   :  { %6237 = vmatmul.mubr.msk.f32.vlgmr.msra.gmra.mrb[8].mxu0 %vm53_vm3, %v9526_v40 }
 0x3d4   :  { %7387 = vmatpush1.bf16.msra.mxu0 %v9521_v39  ;;  %3955 = vmatprep.mubr.f32.mxu0 %v10845_v59 }
 0x3d5   :  { %7390 = vmatprep.subr.msk.bf16.mxu0 %vm8047_vm2, %v9528_v43 }
 0x3d8   :  { %7393 = vmatpush1.bf16.msk.msra.mxu0 %vm8047_vm2, %v9549_v61 }
 0x3d9   :  { %7395 = vmatprep.subr.bf16.mxu0 %v9551_v53 }
 0x3db   :  { %6240 = vmatmul.mubr.msk.f32.vlgmr.msra.gmra.mrb[8].mxu0 %vm53_vm3, %v9574_v42 }
 0x3dc   :  { %7397 = vmatpush1.bf16.msra.mxu0 %v9569_v29  ;;  %4026 = vmatprep.mubr.f32.mxu0 %v10845_v59 }
 0x3dd   :  { %7400 = vmatprep.subr.msk.bf16.mxu0 %vm8047_vm2, %v9576_v44 }
 0x3e0   :  { %7403 = vmatpush1.bf16.msk.msra.mxu0 %vm8047_vm2, %v9597_v30 }
 0x3e1   :  { %7405 = vmatprep.subr.bf16.mxu0 %v9599_v32 }
 0x3e3   :  { %6243 = vmatmul.mubr.msk.f32.vlgmr.msra.gmra.mrb[8].mxu0 %vm53_vm3, %v9622_v54 }
 0x3e4   :  { %7407 = vmatpush1.bf16.msra.mxu0 %v9617_v38  ;;  %4099 = vmatprep.mubr.f32.mxu0 %v10845_v59 }
 0x3e5   :  { %7410 = vmatprep.subr.msk.bf16.mxu0 %vm8047_vm2, %v9624_v24 }
 0x3e8   :  { %7413 = vmatpush1.bf16.msk.msra.mxu0 %vm8047_vm2, %v9645_v10 }
 0x3e9   :  { %7415 = vmatprep.subr.bf16.mxu0 %v9647_v26 }
 0x3eb   :  { %6246 = vmatmul.mubr.msk.f32.vlgmr.msra.gmra.mrb[8].mxu0 %vm53_vm3, %v9670_v57 }
 0x3ec   :  { %7417 = vmatpush1.bf16.msra.mxu0 %v9665_v23  ;;  %4176 = vmatprep.mubr.f32.mxu0 %v10845_v59 }
 0x3ed   :  { %7420 = vmatprep.subr.msk.bf16.mxu0 %vm8047_vm2, %v9672_v41 }
 0x3f0   :  { %7423 = vmatpush1.bf16.msk.msra.mxu0 %vm8047_vm2, %v9687_v4 }
 0x3f3   :  { %6250 = vmatmul.mubr.msk.f32.vlgmr.msra.gmra.mrb[8].mxu0 %vm53_vm3, %v9695_v55 }
 0x3f4   :  { %4705 = vmatprep.mubr.f32.mxu0 %v10845_v59 }
 0x49e   :  { %v2890_v14 = vpop.f32.mrb[6].mxu0 }
 0x49f   :  { %v7825_v45 = vadd.f32 %v2890_v14, %v2557_v12  ;;  %v6598_v22 = vpop.f32.mrb[7].mxu0  ;;  %v6296_v12 = vld [vmem:[%s10815_s3 + $0x1d8] sm:$0xff] }
 0x4a1   :  { %v2895_v27 = vmax.f32 %v7825_v45, 0.0  ;;  %v6295_v45 = vld [vmem:[%s10815_s3 + $0x1d0] sm:$0xff] }
 0x4a3   :  { %6614 = vmatmul.mubr.msk.f32.vlgmr.msra.gmra.mrb[8].mxu1 %vm2904_vm10, %v2895_v27  ;;  %v4579_v27 = vld [vmem:[%s10815_s3 + $0x8] sm:$0xff] }
 0x4a4   :  { %7277 = vmatpush1.bf16.msra.mxu1 %v9473_v15  ;;  %3077 = vmatprep.mubr.f32.mxu1 %v10845_v59 }
 0x4a5   :  { %7280 = vmatprep.subr.msk.bf16.mxu1 %vm8047_vm2, %v9484_v16 }
 0x4a8   :  { %7283 = vmatpush1.bf16.msk.msra.mxu1 %vm8047_vm2, %v9492_v63 }
 0x4a9   :  { %7285 = vmatprep.subr.bf16.mxu1 %v9506_v17 }
 0x4ab   :  { %6179 = vmatmul.mubr.msk.f32.vlgmr.msra.gmra.mrb[10].mxu1 %vm53_vm3, %v6168_v28 }
 0x4ac   :  { %7287 = vmatpush1.bf16.msra.mxu1 %v9521_v39  ;;  %3157 = vmatprep.mubr.f32.mxu1 %v10845_v59 }
 0x4ad   :  { %7290 = vmatprep.subr.msk.bf16.mxu1 %vm8047_vm2, %v9528_v43 }
 0x4b0   :  { %7293 = vmatpush1.bf16.msk.msra.mxu1 %vm8047_vm2, %v9549_v61 }
 0x4b1   :  { %7295 = vmatprep.subr.bf16.mxu1 %v9551_v53 }
 0x4b3   :  { %6182 = vmatmul.mubr.msk.f32.vlgmr.msra.gmra.mrb[10].mxu1 %vm53_vm3, %v6167_v33 }
 0x4b4   :  { %7297 = vmatpush1.bf16.msra.mxu1 %v9569_v29  ;;  %3247 = vmatprep.mubr.f32.mxu1 %v10845_v59 }
 0x4b5   :  { %7300 = vmatprep.subr.msk.bf16.mxu1 %vm8047_vm2, %v9576_v44 }
 0x4b8   :  { %7303 = vmatpush1.bf16.msk.msra.mxu1 %vm8047_vm2, %v9597_v30 }
 0x4b9   :  { %7305 = vmatprep.subr.bf16.mxu1 %v9599_v32 }
 0x4bb   :  { %6194 = vmatmul.mubr.msk.f32.vlgmr.msra.gmra.mrb[10].mxu1 %vm53_vm3, %v9574_v42 }
 0x4bc   :  { %7307 = vmatpush1.bf16.msra.mxu1 %v9617_v38  ;;  %3339 = vmatprep.mubr.f32.mxu1 %v10845_v59 }
 0x4bd   :  { %7310 = vmatprep.subr.msk.bf16.mxu1 %vm8047_vm2, %v9624_v24 }
 0x4c0   :  { %7313 = vmatpush1.bf16.msk.msra.mxu1 %vm8047_vm2, %v9645_v10 }
 0x4c1   :  { %7315 = vmatprep.subr.bf16.mxu1 %v9647_v26 }
 0x4c3   :  { %6206 = vmatmul.mubr.msk.f32.vlgmr.msra.gmra.mrb[10].mxu1 %vm53_vm3, %v9526_v40 }
 0x4c4   :  { %7317 = vmatpush1.bf16.msra.mxu1 %v9665_v23  ;;  %3430 = vmatprep.mubr.f32.mxu1 %v10845_v59 }
 0x4c5   :  { %7320 = vmatprep.subr.msk.bf16.mxu1 %vm8047_vm2, %v9672_v41 }
 0x4c8   :  { %7323 = vmatpush1.bf16.msk.msra.mxu1 %vm8047_vm2, %v9687_v4 }
 0x4c9   :  { %7325 = vmatprep.subr.bf16.mxu1 %v9464_v2 }
 0x4cb   :  { %6218 = vmatmul.mubr.msk.f32.vlgmr.msra.gmra.mrb[10].mxu1 %vm53_vm3, %v9622_v54 }
 0x4cc   :  { %7327 = vmatpush1.bf16.msra.mxu1 %v9473_v15  ;;  %3517 = vmatprep.mubr.f32.mxu1 %v10845_v59 }
 0x4cd   :  { %7330 = vmatprep.subr.msk.bf16.mxu1 %vm8047_vm2, %v9484_v16 }
 0x4d0   :  { %7333 = vmatpush1.bf16.msk.msra.mxu1 %vm8047_vm2, %v9492_v63 }
 0x4d1   :  { %7335 = vmatprep.subr.bf16.mxu1 %v9506_v17 }
 0x4d3   :  { %6221 = vmatmul.mubr.msk.f32.vlgmr.msra.gmra.mrb[12].mxu1 %vm53_vm3, %v9574_v42  ;;  %v7482_v42 = vpack.c.bf16 %v6278_v25, %v6276_v58 }
 0x4d4   :  { %7337 = vmatpush1.bf16.msra.mxu1 %v9521_v39  ;;  %3588 = vmatprep.mubr.f32.mxu1 %v10845_v59 }
 0x4d5   :  { %7340 = vmatprep.subr.msk.bf16.mxu1 %vm8047_vm2, %v9528_v43 }
 0x4d8   :  { %7343 = vmatpush1.bf16.msk.msra.mxu1 %vm8047_vm2, %v9549_v61 }
 0x4d9   :  { %7345 = vmatprep.subr.bf16.mxu1 %v9551_v53 }
 0x4db   :  { %6224 = vmatmul.mubr.msk.f32.vlgmr.msra.gmra.mrb[12].mxu1 %vm53_vm3, %v6168_v28  ;;  %v4581_v28 = vld [vmem:[%s10815_s3 + $0x18] sm:$0xff] }
 0x4dc   :  { %7347 = vmatpush1.bf16.msra.mxu1 %v9569_v29  ;;  %3659 = vmatprep.mubr.f32.mxu1 %v10845_v59 }
 0x4dd   :  { %7350 = vmatprep.subr.msk.bf16.mxu1 %vm8047_vm2, %v9576_v44 }
 0x4e0   :  { %7353 = vmatpush1.bf16.msk.msra.mxu1 %vm8047_vm2, %v9597_v30 }
 0x4e1   :  { %7355 = vmatprep.subr.bf16.mxu1 %v9599_v32 }
 0x4e3   :  { %6227 = vmatmul.mubr.msk.f32.vlgmr.msra.gmra.mrb[12].mxu1 %vm53_vm3, %v9526_v40 }
 0x4e4   :  { %7357 = vmatpush1.bf16.msra.mxu1 %v9617_v38  ;;  %3732 = vmatprep.mubr.f32.mxu1 %v10845_v59 }
 0x4e5   :  { %7360 = vmatprep.subr.msk.bf16.mxu1 %vm8047_vm2, %v9624_v24 }
 0x4e8   :  { %7363 = vmatpush1.bf16.msk.msra.mxu1 %vm8047_vm2, %v9645_v10 }
 0x4e9   :  { %7365 = vmatprep.subr.bf16.mxu1 %v9647_v26 }
 0x4eb   :  { %6230 = vmatmul.mubr.msk.f32.vlgmr.msra.gmra.mrb[12].mxu1 %vm53_vm3, %v9622_v54 }
 0x4ec   :  { %7367 = vmatpush1.bf16.msra.mxu1 %v9665_v23  ;;  %3809 = vmatprep.mubr.f32.mxu1 %v10845_v59 }
 0x4ed   :  { %7370 = vmatprep.subr.msk.bf16.mxu1 %vm8047_vm2, %v9672_v41 }
 0x4f0   :  { %7373 = vmatpush1.bf16.msk.msra.mxu1 %vm8047_vm2, %v9687_v4 }
 0x4f1   :  { %7425 = vmatprep.subr.bf16.mxu1 %v9464_v2  ;;  %v6263_v2 = vld [vmem:[%s10812_s0 + $0x39] sm:$0x3f] }
 0x4f3   :  { %6234 = vmatmul.mubr.msk.f32.vlgmr.msra.gmra.mrb[12].mxu1 %vm53_vm3, %v9670_v57 }
 0x4f4   :  { %7427 = vmatpush1.bf16.msra.mxu1 %v9473_v15  ;;  %4251 = vmatprep.mubr.f32.mxu1 %v10845_v59  ;;  %v9874_v15 = vpop.f32.mrb[8].mxu0 }
 0x4f5   :  { %7430 = vmatprep.subr.msk.bf16.mxu1 %vm8047_vm2, %v9484_v16  ;;  %v9876_v16 = vpop.f32.mrb[9].mxu0 }
 0x4f8   :  { %7433 = vmatpush1.bf16.msk.msra.mxu1 %vm8047_vm2, %v9492_v63  ;;  %v2903_v63 = vld [vmem:[%s10820_s8] sm:$0x1] }
 0x4f9   :  { %7435 = vmatprep.subr.bf16.mxu1 %v9506_v17  ;;  %v6270_v17 = vld [vmem:[%s10815_s3 + $0x108] sm:$0xff] }
 0x4fb   :  { %6253 = vmatmul.mubr.msk.f32.vlgmr.msra.gmra.mrb[14].mxu1 %vm53_vm3, %v9622_v54  ;;  %v6283_v54 = vld [vmem:[%s10815_s3 + $0x170] sm:$0xff] }
 0x4fc   :  { %7437 = vmatpush1.bf16.msra.mxu1 %v9521_v39  ;;  %4322 = vmatprep.mubr.f32.mxu1 %v10845_v59  ;;  %v7474_v39 = vpack.c.bf16 %v6270_v17, %v6268_v21  ;;  %v7502_v21 = vpack.c.bf16 %v4581_v28, %v4579_v27  ;;  %v4602_v27 = vld [vmem:[%s10815_s3 + $0xc0] sm:$0xff]  ;;  %v4604_v28 = vld [vmem:[%s10815_s3 + $0xd0] sm:$0xff] }
 0x4fd   :  { %7440 = vmatprep.subr.msk.bf16.mxu1 %vm8047_vm2, %v9528_v43  ;;  %v6272_v43 = vld [vmem:[%s10815_s3 + $0x118] sm:$0xff] }
 0x4fe   :  { %v7478_v60 = vpack.c.bf16 %v6274_v49, %v6272_v43  ;;  %7475 = vmatprep.subr.bf16.mxu0 %v7474_v39 }
 0x500   :  { %7443 = vmatpush1.bf16.msk.msra.mxu1 %vm8047_vm2, %v9549_v61  ;;  %v6271_v61 = vld [vmem:[%s10815_s3 + $0x110] sm:$0xff] }
 0x501   :  { %7445 = vmatprep.subr.bf16.mxu1 %v9551_v53  ;;  %v6273_v53 = vld [vmem:[%s10815_s3 + $0x120] sm:$0xff] }
 0x503   :  { %6256 = vmatmul.mubr.msk.f32.vlgmr.msra.gmra.mrb[14].mxu1 %vm53_vm3, %v9526_v40  ;;  %v6269_v40 = vld [vmem:[%s10815_s3 + $0x100] sm:$0xff] }
 0x504   :  { %7447 = vmatpush1.bf16.msra.mxu1 %v9569_v29  ;;  %4393 = vmatprep.mubr.f32.mxu1 %v10845_v59  ;;  %v7476_v56 = vpack.c.bf16 %v6269_v40, %v6267_v34  ;;  %v7480_v29 = vpack.c.bf16 %v6273_v53, %v6271_v61 }
 0x505   :  { %7450 = vmatprep.subr.msk.bf16.mxu1 %vm8047_vm2, %v9576_v44  ;;  %v6275_v44 = vld [vmem:[%s10815_s3 + $0x130] sm:$0xff] }
 0x506   :  { %7477 = vmatpush1.bf16.msra.mxu0 %v7476_v56  ;;  %v7484_v19 = vpack.c.bf16 %v6277_v47, %v6275_v44  ;;  %v4585_v44 = vld [vmem:[%s10815_s3 + $0x38] sm:$0xff] }
 0x507   :  { %7479 = vmatprep.subr.bf16.mxu0 %v7478_v60 }
 0x508   :  { %7453 = vmatpush1.bf16.msk.msra.mxu1 %vm8047_vm2, %v9597_v30  ;;  %v7486_v30 = vpack.c.bf16 %v6282_v9, %v6280_v50 }
 0x509   :  { %7455 = vmatprep.subr.bf16.mxu1 %v9599_v32  ;;  %v6279_v32 = vld [vmem:[%s10815_s3 + $0x150] sm:$0xff] }
 0x50a   :  { %7481 = vmatpush1.bf16.msra.mxu0 %v7480_v29  ;;  %v7488_v46 = vpack.c.bf16 %v6281_v0, %v6279_v32  ;;  %v4584_v32 = vld [vmem:[%s10815_s3 + $0x30] sm:$0xff]  ;;  %v4587_v0 = vld [vmem:[%s10815_s3 + $0x48] sm:$0xff] }
 0x50b   :  { %6259 = vmatmul.mubr.msk.f32.vlgmr.msra.gmra.mrb[14].mxu1 %vm53_vm3, %v9670_v57  ;;  %7483 = vmatprep.subr.bf16.mxu0 %v7482_v42 }
 0x50c   :  { %7457 = vmatpush1.bf16.msra.mxu1 %v9617_v38  ;;  %4466 = vmatprep.mubr.f32.mxu1 %v10845_v59  ;;  %v7490_v38 = vpack.c.bf16 %v6286_v13, %v6284_v20  ;;  %v4589_v20 = vld [vmem:[%s10815_s3 + $0x58] sm:$0xff] }
 0x50d   :  { %7460 = vmatprep.subr.msk.bf16.mxu1 %vm8047_vm2, %v9624_v24  ;;  %v6285_v24 = vld [vmem:[%s10815_s3 + $0x180] sm:$0xff] }
 0x50e   :  { %7485 = vmatpush1.bf16.msra.mxu0 %v7484_v19  ;;  %v7492_v31 = vpack.c.bf16 %v6285_v24, %v6283_v54  ;;  %v4588_v54 = vld [vmem:[%s10815_s3 + $0x50] sm:$0xff]  ;;  %v4591_v24 = vld [vmem:[%s10815_s3 + $0x68] sm:$0xff] }
 0x50f   :  { %7487 = vmatprep.subr.bf16.mxu0 %v7486_v30 }
 0x510   :  { %7463 = vmatpush1.bf16.msk.msra.mxu1 %vm8047_vm2, %v9645_v10  ;;  %v6287_v10 = vld [vmem:[%s10815_s3 + $0x190] sm:$0xff] }
 0x511   :  { %7465 = vmatprep.subr.bf16.mxu1 %v9647_v26  ;;  %v6289_v26 = vld [vmem:[%s10815_s3 + $0x1a0] sm:$0xff] }
 0x512   :  { %7489 = vmatpush1.bf16.msra.mxu0 %v7488_v46  ;;  %v7496_v1 = vpack.c.bf16 %v6289_v26, %v6287_v10  ;;  %v4592_v10 = vld [vmem:[%s10815_s3 + $0x70] sm:$0xff]  ;;  %v4595_v26 = vld [vmem:[%s10815_s3 + $0x88] sm:$0xff] }
 0x513   :  { %6262 = vmatmul.mubr.msk.f32.vlgmr.msra.gmra.mrb[14].mxu1 %vm53_vm3, %v9695_v55  ;;  %7491 = vmatprep.subr.bf16.mxu0 %v7490_v38 }
 0x514   :  { %7467 = vmatpush1.bf16.msra.mxu1 %v9665_v23  ;;  %4543 = vmatprep.mubr.f32.mxu1 %v10845_v59  ;;  %v6294_v23 = vld [vmem:[%s10815_s3 + $0x1c8] sm:$0xff] }
 0x515   :  { %7470 = vmatprep.subr.msk.bf16.mxu1 %vm8047_vm2, %v9672_v41  ;;  %v7498_v57 = vpack.c.bf16 %v6294_v23, %v6292_v51  ;;  %v6291_v41 = vld [vmem:[%s10815_s3 + $0x1b0] sm:$0xff]  ;;  %v4594_v51 = vld [vmem:[%s10815_s3 + $0x80] sm:$0xff] }
 0x516   :  { %7493 = vmatpush1.bf16.msra.mxu0 %v7492_v31  ;;  %v7500_v5 = vpack.c.bf16 %v6293_v11, %v6291_v41  ;;  %v4596_v23 = vld [vmem:[%s10815_s3 + $0x90] sm:$0xff]  ;;  %v4601_v41 = vld [vmem:[%s10815_s3 + $0xb8] sm:$0xff] }
 0x517   :  { %7495 = vmatprep.subr.bf16.mxu0 %v7494_v48  ;;  %v10083_v11 = vpack.c.bf16 %v4596_v23, %v4594_v51  ;;  %v6323_v51 = vld [vmem:[%s10815_s3 + $0x290] sm:$0xff] }
 0x518   :  { %7473 = vmatpush1.bf16.msk.msra.mxu1 %vm8047_vm2, %v9687_v4  ;;  %v3439_v4 = vld [vmem:[%s10814_s2] sm:$0x3] }
 0x519   :  { %7531 = vmatprep.subr.bf16.mxu1 %v7474_v39  ;;  %v3444_v55 = vrot.slane %v3439_v4, %v10856_v37  ;;  %v3448_v14 = vrot.slane %v3439_v4, %v10857_v6  ;;  %v4598_v4 = vld [vmem:[%s10815_s3 + $0xa0] sm:$0xff] }
 0x51a   :  { %7497 = vmatpush1.bf16.msra.mxu0 %v7496_v1 }
 0x51b   :  { %6266 = vmatmul.mubr.msk.f32.vlgmr.msra.gmra.mrb[14].mxu1 %vm53_vm3, %v6263_v2  ;;  %7499 = vmatprep.subr.bf16.mxu0 %v7498_v57  ;;  %v4185_v49 = vadd.f32 %v9874_v15, %v3444_v55  ;;  %v4578_v15 = vld [vmem:[%s10815_s3] sm:$0xff] }
 0x51c   :  { %4853 = vmatprep.mubr.f32.mxu1 %v10845_v59  ;;  %7533 = vmatpush1.bf16.msra.mxu1 %v7476_v56 }
 0x51d   :  { %7535 = vmatprep.subr.bf16.mxu1 %v7478_v60  ;;  %v4186_v60 = vadd.f32 %v9876_v16, %v3448_v14  ;;  %v4580_v16 = vld [vmem:[%s10815_s3 + $0x10] sm:$0xff] }
 0x51e   :  { %7501 = vmatpush1.bf16.msra.mxu0 %v7500_v5  ;;  %v10007_v50 = vpack.c.bf16 %v4580_v16, %v4578_v15  ;;  %v6310_v15 = vld [vmem:[%s10815_s3 + $0x228] sm:$0xff] }
 0x51f   :  { %4669 = vmatprep.subr.mxu0 %v6296_v12 }
 0x520   :  { %7537 = vmatpush1.bf16.msra.mxu1 %v7480_v29 }
 0x521   :  { %7539 = vmatprep.subr.bf16.mxu1 %v7482_v42  ;;  %v4583_v42 = vld [vmem:[%s10815_s3 + $0x28] sm:$0xff] }
 0x522   :  { %4670 = vmatpush1.msra.mxu0 %v6295_v45 }
 0x523   :  { %7503 = vmatprep.subr.bf16.mxu0 %v7502_v21 }
 0x524   :  { %7541 = vmatpush1.bf16.msra.mxu1 %v7484_v19  ;;  %v10010_v19 = vpack.c.bf16 %v4585_v44, %v4583_v42  ;;  %v6309_v44 = vld [vmem:[%s10815_s3 + $0x220] sm:$0xff] }
 0x525   :  { %7543 = vmatprep.subr.bf16.mxu1 %v7486_v30  ;;  %v4582_v30 = vld [vmem:[%s10815_s3 + $0x20] sm:$0xff] }
 0x526   :  { %v10028_v13 = vpack.c.bf16 %v4584_v32, %v4582_v30  ;;  %v6311_v30 = vld [vmem:[%s10815_s3 + $0x230] sm:$0xff] }
 0x527   :  { %v10198_v32 = vpack.c.bf16 %v6311_v30, %v6309_v44  ;;  %v6349_v44 = vld [vmem:[%s10815_s3 + $0x350] sm:$0xff]  ;;  %v6351_v30 = vld [vmem:[%s10815_s3 + $0x360] sm:$0xff] }
 0x528   :  { %7545 = vmatpush1.bf16.msra.mxu1 %v7488_v46  ;;  %v10032_v46 = vpack.c.bf16 %v4589_v20, %v4587_v0  ;;  %v6313_v20 = vld [vmem:[%s10815_s3 + $0x240] sm:$0xff] }
 0x529   :  { %7547 = vmatprep.subr.bf16.mxu1 %v7490_v38  ;;  %v4586_v38 = vld [vmem:[%s10815_s3 + $0x40] sm:$0xff] }
 0x52a   :  { %v10047_v7 = vpack.c.bf16 %v4588_v54, %v4586_v38  ;;  %v6315_v38 = vld [vmem:[%s10815_s3 + $0x250] sm:$0xff] }
 0x52b   :  { %v10218_v54 = vpack.c.bf16 %v6315_v38, %v6313_v20  ;;  %v6353_v20 = vld [vmem:[%s10815_s3 + $0x370] sm:$0xff]  ;;  %v6355_v38 = vld [vmem:[%s10815_s3 + $0x380] sm:$0xff] }
 0x52c   :  { %7549 = vmatpush1.bf16.msra.mxu1 %v7492_v31  ;;  %v10050_v31 = vpack.c.bf16 %v4593_v35, %v4591_v24  ;;  %v6317_v35 = vld [vmem:[%s10815_s3 + $0x260] sm:$0xff] }
 0x52d   :  { %7551 = vmatprep.subr.bf16.mxu1 %v7494_v48  ;;  %v4590_v48 = vld [vmem:[%s10815_s3 + $0x60] sm:$0xff] }
 0x530   :  { %7553 = vmatpush1.bf16.msra.mxu1 %v7496_v1  ;;  %v4597_v1 = vld [vmem:[%s10815_s3 + $0x98] sm:$0xff] }
 0x531   :  { %7555 = vmatprep.subr.bf16.mxu1 %v7498_v57  ;;  %v4599_v57 = vld [vmem:[%s10815_s3 + $0xa8] sm:$0xff] }
 0x534   :  { %7557 = vmatpush1.bf16.msra.mxu1 %v7500_v5  ;;  %v10086_v5 = vpack.c.bf16 %v4601_v41, %v4599_v57  ;;  %v6325_v41 = vld [vmem:[%s10815_s3 + $0x2a0] sm:$0xff] }
 0x535   :  { %4817 = vmatprep.subr.mxu1 %v6296_v12  ;;  %v4603_v12 = vld [vmem:[%s10815_s3 + $0xc8] sm:$0xff] }
 0x538   :  { %4818 = vmatpush1.msra.mxu1 %v6295_v45 }
 0x539   :  { %7559 = vmatprep.subr.bf16.mxu1 %v7502_v21  ;;  %v6304_v21 = vld [vmem:[%s10815_s3 + $0x1f8] sm:$0xff] }
 0x576   :  { %v2978_v52 = vpop.f32.mrb[8].mxu1 }
 0x577   :  { %v2979_v3 = vadd.f32 %v2978_v52, %v2903_v63  ;;  %v6615_v8 = vpop.f32.mrb[9].mxu1 }
 0x579   :  { %2983 = vst.msk [vmem:[#allocation2] sm:$0x1] %vm2982_vm11, %v2979_v3 }
 0x59e   :  { %v3432_v18 = vpop.f32.mrb[10].mxu1 }
 0x59f   :  { %v3434_v36 = vpop.f32.mrb[11].mxu1  ;;  %v3451_v33 = vadd.f32 %v3444_v55, %v3432_v18  ;;  %v10065_v18 = vpack.c.bf16 %v4592_v10, %v4590_v48  ;;  %v6319_v48 = vld [vmem:[%s10815_s3 + $0x270] sm:$0xff] }
 0x5a0   :  { %v3452_v17 = vadd.f32 %v3448_v14, %v3434_v36  ;;  %v10068_v36 = vpack.c.bf16 %v4597_v1, %v4595_v26  ;;  %v10238_v10 = vpack.c.bf16 %v6319_v48, %v6317_v35  ;;  %v6321_v1 = vld [vmem:[%s10815_s3 + $0x280] sm:$0xff]  ;;  %v6357_v35 = vld [vmem:[%s10815_s3 + $0x390] sm:$0xff] }
 0x5a1   :  { %v10258_v23 = vpack.c.bf16 %v6323_v51, %v6321_v1  ;;  %v6359_v48 = vld [vmem:[%s10815_s3 + $0x3a0] sm:$0xff]  ;;  %v6367_v51 = vld [vmem:[%s10815_s3 + $0x3d0] sm:$0xff] }
 0x5a2   :  { %v6365_v1 = vld [vmem:[%s10815_s3 + $0x3c0] sm:$0xff] }
 0x5c6   :  { %v3811_v22 = vpop.f32.mrb[12].mxu1 }
 0x5c7   :  { %v3818_v2 = vadd.f32 %v3811_v22, %v3444_v55  ;;  %v3813_v63 = vpop.f32.mrb[13].mxu1 }
 0x5c8   :  { %v3819_v34 = vadd.f32 %v3813_v63, %v3448_v14  ;;  %v6302_v63 = vld [vmem:[%s10815_s3 + $0x1e8] sm:$0xff] }
 0x5c9   :  { %v4554_v39 = vmax.f32 %v3451_v33, %v3818_v2  ;;  %v10113_v33 = vpack.c.bf16 %v4604_v28, %v4602_v27  ;;  %v10119_v2 = vld [vmem:[%s10815_s3 + $0xe8] sm:$0xff]  ;;  %v6338_v27 = vld [vmem:[%s10815_s3 + $0x2f8] sm:$0xff] }
 0x5ca   :  { %v4555_v40 = vmax.f32 %v3452_v17, %v3819_v34  ;;  %v10132_v17 = vld [vmem:[%s10815_s3 + $0xe0] sm:$0xff]  ;;  %v10134_v34 = vpack.c.bf16 %v6304_v21, %v6302_v63  ;;  %v6340_v28 = vld [vmem:[%s10815_s3 + $0x308] sm:$0xff] }
 0x5cb   :  { %4558 = vrot.lane.b32.xlu0 %v4554_v39, %s7966_s24  ;;  %v10315_v21 = vpack.c.bf16 %v6340_v28, %v6338_v27  ;;  %v6375_v27 = vld [vmem:[%s10815_s3 + $0x410] sm:$0xff]  ;;  %v6378_v28 = vld [vmem:[%s10815_s3 + $0x428] sm:$0xff] }
 0x5cc   :  { %4560 = vrot.lane.b32.xlu1 %v4555_v40, %s7966_s24 }
 0x5ee   :  { %v4545_v43 = vpop.f32.mrb[14].mxu1 }
 0x5ef   :  { %v4552_v52 = vadd.f32 %v4545_v43, %v3444_v55  ;;  %v4547_v56 = vpop.f32.mrb[15].mxu1  ;;  %v4600_v55 = vld [vmem:[%s10815_s3 + $0xb0] sm:$0xff]  ;;  %v6301_v43 = vld [vmem:[%s10815_s3 + $0x1e0] sm:$0xff] }
 0x5f0   :  { %v4553_v61 = vadd.f32 %v4547_v56, %v3448_v14  ;;  %v4605_v14 = vld [vmem:[%s10815_s3 + $0xd8] sm:$0xff]  ;;  %v10101_v45 = vpack.c.bf16 %v4600_v55, %v4598_v4  ;;  %v6306_v56 = vld [vmem:[%s10815_s3 + $0x208] sm:$0xff]  ;;  %v6327_v4 = vld [vmem:[%s10815_s3 + $0x2b0] sm:$0xff] }
 0x5f1   :  { %v9987_v53 = vmax.f32 %v4185_v49, %v4552_v52  ;;  %v10104_v22 = vpack.c.bf16 %v4605_v14, %v4603_v12  ;;  %v6303_v49 = vld [vmem:[%s10815_s3 + $0x1f0] sm:$0xff]  ;;  %v6334_v55 = vld [vmem:[%s10815_s3 + $0x2d8] sm:$0xff]  ;;  %v6336_v12 = vld [vmem:[%s10815_s3 + $0x2e8] sm:$0xff] }
 0x5f2   :  { %v4567_v58 = vmax.f32 %v4186_v60, %v4553_v61  ;;  %v6308_v60 = vld [vmem:[%s10815_s3 + $0x218] sm:$0xff]  ;;  %v6333_v14 = vld [vmem:[%s10815_s3 + $0x2d0] sm:$0xff] }
 0x5f3   :  { %4570 = vrot.lane.b32.xlu0 %v9987_v53, %s7966_s24 }
 0x5f4   :  { %4572 = vrot.lane.b32.xlu1 %v4567_v58, %s7966_s24  ;;  %v10152_v58 = vpack.c.bf16 %v6303_v49, %v6301_v43  ;;  %v6344_v43 = vld [vmem:[%s10815_s3 + $0x328] sm:$0xff] }
 0x63d   :  { %v4559_v3 = vpop.permute.xlu0 %4558 }
 0x63e   :  { %v4561_v8 = vpop.permute.xlu1 %4560 }
 0x63f   :  { %v4562_v25 = vsel %vm1616_vm4, %v4559_v3, %v4561_v8  ;;  %v10156_v8 = vpack.c.bf16 %v6308_v60, %v6306_v56  ;;  %v6343_v56 = vld [vmem:[%s10815_s3 + $0x320] sm:$0xff]  ;;  %v6346_v60 = vld [vmem:[%s10815_s3 + $0x338] sm:$0xff] }
 0x640   :  { %v4564_v29 = vmax.f32 %v4554_v39, %v4562_v25  ;;  %v6305_v25 = vld [vmem:[%s10815_s3 + $0x200] sm:$0xff] }
 0x642   :  { %v10005_v47 = vmax.f32 %v4564_v29, 0.0  ;;  %v6307_v29 = vld [vmem:[%s10815_s3 + $0x210] sm:$0xff] }
 0x643   :  { %v10176_v16 = vpack.c.bf16 %v6307_v29, %v6305_v25  ;;  %v6345_v25 = vld [vmem:[%s10815_s3 + $0x330] sm:$0xff]  ;;  %v6347_v29 = vld [vmem:[%s10815_s3 + $0x340] sm:$0xff] }
 0x644   :  { %v4786_v9 = vrot.slane %v10005_v47, 1 }
 0x646   :  { %6299 = vmatmul.mubr.msk.f32.vlgmr.msra.gmra.mrb[16].mxu1 %vm1694_vm5, %v4786_v9 }
 0x647   :  { %7561 = vmatpush1.bf16.msra.mxu1 %v10007_v50  ;;  %4924 = vmatprep.mubr.f32.mxu1 %v10845_v59 }
 0x648   :  { %7563 = vmatprep.subr.bf16.mxu1 %v10010_v19 }
 0x64b   :  { %7565 = vmatpush1.bf16.msra.mxu1 %v10028_v13 }
 0x64c   :  { %7567 = vmatprep.subr.bf16.mxu1 %v10032_v46 }
 0x64f   :  { %7569 = vmatpush1.bf16.msra.mxu1 %v10047_v7 }
 0x650   :  { %7571 = vmatprep.subr.bf16.mxu1 %v10050_v31 }
 0x653   :  { %7573 = vmatpush1.bf16.msra.mxu1 %v10065_v18 }
 0x654   :  { %7575 = vmatprep.subr.bf16.mxu1 %v10068_v36 }
 0x657   :  { %7577 = vmatpush1.bf16.msra.mxu1 %v10083_v11 }
 0x658   :  { %7579 = vmatprep.subr.bf16.mxu1 %v10086_v5 }
 0x65b   :  { %7581 = vmatpush1.bf16.msra.mxu1 %v10101_v45 }
 0x65c   :  { %7583 = vmatprep.subr.bf16.mxu1 %v10104_v22 }
 0x65f   :  { %7585 = vmatpush1.bf16.msra.mxu1 %v10113_v33 }
 0x660   :  { %4888 = vmatprep.subr.mxu1 %v10119_v2 }
 0x663   :  { %4889 = vmatpush1.msra.mxu1 %v10132_v17 }
 0x664   :  { %7615 = vmatprep.subr.bf16.mxu1 %v10134_v34 }
 0x665   :  { %v4571_v39 = vpop.permute.xlu0 %4570 }
 0x666   :  { %v4573_v40 = vpop.permute.xlu1 %4572 }
 0x667   :  { %v4574_v52 = vsel %vm1616_vm4, %v4571_v39, %v4573_v40  ;;  %v6337_v39 = vld [vmem:[%s10815_s3 + $0x2f0] sm:$0xff]  ;;  %v6339_v40 = vld [vmem:[%s10815_s3 + $0x300] sm:$0xff] }
 0x668   :  { %v4576_v61 = vmax.f32 %v9987_v53, %v4574_v52  ;;  %v6312_v53 = vld [vmem:[%s10815_s3 + $0x238] sm:$0xff]  ;;  %v10338_v49 = vpack.c.bf16 %v6339_v40, %v6337_v39  ;;  %v6341_v52 = vld [vmem:[%s10815_s3 + $0x310] sm:$0xff]  ;;  %v6377_v39 = vld [vmem:[%s10815_s3 + $0x420] sm:$0xff] }
 0x669   :  { %v10180_v42 = vpack.c.bf16 %v6312_v53, %v6310_v15  ;;  %v6350_v15 = vld [vmem:[%s10815_s3 + $0x358] sm:$0xff]  ;;  %v6352_v53 = vld [vmem:[%s10815_s3 + $0x368] sm:$0xff]  ;;  %v6379_v40 = vld [vmem:[%s10815_s3 + $0x430] sm:$0xff] }
 0x66a   :  { %v10154_v3 = vmax.f32 %v4576_v61, 0.0  ;;  %v6348_v61 = vld [vmem:[%s10815_s3 + $0x348] sm:$0xff] }
 0x66c   :  { %6297 = vmatmul.mubr.msk.f32.vlgmr.msra.gmra.mrb[10].mxu0 %vm1694_vm5, %v10154_v3  ;;  %6300 = vmatmul.mubr.msk.f32.vlgmr.msra.gmra.mrb[16].mxu1 %vm1694_vm5, %v10154_v3 }
 0x66d   :  { %7505 = vmatpush1.bf16.msra.mxu0 %v10007_v50  ;;  %7617 = vmatpush1.bf16.msra.mxu1 %v10152_v58  ;;  %v6314_v50 = vld [vmem:[%s10815_s3 + $0x248] sm:$0xff] }
 0x66e   :  { %7507 = vmatprep.subr.bf16.mxu0 %v10010_v19  ;;  %7619 = vmatprep.subr.bf16.mxu1 %v10156_v8  ;;  %v6316_v19 = vld [vmem:[%s10815_s3 + $0x258] sm:$0xff] }
 0x66f   :  { %4779 = vmatprep.mubr.f32.mxu0 %v10845_v59  ;;  %5101 = vmatprep.mubr.f32.mxu1 %v10845_v59  ;;  %v10202_v0 = vpack.c.bf16 %v6316_v19, %v6314_v50  ;;  %v6354_v50 = vld [vmem:[%s10815_s3 + $0x378] sm:$0xff]  ;;  %v6356_v19 = vld [vmem:[%s10815_s3 + $0x388] sm:$0xff] }
 0x671   :  { %7509 = vmatpush1.bf16.msra.mxu0 %v10028_v13  ;;  %7621 = vmatpush1.bf16.msra.mxu1 %v10176_v16  ;;  %v6318_v13 = vld [vmem:[%s10815_s3 + $0x268] sm:$0xff] }
 0x672   :  { %7511 = vmatprep.subr.bf16.mxu0 %v10032_v46  ;;  %7623 = vmatprep.subr.bf16.mxu1 %v10180_v42  ;;  %v6320_v46 = vld [vmem:[%s10815_s3 + $0x278] sm:$0xff] }
 0x673   :  { %v10222_v24 = vpack.c.bf16 %v6320_v46, %v6318_v13  ;;  %v6358_v13 = vld [vmem:[%s10815_s3 + $0x398] sm:$0xff]  ;;  %v6360_v46 = vld [vmem:[%s10815_s3 + $0x3a8] sm:$0xff] }
 0x675   :  { %7513 = vmatpush1.bf16.msra.mxu0 %v10047_v7  ;;  %7625 = vmatpush1.bf16.msra.mxu1 %v10198_v32  ;;  %v6322_v7 = vld [vmem:[%s10815_s3 + $0x288] sm:$0xff] }
 0x676   :  { %7515 = vmatprep.subr.bf16.mxu0 %v10050_v31  ;;  %7627 = vmatprep.subr.bf16.mxu1 %v10202_v0  ;;  %v6324_v31 = vld [vmem:[%s10815_s3 + $0x298] sm:$0xff] }
 0x677   :  { %v10242_v26 = vpack.c.bf16 %v6324_v31, %v6322_v7  ;;  %v10434_v7 = vpack.c.bf16 %v6359_v48, %v6357_v35  ;;  %v10441_v31 = vld [vmem:[%s10815_s3 + $0x3b8] sm:$0xff]  ;;  %v5503_v35 = vld [vmem:[%s10817_s5 + $0x30] sm:$0xff] }
 0x678   :  { %v5504_v48 = vld [vmem:[%s10817_s5 + $0x38] sm:$0xff] }
 0x679   :  { %7517 = vmatpush1.bf16.msra.mxu0 %v10065_v18  ;;  %7629 = vmatpush1.bf16.msra.mxu1 %v10218_v54  ;;  %v6326_v18 = vld [vmem:[%s10815_s3 + $0x2a8] sm:$0xff] }
 0x67a   :  { %7519 = vmatprep.subr.bf16.mxu0 %v10068_v36  ;;  %7631 = vmatprep.subr.bf16.mxu1 %v10222_v24  ;;  %v6328_v36 = vld [vmem:[%s10815_s3 + $0x2b8] sm:$0xff] }
 0x67b   :  { %v10262_v57 = vpack.c.bf16 %v6328_v36, %v6326_v18  ;;  %v10462_v18 = vld [vmem:[%s10815_s3 + $0x3b0] sm:$0xff]  ;;  %v6370_v36 = vld [vmem:[%s10815_s3 + $0x3e8] sm:$0xff] }
 0x67d   :  { %7521 = vmatpush1.bf16.msra.mxu0 %v10083_v11  ;;  %7633 = vmatpush1.bf16.msra.mxu1 %v10238_v10  ;;  %v10272_v11 = vpack.c.bf16 %v6327_v4, %v6325_v41  ;;  %v10472_v41 = vpack.c.bf16 %v6367_v51, %v6365_v1  ;;  %v5213_v4 = vrot.slane %v10005_v47, 2  ;;  %v5506_v1 = vld [vmem:[%s10817_s5 + $0x48] sm:$0xff] }
 0x67e   :  { %7523 = vmatprep.subr.bf16.mxu0 %v10086_v5  ;;  %7635 = vmatprep.subr.bf16.mxu1 %v10242_v26  ;;  %v10279_v5 = vld [vmem:[%s10815_s3 + $0x2c8] sm:$0xff] }
 0x681   :  { %7525 = vmatpush1.bf16.msra.mxu0 %v10101_v45  ;;  %7637 = vmatpush1.bf16.msra.mxu1 %v10258_v23  ;;  %v6335_v45 = vld [vmem:[%s10815_s3 + $0x2e0] sm:$0xff] }
 0x682   :  { %7527 = vmatprep.subr.bf16.mxu0 %v10104_v22  ;;  %7639 = vmatprep.subr.bf16.mxu1 %v10262_v57  ;;  %v10300_v22 = vld [vmem:[%s10815_s3 + $0x2c0] sm:$0xff]  ;;  %v10310_v63 = vpack.c.bf16 %v6335_v45, %v6333_v14  ;;  %v6376_v14 = vld [vmem:[%s10815_s3 + $0x418] sm:$0xff] }
 0x685   :  { %7529 = vmatpush1.bf16.msra.mxu0 %v10113_v33  ;;  %7641 = vmatpush1.bf16.msra.mxu1 %v10272_v11  ;;  %v10308_v33 = vpack.c.bf16 %v6336_v12, %v6334_v55  ;;  %v6371_v55 = vld [vmem:[%s10815_s3 + $0x3f0] sm:$0xff]  ;;  %v6374_v12 = vld [vmem:[%s10815_s3 + $0x408] sm:$0xff] }
 0x686   :  { %4743 = vmatprep.subr.mxu0 %v10119_v2  ;;  %5065 = vmatprep.subr.mxu1 %v10279_v5  ;;  %v5034_v2 = vrot.slane %v10154_v3, 1  ;;  %v10505_v45 = vpack.c.bf16 %v6376_v14, %v6374_v12 }
 0x689   :  { %4744 = vmatpush1.msra.mxu0 %v10132_v17  ;;  %5066 = vmatpush1.msra.mxu1 %v10300_v22  ;;  %v6342_v17 = vld [vmem:[%s10815_s3 + $0x318] sm:$0xff] }
 0x68a   :  { %6298 = vmatmul.mubr.msk.f32.vlgmr.msra.gmra.mrb[10].mxu0 %vm1694_vm5, %v10005_v47  ;;  %7587 = vmatprep.subr.bf16.mxu0 %v10134_v34  ;;  %v10342_v34 = vpack.c.bf16 %v6344_v43, %v6342_v17  ;;  %v6382_v17 = vld [vmem:[%s10815_s3 + $0x448] sm:$0xff]  ;;  %v6384_v43 = vld [vmem:[%s10815_s3 + $0x458] sm:$0xff] }
 0x68b   :  { %6332 = vmatmul.mubr.msk.f32.vlgmr.msra.gmra.mrb[16].mxu1 %vm1694_vm5, %v5034_v2  ;;  %7671 = vmatprep.subr.bf16.mxu1 %v10308_v33 }
 0x68c   :  { %7589 = vmatpush1.bf16.msra.mxu0 %v10152_v58  ;;  %7673 = vmatpush1.bf16.msra.mxu1 %v10310_v63  ;;  %v10360_v58 = vpack.c.bf16 %v6343_v56, %v6341_v52  ;;  %v6381_v52 = vld [vmem:[%s10815_s3 + $0x440] sm:$0xff]  ;;  %v6383_v56 = vld [vmem:[%s10815_s3 + $0x450] sm:$0xff] }
 0x68d   :  { %7591 = vmatprep.subr.bf16.mxu0 %v10156_v8  ;;  %7675 = vmatprep.subr.bf16.mxu1 %v10315_v21  ;;  %v10364_v8 = vpack.c.bf16 %v6348_v61, %v6346_v60  ;;  %v6386_v60 = vld [vmem:[%s10815_s3 + $0x468] sm:$0xff]  ;;  %v6388_v61 = vld [vmem:[%s10815_s3 + $0x478] sm:$0xff] }
 0x68e   :  { %5025 = vmatprep.mubr.f32.mxu0 %v10845_v59  ;;  %5280 = vmatprep.mubr.f32.mxu1 %v10845_v59 }
 0x690   :  { %7593 = vmatpush1.bf16.msra.mxu0 %v10176_v16  ;;  %7677 = vmatpush1.bf16.msra.mxu1 %v10338_v49  ;;  %v10380_v16 = vpack.c.bf16 %v6347_v29, %v6345_v25  ;;  %v6385_v25 = vld [vmem:[%s10815_s3 + $0x460] sm:$0xff]  ;;  %v6387_v29 = vld [vmem:[%s10815_s3 + $0x470] sm:$0xff] }
 0x691   :  { %7595 = vmatprep.subr.bf16.mxu0 %v10180_v42  ;;  %7679 = vmatprep.subr.bf16.mxu1 %v10342_v34  ;;  %v10384_v42 = vpack.c.bf16 %v6352_v53, %v6350_v15  ;;  %v6390_v15 = vld [vmem:[%s10815_s3 + $0x488] sm:$0xff]  ;;  %v6392_v53 = vld [vmem:[%s10815_s3 + $0x498] sm:$0xff] }
 0x694   :  { %7597 = vmatpush1.bf16.msra.mxu0 %v10198_v32  ;;  %7681 = vmatpush1.bf16.msra.mxu1 %v10360_v58  ;;  %v10400_v32 = vpack.c.bf16 %v6351_v30, %v6349_v44  ;;  %v6389_v44 = vld [vmem:[%s10815_s3 + $0x480] sm:$0xff]  ;;  %v6391_v30 = vld [vmem:[%s10815_s3 + $0x490] sm:$0xff] }
 0x695   :  { %7599 = vmatprep.subr.bf16.mxu0 %v10202_v0  ;;  %7683 = vmatprep.subr.bf16.mxu1 %v10364_v8  ;;  %v10404_v0 = vpack.c.bf16 %v6356_v19, %v6354_v50  ;;  %v7724_v50 = vpack.c.bf16 %v6391_v30, %v6389_v44  ;;  %v6394_v19 = vld [vmem:[%s10815_s3 + $0x4a8] sm:$0xff] }
 0x698   :  { %7601 = vmatpush1.bf16.msra.mxu0 %v10218_v54  ;;  %7685 = vmatpush1.bf16.msra.mxu1 %v10380_v16  ;;  %v10420_v54 = vpack.c.bf16 %v6355_v38, %v6353_v20  ;;  %v5499_v20 = vld [vmem:[%s10817_s5 + $0x10] sm:$0xff]  ;;  %v5500_v38 = vld [vmem:[%s10817_s5 + $0x18] sm:$0xff] }
 0x699   :  { %7603 = vmatprep.subr.bf16.mxu0 %v10222_v24  ;;  %7687 = vmatprep.subr.bf16.mxu1 %v10384_v42  ;;  %v10424_v24 = vpack.c.bf16 %v6360_v46, %v6358_v13  ;;  %v7758_v13 = vpack.c.bf16 %v5500_v38, %v5499_v20  ;;  %v5501_v46 = vld [vmem:[%s10817_s5 + $0x20] sm:$0xff]  ;;  %v5671_v20 = vld [vmem:[%s10817_s5 + $0xd0] sm:$0xff] }
 0x69c   :  { %7605 = vmatpush1.bf16.msra.mxu0 %v10238_v10  ;;  %7689 = vmatpush1.bf16.msra.mxu1 %v10400_v32  ;;  %v6366_v10 = vld [vmem:[%s10815_s3 + $0x3c8] sm:$0xff] }
 0x69d   :  { %7607 = vmatprep.subr.bf16.mxu0 %v10242_v26  ;;  %7691 = vmatprep.subr.bf16.mxu1 %v10404_v0  ;;  %v6368_v26 = vld [vmem:[%s10815_s3 + $0x3d8] sm:$0xff] }
 0x6a0   :  { %7609 = vmatpush1.bf16.msra.mxu0 %v10258_v23  ;;  %7693 = vmatpush1.bf16.msra.mxu1 %v10420_v54  ;;  %v6372_v23 = vld [vmem:[%s10815_s3 + $0x3f8] sm:$0xff] }
 0x6a1   :  { %7611 = vmatprep.subr.bf16.mxu0 %v10262_v57  ;;  %7695 = vmatprep.subr.bf16.mxu1 %v10424_v24  ;;  %v10470_v57 = vpack.c.bf16 %v6368_v26, %v6366_v10  ;;  %v5505_v26 = vld [vmem:[%s10817_s5 + $0x40] sm:$0xff] }
 0x6a2   :  { %v7767_v51 = vpack.c.bf16 %v5506_v1, %v5505_v26  ;;  %v5753_v1 = vld [vmem:[%s10817_s5 + $0x110] sm:$0xff] }
 0x6a4   :  { %7613 = vmatpush1.bf16.msra.mxu0 %v10272_v11  ;;  %7697 = vmatpush1.bf16.msra.mxu1 %v10434_v7  ;;  %v10477_v11 = vpack.c.bf16 %v6372_v23, %v6370_v36 }
 0x6a5   :  { %4989 = vmatprep.subr.mxu0 %v10279_v5  ;;  %5244 = vmatprep.subr.mxu1 %v10441_v31  ;;  %v6369_v5 = vld [vmem:[%s10815_s3 + $0x3e0] sm:$0xff] }
 0x6a8   :  { %4990 = vmatpush1.msra.mxu0 %v10300_v22  ;;  %5245 = vmatpush1.msra.mxu1 %v10462_v18  ;;  %v6373_v22 = vld [vmem:[%s10815_s3 + $0x400] sm:$0xff] }
 0x6a9   :  { %6331 = vmatmul.mubr.msk.f32.vlgmr.msra.gmra.mrb[10].mxu0 %vm1694_vm5, %v4786_v9  ;;  %7643 = vmatprep.subr.bf16.mxu0 %v10308_v33  ;;  %v10501_v9 = vpack.c.bf16 %v6371_v55, %v6369_v5  ;;  %v6380_v33 = vld [vmem:[%s10815_s3 + $0x438] sm:$0xff] }
 0x6aa   :  { %6364 = vmatmul.mubr.msk.f32.vlgmr.msra.gmra.mrb[16].mxu1 %vm1694_vm5, %v5213_v4  ;;  %7727 = vmatprep.subr.bf16.mxu1 %v10470_v57 }
 0x6ab   :  { %7645 = vmatpush1.bf16.msra.mxu0 %v10310_v63  ;;  %7729 = vmatpush1.bf16.msra.mxu1 %v10472_v41  ;;  %v7708_v63 = vpack.c.bf16 %v6375_v27, %v6373_v22  ;;  %v5837_v22 = vld [vmem:[%s10819_s7 + $0x18] sm:$0xff] }
 0x6ac   :  { %7647 = vmatprep.subr.bf16.mxu0 %v10315_v21  ;;  %7731 = vmatprep.subr.bf16.mxu1 %v10477_v11  ;;  %v7710_v21 = vpack.c.bf16 %v6380_v33, %v6378_v28 }
 0x6ad   :  { %5204 = vmatprep.mubr.f32.mxu0 %v10845_v59  ;;  %5459 = vmatprep.mubr.f32.mxu1 %v10845_v59 }
 0x6af   :  { %7649 = vmatpush1.bf16.msra.mxu0 %v10338_v49  ;;  %7733 = vmatpush1.bf16.msra.mxu1 %v10501_v9  ;;  %v7712_v49 = vpack.c.bf16 %v6379_v40, %v6377_v39 }
 0x6b0   :  { %7651 = vmatprep.subr.bf16.mxu0 %v10342_v34  ;;  %7735 = vmatprep.subr.bf16.mxu1 %v10505_v45  ;;  %v7714_v34 = vpack.c.bf16 %v6384_v43, %v6382_v17 }
 0x6b3   :  { %7653 = vmatpush1.bf16.msra.mxu0 %v10360_v58  ;;  %7737 = vmatpush1.bf16.msra.mxu1 %v7708_v63  ;;  %v7716_v58 = vpack.c.bf16 %v6383_v56, %v6381_v52  ;;  %v5585_v56 = vld [vmem:[%s10817_s5 + $0x70] sm:$0xff] }
 0x6b4   :  { %7655 = vmatprep.subr.bf16.mxu0 %v10364_v8  ;;  %7739 = vmatprep.subr.bf16.mxu1 %v7710_v21  ;;  %v7718_v8 = vpack.c.bf16 %v6388_v61, %v6386_v60  ;;  %v5586_v60 = vld [vmem:[%s10817_s5 + $0x78] sm:$0xff] }
 0x6b5   :  { %v7776_v61 = vpack.c.bf16 %v5586_v60, %v5585_v56 }
 0x6b7   :  { %7657 = vmatpush1.bf16.msra.mxu0 %v10380_v16  ;;  %7741 = vmatpush1.bf16.msra.mxu1 %v7712_v49  ;;  %v7720_v16 = vpack.c.bf16 %v6387_v29, %v6385_v25  ;;  %v5589_v29 = vld [vmem:[%s10817_s5 + $0x90] sm:$0xff] }
 0x6b8   :  { %7659 = vmatprep.subr.bf16.mxu0 %v10384_v42  ;;  %7743 = vmatprep.subr.bf16.mxu1 %v7714_v34  ;;  %v7722_v42 = vpack.c.bf16 %v6392_v53, %v6390_v15  ;;  %v5590_v15 = vld [vmem:[%s10817_s5 + $0x98] sm:$0xff] }
 0x6b9   :  { %v7782_v53 = vpack.c.bf16 %v5590_v15, %v5589_v29 }
 0x6bb   :  { %7661 = vmatpush1.bf16.msra.mxu0 %v10400_v32  ;;  %7745 = vmatpush1.bf16.msra.mxu1 %v7716_v58  ;;  %v6393_v32 = vld [vmem:[%s10815_s3 + $0x4a0] sm:$0xff] }
 0x6bc   :  { %7663 = vmatprep.subr.bf16.mxu0 %v10404_v0  ;;  %7747 = vmatprep.subr.bf16.mxu1 %v7718_v8  ;;  %v5392_v0 = vrot.slane %v10154_v3, 2  ;;  %v5497_v3 = vld [vmem:[%s10817_s5] sm:$0xff] }
 0x6bf   :  { %7665 = vmatpush1.bf16.msra.mxu0 %v10420_v54  ;;  %7749 = vmatpush1.bf16.msra.mxu1 %v7720_v16  ;;  %v5502_v54 = vld [vmem:[%s10817_s5 + $0x28] sm:$0xff] }
 0x6c0   :  { %7667 = vmatprep.subr.bf16.mxu0 %v10424_v24  ;;  %7751 = vmatprep.subr.bf16.mxu1 %v7722_v42  ;;  %v7761_v24 = vpack.c.bf16 %v5502_v54, %v5501_v46  ;;  %v5674_v46 = vld [vmem:[%s10817_s5 + $0xe8] sm:$0xff] }
 0x6c3   :  { %7669 = vmatpush1.bf16.msra.mxu0 %v10434_v7  ;;  %7753 = vmatpush1.bf16.msra.mxu1 %v7724_v50  ;;  %v7764_v7 = vpack.c.bf16 %v5504_v48, %v5503_v35  ;;  %v5750_v35 = vld [vmem:[%s10817_s5 + $0xf8] sm:$0xff] }
 0x6c4   :  { %5168 = vmatprep.subr.mxu0 %v10441_v31  ;;  %5423 = vmatprep.subr.mxu1 %v6394_v19 }
 0x6c7   :  { %5169 = vmatpush1.msra.mxu0 %v10462_v18  ;;  %5424 = vmatpush1.msra.mxu1 %v6393_v32  ;;  %v5468_v18 = vld [vmem:[%s10816_s4] sm:$0x3]  ;;  %s5925_s4 = sshll.u32 %s7970_s30, 4  ;;  %s5926_s4 = int_to_ptr.vmem [resolvable:$true] %s5925_s4 }
 0x6c8   :  { %6363 = vmatmul.mubr.msk.f32.vlgmr.msra.gmra.mrb[10].mxu0 %vm1694_vm5, %v5034_v2  ;;  %7699 = vmatprep.subr.bf16.mxu0 %v10470_v57  ;;  %v5498_v2 = vld [vmem:[%s10817_s5 + $0x8] sm:$0xff]  ;;  %v5473_v36 = vrot.slane %v5468_v18, %v10856_v37  ;;  %v5477_v23 = vrot.slane %v5468_v18, %v10857_v6  ;;  %v5836_v6 = vld [vmem:[%s10819_s7 + $0x10] sm:$0xff]  ;;  %p7945_p1 = scmp.lt.s32.totalorder %s5926_s4, %s5926_s4 }
 0x6c9   :  { %6396 = vmatmul.mubr.msk.f32.vlgmr.msra.gmra.mrb[16].mxu1 %vm1694_vm5, %v5392_v0  ;;  %7701 = vmatpush1.bf16.msra.mxu0 %v10472_v41  ;;  %v7755_v47 = vpack.c.bf16 %v5498_v2, %v5497_v3  ;;  %v5835_v37 = vld [vmem:[%s10819_s7 + $0x8] sm:$0xff]  ;;  %v7818_v27 = vpack.c.bf16 %v5837_v22, %v5836_v6  ;;  %v5669_v0 = vld [vmem:[%s10817_s5 + $0xc0] sm:$0xff] }
 0x6ca   :  { %7703 = vmatprep.subr.bf16.mxu0 %v10477_v11  ;;  %5383 = vmatprep.mubr.f32.mxu0 %v10845_v59  ;;  %v5670_v3 = vld [vmem:[%s10817_s5 + $0xc8] sm:$0xff] }
 0x6cb   :  { %7814 = vmatprep.subr.bf16.mxu1 %v7967_v62  ;;  %6722 = vmatprep.mubr.msk.f32.mxu1 %vm7968_vm6, %v10845_v59  ;;  %v7791_v2 = vpack.c.bf16 %v5670_v3, %v5669_v0 }
 0x6cd   :  { %7705 = vmatpush1.bf16.msra.mxu0 %v10501_v9  ;;  %v5834_v9 = vld [vmem:[%s10819_s7] sm:$0xff] }
 0x6ce   :  { %7707 = vmatprep.subr.bf16.mxu0 %v10505_v45  ;;  %v7815_v45 = vpack.c.bf16 %v5835_v37, %v5834_v9  ;;  %v5496_v9 = vld [vmem:[%s10818_s6] sm:$0x1] }
 0x6d0   :  { %7816 = vmatpush3.bf16.msra.mxu1 %v7815_v45 }
 0x6d1   :  { %7709 = vmatpush1.bf16.msra.mxu0 %v7708_v63  ;;  %7817 = vmatprep.subr.bf16.mxu1 %v7967_v62  ;;  %v5581_v63 = vld [vmem:[%s10817_s5 + $0x50] sm:$0xff] }
 0x6d2   :  { %7711 = vmatprep.subr.bf16.mxu0 %v7710_v21  ;;  %v5582_v21 = vld [vmem:[%s10817_s5 + $0x58] sm:$0xff] }
 0x6d3   :  { %v7770_v17 = vpack.c.bf16 %v5582_v21, %v5581_v63 }
 0x6d4   :  { %7819 = vmatpush3.bf16.msra.mxu1 %v7818_v27 }
 0x6d5   :  { %7713 = vmatpush1.bf16.msra.mxu0 %v7712_v49  ;;  %7820 = vmatprep.subr.bf16.mxu1 %v7967_v62  ;;  %v5583_v49 = vld [vmem:[%s10817_s5 + $0x60] sm:$0xff] }
 0x6d6   :  { %7715 = vmatprep.subr.bf16.mxu0 %v7714_v34  ;;  %v5584_v34 = vld [vmem:[%s10817_s5 + $0x68] sm:$0xff] }
 0x6d7   :  { %v7773_v52 = vpack.c.bf16 %v5584_v34, %v5583_v49 }
 0x6d9   :  { %7717 = vmatpush1.bf16.msra.mxu0 %v7716_v58  ;;  %v5587_v58 = vld [vmem:[%s10817_s5 + $0x80] sm:$0xff] }
 0x6da   :  { %7719 = vmatprep.subr.bf16.mxu0 %v7718_v8  ;;  %v5588_v8 = vld [vmem:[%s10817_s5 + $0x88] sm:$0xff] }
 0x6db   :  { %v7779_v25 = vpack.c.bf16 %v5588_v8, %v5587_v58 }
 0x6dd   :  { %7721 = vmatpush1.bf16.msra.mxu0 %v7720_v16  ;;  %v5665_v16 = vld [vmem:[%s10817_s5 + $0xa0] sm:$0xff] }
 0x6de   :  { %7723 = vmatprep.subr.bf16.mxu0 %v7722_v42  ;;  %v5666_v42 = vld [vmem:[%s10817_s5 + $0xa8] sm:$0xff] }
 0x6df   :  { %v7785_v44 = vpack.c.bf16 %v5666_v42, %v5665_v16 }
 0x6e1   :  { %7725 = vmatpush1.bf16.msra.mxu0 %v7724_v50  ;;  %v5667_v50 = vld [vmem:[%s10817_s5 + $0xb0] sm:$0xff] }
 0x6e2   :  { %5347 = vmatprep.subr.mxu0 %v6394_v19  ;;  %v5668_v19 = vld [vmem:[%s10817_s5 + $0xb8] sm:$0xff] }
 0x6e5   :  { %5348 = vmatpush1.msra.mxu0 %v6393_v32  ;;  %v7788_v32 = vpack.c.bf16 %v5668_v19, %v5667_v50 }
 0x6e6   :  { %6395 = vmatmul.mubr.msk.f32.vlgmr.msra.gmra.mrb[10].mxu0 %vm1694_vm5, %v5213_v4  ;;  %7754 = vmatprep.subr.bf16.mxu0 %v7967_v62 }
 0x6e7   :  { %6636 = vmatprep.mubr.msk.f32.mxu0 %vm7968_vm6, %v10845_v59  ;;  %7756 = vmatpush3.bf16.msra.mxu0 %v7755_v47  ;;  %v5672_v47 = vld [vmem:[%s10817_s5 + $0xd8] sm:$0xff] }
 0x6e8   :  { %7757 = vmatprep.subr.bf16.mxu0 %v7967_v62  ;;  %v7794_v38 = vpack.c.bf16 %v5672_v47, %v5671_v20 }
 0x6eb   :  { %7759 = vmatpush3.bf16.msra.mxu0 %v7758_v13  ;;  %v5673_v13 = vld [vmem:[%s10817_s5 + $0xe0] sm:$0xff] }
 0x6ec   :  { %7760 = vmatprep.subr.bf16.mxu0 %v7967_v62  ;;  %v7797_v54 = vpack.c.bf16 %v5674_v46, %v5673_v13 }
 0x6ef   :  { %7762 = vmatpush3.bf16.msra.mxu0 %v7761_v24  ;;  %v5749_v24 = vld [vmem:[%s10817_s5 + $0xf0] sm:$0xff] }
 0x6f0   :  { %7763 = vmatprep.subr.bf16.mxu0 %v7967_v62  ;;  %v7800_v48 = vpack.c.bf16 %v5750_v35, %v5749_v24 }
 0x6f3   :  { %7765 = vmatpush3.bf16.msra.mxu0 %v7764_v7 }
 0x6f4   :  { %7766 = vmatprep.subr.bf16.mxu0 %v7967_v62 }
 0x6f7   :  { %7768 = vmatpush3.bf16.msra.mxu0 %v7767_v51  ;;  %v5754_v51 = vld [vmem:[%s10817_s5 + $0x118] sm:$0xff] }
 0x6f8   :  { %7769 = vmatprep.subr.bf16.mxu0 %v7967_v62  ;;  %v7806_v18 = vpack.c.bf16 %v5754_v51, %v5753_v1 }
 0x79c   :  { %v5461_v31 = vpop.f32.mrb[16].mxu1 }
 0x79d   :  { %v5463_v10 = vpop.f32.mrb[17].mxu1  ;;  %v5482_v41 = vadd.f32 %v5473_v36, %v5461_v31  ;;  %v5751_v31 = vld [vmem:[%s10817_s5 + $0x100] sm:$0xff] }
 0x79e   :  { %v5483_v5 = vadd.f32 %v5477_v23, %v5463_v10  ;;  %v5752_v10 = vld [vmem:[%s10817_s5 + $0x108] sm:$0xff] }
 0x79f   :  { %v7803_v26 = vpack.c.bf16 %v5752_v10, %v5751_v31 }
 0x7b9   :  { %v5385_v57 = vpop.f32.mrb[10].mxu0 }
 0x7ba   :  { %v5480_v4 = vadd.f32 %v5473_v36, %v5385_v57  ;;  %v5387_v11 = vpop.f32.mrb[11].mxu0  ;;  %v5755_v36 = vld [vmem:[%s10817_s5 + $0x120] sm:$0xff] }
 0x7bb   :  { %v5481_v55 = vadd.f32 %v5477_v23, %v5387_v11  ;;  %v5756_v23 = vld [vmem:[%s10817_s5 + $0x128] sm:$0xff] }
 0x7bc   :  { %v5484_v12 = vmax.f32 %v5480_v4, %v5482_v41  ;;  %v7809_v57 = vpack.c.bf16 %v5756_v23, %v5755_v36  ;;  %v5757_v41 = vld [vmem:[%s10817_s5 + $0x130] sm:$0xff]  ;;  %v5758_v4 = vld [vmem:[%s10817_s5 + $0x138] sm:$0xff] }
 0x7bd   :  { %v5485_v14 = vmax.f32 %v5481_v55, %v5483_v5  ;;  %v7812_v11 = vpack.c.bf16 %v5758_v4, %v5757_v41  ;;  %v5838_v55 = vld [vmem:[%s10819_s7 + $0x20] sm:$0xff] }
 0x7be   :  { %5488 = vrot.lane.b32.xlu0 %v5484_v12, %s7969_s22 }
 0x7bf   :  { %5490 = vrot.lane.b32.xlu1 %v5485_v14, %s7969_s22 }
 0x830   :  { %v5489_v28 = vpop.permute.xlu0 %5488 }
 0x831   :  { %v5491_v33 = vpop.permute.xlu1 %5490 }
 0x832   :  { %v5492_v39 = vsel %vm2552_vm7, %v5489_v28, %v5491_v33 }
 0x833   :  { %v5494_v40 = vmax.f32 %v5484_v12, %v5492_v39  ;;  %v5839_v12 = vld [vmem:[%s10819_s7 + $0x28] sm:$0xff] }
 0x834   :  { %v7821_v14 = vpack.c.bf16 %v5839_v12, %v5838_v55 }
 0x835   :  { %v10667_v43 = vmax.f32 %v5494_v40, 0.0 }
 0x836   :  { %7822 = vmatpush3.bf16.msra.mxu1 %v7821_v14 }
 0x837   :  { %6637 = vmatmul.mubr.msk.f32.vlgmr.msra.gmra.mrb[12].mxu0 %vm2568_vm8, %v10667_v43  ;;  %v5591_v30 = vrot.slane %v10667_v43, 1  ;;  %v5675_v7 = vrot.slane %v10667_v43, 2  ;;  %v5759_v5 = vrot.slane %v10667_v43, 3  ;;  %6720 = vmatprep.subr.mxu1 %v10845_v59 }
 0x838   :  { %7771 = vmatpush3.bf16.msra.mxu0 %v7770_v17  ;;  %6659 = vmatprep.mubr.msk.f32.mxu0 %vm7968_vm6, %v10845_v59 }
 0x839   :  { %7772 = vmatprep.subr.bf16.mxu0 %v7967_v62 }
 0x83c   :  { %7774 = vmatpush3.bf16.msra.mxu0 %v7773_v52 }
 0x83d   :  { %7775 = vmatprep.subr.bf16.mxu0 %v7967_v62 }
 0x840   :  { %7777 = vmatpush3.bf16.msra.mxu0 %v7776_v61 }
 0x841   :  { %7778 = vmatprep.subr.bf16.mxu0 %v7967_v62 }
 0x844   :  { %7780 = vmatpush3.bf16.msra.mxu0 %v7779_v25 }
 0x845   :  { %7781 = vmatprep.subr.bf16.mxu0 %v7967_v62 }
 0x848   :  { %7783 = vmatpush3.bf16.msra.mxu0 %v7782_v53 }
 0x849   :  { %7784 = vmatprep.subr.bf16.mxu0 %v7967_v62 }
 0x84b   :  { %6660 = vmatmul.mubr.msk.f32.vlgmr.msra.gmra.mrb[12].mxu0 %vm2568_vm8, %v5591_v30 }
 0x84c   :  { %7786 = vmatpush3.bf16.msra.mxu0 %v7785_v44  ;;  %6682 = vmatprep.mubr.msk.f32.mxu0 %vm7968_vm6, %v10845_v59 }
 0x84d   :  { %7787 = vmatprep.subr.bf16.mxu0 %v7967_v62 }
 0x850   :  { %7789 = vmatpush3.bf16.msra.mxu0 %v7788_v32 }
 0x851   :  { %7790 = vmatprep.subr.bf16.mxu0 %v7967_v62 }
 0x854   :  { %7792 = vmatpush3.bf16.msra.mxu0 %v7791_v2 }
 0x855   :  { %7793 = vmatprep.subr.bf16.mxu0 %v7967_v62 }
 0x858   :  { %7795 = vmatpush3.bf16.msra.mxu0 %v7794_v38 }
 0x859   :  { %7796 = vmatprep.subr.bf16.mxu0 %v7967_v62 }
 0x85c   :  { %7798 = vmatpush3.bf16.msra.mxu0 %v7797_v54 }
 0x85d   :  { %7799 = vmatprep.subr.bf16.mxu0 %v7967_v62 }
 0x85f   :  { %6683 = vmatmul.mubr.msk.f32.vlgmr.msra.gmra.mrb[12].mxu0 %vm2568_vm8, %v5675_v7 }
 0x860   :  { %7801 = vmatpush3.bf16.msra.mxu0 %v7800_v48  ;;  %6705 = vmatprep.mubr.msk.f32.mxu0 %vm7968_vm6, %v10845_v59  ;;  %v5841_v59 = vld [vmem:[%s10820_s8] sm:$0x1] }
 0x861   :  { %7802 = vmatprep.subr.bf16.mxu0 %v7967_v62 }
 0x864   :  { %7804 = vmatpush3.bf16.msra.mxu0 %v7803_v26 }
 0x865   :  { %7805 = vmatprep.subr.bf16.mxu0 %v7967_v62 }
 0x868   :  { %7807 = vmatpush3.bf16.msra.mxu0 %v7806_v18 }
 0x869   :  { %7808 = vmatprep.subr.bf16.mxu0 %v7967_v62 }
 0x86c   :  { %7810 = vmatpush3.bf16.msra.mxu0 %v7809_v57 }
 0x86d   :  { %7811 = vmatprep.subr.bf16.mxu0 %v7967_v62  ;;  %v5840_v62 = vld [vmem:[%s10819_s7 + $0x30] sm:$0x3]  ;;  %s7940_s7 = scalar_lea.vmem %s5926_s4, 32 }
 0x86e   :  { %6721 = vmatpush3.msk.msra.mxu1 %vm2908_vm9, %v5840_v62  ;;  %p7941_p0 = scmp.ne.s32.totalorder %s5926_s4, %s7940_s7  ;;  %p7946_p2 = scmp.lt.s32.totalorder %s7940_s7, %s7940_s7 }
 0x870   :  { %7813 = vmatpush3.bf16.msra.mxu0 %v7812_v11  ;;  %p7947_p3 = por %p7946_p2, %p7945_p1 }
 0x872   :  { %p7948_p4 = pnand %p7947_p3, %p7941_p0 }
 0x873   :  { %6706 = vmatmul.mubr.msk.f32.vlgmr.msra.gmra.mrb[12].mxu0 %vm2568_vm8, %v5759_v5 }
 0x946   :  { %v5828_v37 = vpop.f32.mrb[12].mxu0 }
 0x947   :  { %v7826_v6 = vadd.f32 %v5828_v37, %v5496_v9  ;;  %v6707_v45 = vpop.f32.mrb[13].mxu0 }
 0x949   :  { %v5833_v22 = vmax.f32 %v7826_v6, 0.0 }
 0x94b   :  { %6723 = vmatmul.mubr.msk.f32.vlgmr.msra.gmra.mrb[18].mxu1 %vm2904_vm10, %v5833_v22 }
 0xa1e   :  { %v5914_v27 = vpop.f32.mrb[18].mxu1 }
 0xa1f   :  { %v5915_v28 = vadd.f32 %v5914_v27, %v5841_v59  ;;  %v6724_v33 = vpop.f32.mrb[19].mxu1 }
 0xa21   :  { %5918 = vst.msk [vmem:[#allocation2 + $0x1] sm:$0x1] %vm2982_vm11, %v5915_v28 }
 0xa22   :  { %7951 = shalt.err (!%p7948_p4)
}
 0xa23   :  { %s7952_s11 = scalar_lea.hbm %s10821_s9, 32 }
 0xa24   :  { %p7953_p5 = scmp.ne.s32.totalorder %s10821_s9, %s7952_s11  ;;  %p7956_p6 = scmp.lt.u32.totalorder %s7952_s11, %s10821_s9 }
 0xa26   :  { %p7958_p7 = pnand %p7956_p6, %p7953_p5 }
 0xa28   :  { %7961 = shalt.err (!%p7958_p7)
}
 0xa29   :  { %5928 = dma.vmem_to_hbm [thread:$0]  %s5926_s4, 32, %s10821_s9, [#allocation3]  }
 0xa2a   :  { %7962 = dma.done.wait [#allocation3], 32  }
 0xa2b   :  { %7963 = vsyncadd [#allocation3], 4294967264 }
 0xa2c   :  { %5932 = vsyncpa [#allocation3], 1 }

</bundles_post_ra>
